<compile_context>
chip_gen: v5e
topology: v5e:2x2
jax: 0.10.0
libtpu: 0.0.40
codegen_flags: <defaults>
</compile_context>

<pallas_src>
import math

import jax
import jax.numpy as jnp
from jax.experimental import pallas as pl
from jax.experimental.pallas import tpu as pltpu

MULTI = 2           # `multi`
N_STEPS = 2         # `n_steps` == LSTM sequence length == tout input features
IN_FEATURES = 193   # LSTM input size
HIDDEN = 64         # LSTM hidden size

F_PAD = 256         # input features padded once at weight-prep time (193 -> 256, row 193 = 1.0)
M_PAD = 16          # tiny output dim (multi=2) padded to a full bf16 sublane tile (16 rows)
BB_MAX = 1024       # cap on batch lanes per grid block
SLAB_W = F_PAD + 2 * 128          # packed weight slab width: [w_ih | w_hh | pad | W_full]
WD_COL = F_PAD + 128              # column offset of the collapsed dout/tout weight


def _cdiv(a, b):
    return -(-a // b)


def _round_up(n, m):
    return _cdiv(n, m) * m


def _num_tensorcores():
    """Best-effort TensorCore count (v7x has 2 TCs/chip, v5e/v6e have 1)."""
    try:
        kind = (jax.devices()[0].device_kind or "").lower()
    except Exception:
        return 1
    return 2 if ("v7" in kind or "7x" in kind) else 1


def _choose_bb(batch, n_tc):
    """Lanes per batch block: one fat block per TensorCore, multiple of 128, capped."""
    bb = _round_up(max(_cdiv(batch, n_tc), 1), 128)
    return int(min(bb, BB_MAX))


# ---------------------------------------------------------------------------
# Fused LSTMNet kernel.  One grid step processes BB batch columns end-to-end;
# every intermediate stays in VMEM / vregs.  Feature-major layout:
# features on sublanes, batch on the 128-lane axis.
# ---------------------------------------------------------------------------
def _lstmnet_kernel(x_ref, w_ref, bias_ref, o_ref):
    H = HIDDEN
    TBB = x_ref.shape[1]          # n_steps * BB (lanes of this block)
    BB = TBB // N_STEPS

    # Static, 128-lane-aligned sub-slices of the packed weight slab (free views).
    wih = w_ref[:, 0:F_PAD]                    # (4H, F_PAD)  bf16, bias folded in col 193
    whh = w_ref[:, F_PAD:F_PAD + H]            # (4H, H)      bf16
    wd = w_ref[0:M_PAD, WD_COL:WD_COL + 2 * H]  # (M_PAD, 2H) bf16, collapsed dout∘tout

    # LSTM input projection for BOTH timesteps in one MXU pass (bias via the ones-row of x).
    xg = jnp.dot(wih, x_ref[...], preferred_element_type=jnp.float32)   # (4H, n_steps*BB) f32

    h = None
    c = None
    hs = []
    for t in range(N_STEPS):                   # n_steps == 2 -> static unroll
        g_t = xg[:, t * BB:(t + 1) * BB]       # (4H, BB), lane-tile aligned slice
        if t > 0:                              # h0 == 0 -> skip the recurrent matmul at t=0
            g_t = g_t + jnp.dot(whh, h.astype(jnp.bfloat16),
                                preferred_element_type=jnp.float32)
        i = jax.nn.sigmoid(g_t[0 * H:1 * H])   # free sublane slices (PyTorch gate order i,f,g,o)
        f = jax.nn.sigmoid(g_t[1 * H:2 * H])
        g = jnp.tanh(g_t[2 * H:3 * H])
        o = jax.nn.sigmoid(g_t[3 * H:4 * H])
        c = i * g if t == 0 else f * c + i * g
        h = o * jnp.tanh(c)
        hs.append(h.astype(jnp.bfloat16))

    # Collapsed dout -> permute(2,1,0) -> tout -> permute(0,2,1): ONE (M_PAD, 2H) x (2H, BB)
    # MXU pass.  The kernel already carries (features, batch) tiles, so the result is directly
    # the (multi, batch) layout of the final output (lane-dense store).
    hstack = jnp.concatenate(hs, axis=0)                                  # (2H, BB) bf16
    o_ref[...] = (jnp.dot(wd, hstack, preferred_element_type=jnp.float32)
                  + bias_ref[...])                                        # (M_PAD, BB) f32


# ---------------------------------------------------------------------------
# Wrapper (jit-compiled): layout glue + one pallas_call
# ---------------------------------------------------------------------------
def lstmnet_forward(params, x):
    """LSTMNet.forward.  x: (n_steps, batch, 193) f32  ->  (1, multi, batch) f32."""
    T, B, F = x.shape
    assert T == N_STEPS and F == IN_FEATURES

    n_tc = _num_tensorcores()
    BB = _choose_bb(B, n_tc)
    Bp = _round_up(B, BB)
    NB = Bp // BB

    # Glue (fused by XLA under jit): feature-major layout, zero-pad features/batch, insert the
    # constant-1 bias row, group both timesteps of each batch block contiguously on lanes.
    xt = jnp.transpose(x, (2, 0, 1))                                   # (F, T, B)
    xt = jnp.pad(xt, ((0, F_PAD - F), (0, 0), (0, Bp - B)))            # (F_PAD, T, Bp)
    xt = xt.at[IN_FEATURES, :, :].set(1.0)                             # bias row
    xt = xt.reshape(F_PAD, T, NB, BB).transpose(0, 2, 1, 3)            # (F_PAD, NB, T, BB)
    xt = xt.reshape(F_PAD, NB * T * BB).astype(jnp.bfloat16)

    w = params['w']          # (4H, SLAB_W) bf16 packed weight slab
    bias = params['bias']    # (M_PAD, 1)   f32 fused output bias

    out = pl.pallas_call(
        _lstmnet_kernel,
        out_shape=jax.ShapeDtypeStruct((M_PAD, Bp), jnp.float32),
        grid=(NB,),
        in_specs=[pl.BlockSpec((F_PAD, T * BB), lambda i: (0, i)),
                  pl.BlockSpec(w.shape, lambda i: (0, 0)),
                  pl.BlockSpec(bias.shape, lambda i: (0, 0))],
        out_specs=pl.BlockSpec((M_PAD, BB), lambda i: (0, i)),
        compiler_params=pltpu.CompilerParams(dimension_semantics=("parallel",)),
    )(xt, w, bias)

    return out[:MULTI, :B].reshape(1, MULTI, B)


# ---------------------------------------------------------------------------
# Parameters: PyTorch-default init (PyTorch (out_features, in_features) layout),
# then a ONE-TIME prep pass that collapses the linear chains, folds biases and
# packs everything into a single bf16 slab + one f32 bias column.
# ---------------------------------------------------------------------------
def init_params(key):
    ks = iter(jax.random.split(key, 16))

    def u(shape, fan_in):
        bnd = 1.0 / math.sqrt(fan_in)
        return jax.random.uniform(next(ks), shape, jnp.float32, -bnd, bnd)

    H = HIDDEN
    return {
        'lstm_w_ih': u((4 * H, IN_FEATURES), H),
        'lstm_w_hh': u((4 * H, H), H),
        'lstm_b_ih': u((4 * H,), H),
        'lstm_b_hh': u((4 * H,), H),
        'dout': [(u((256, H), H), u((256,), H)),
                 (u((16, 256), 256), u((16,), 256)),
                 (u((1, 16), 16), u((1,), 16))],
        'tout': [(u((256, N_STEPS), N_STEPS), u((256,), N_STEPS)),
                 (u((16, 256), 256), u((16,), 256)),
                 (u((MULTI, 16), 16), u((MULTI,), 16))],
    }


def prepare_params(p):
    """One-time transform: collapse activation-free dout/tout chains, fold LSTM biases into the
    input projection (ones-row trick), pad to MXU-friendly shapes, pack into one bf16 slab."""
    H = HIDDEN

    # --- LSTM input weights, features padded 193 -> 256, combined bias folded into column 193 ---
    w_ih = jnp.zeros((4 * H, F_PAD), jnp.float32)
    w_ih = w_ih.at[:, :IN_FEATURES].set(p['lstm_w_ih'])
    w_ih = w_ih.at[:, IN_FEATURES].set(p['lstm_b_ih'] + p['lstm_b_hh'])

    # --- collapse dout: Linear(64,256)->Linear(256,16)->Linear(16,1), no activations ---
    (dw1, db1), (dw2, db2), (dw3, db3) = p['dout']
    Wd = dw3 @ dw2 @ dw1                         # (1, H)
    bd = dw3 @ (dw2 @ db1 + db2) + db3           # (1,)

    # --- collapse tout: Linear(n_steps,256)->Linear(256,16)->Linear(16,multi) ---
    (tw1, tb1), (tw2, tb2), (tw3, tb3) = p['tout']
    Wt = tw3 @ tw2 @ tw1                         # (multi, n_steps)
    bt = tw3 @ (tw2 @ tb1 + tb2) + tb3           # (multi,)

    # --- fuse dout∘permute∘tout∘permute into one (multi, n_steps*H) weight + (multi,) bias ---
    Wfull = jnp.concatenate([Wt[:, t:t + 1] * Wd for t in range(N_STEPS)], axis=1)
    bfull = bd[0] * Wt.sum(axis=1) + bt
    Wfull = jnp.pad(Wfull, ((0, M_PAD - MULTI), (0, 0)))                 # (M_PAD, 2H)
    bfull = jnp.pad(bfull, (0, M_PAD - MULTI)).reshape(M_PAD, 1)         # (M_PAD, 1)

    # --- pack one bf16 weight slab with 128-lane aligned segments ---
    slab = jnp.zeros((4 * H, SLAB_W), jnp.float32)
    slab = slab.at[:, 0:F_PAD].set(w_ih)                                 # cols [0,256)
    slab = slab.at[:, F_PAD:F_PAD + H].set(p['lstm_w_hh'])               # cols [256,320)
    slab = slab.at[0:M_PAD, WD_COL:WD_COL + 2 * H].set(Wfull)            # cols [384,512)

    return {'w': slab.astype(jnp.bfloat16), 'bias': bfull.astype(jnp.float32)}


if __name__ == "__main__":
    key = jax.random.PRNGKey(0)
    pkey, xkey = jax.random.split(key)

    params = prepare_params(init_params(pkey))

    # Shapes implied by forward(): seq_len == n_steps == 2, features == 193.
    # Batch mirrors the original usage (H*W = 16*16 = 256).
    B = 256
    x = jax.random.normal(xkey, (N_STEPS, B, IN_FEATURES), jnp.float32)

    fwd = jax.jit(lstmnet_forward)
    out = jax.block_until_ready(fwd(params, x))

    assert out.shape == (1, MULTI, B), out.shape
    assert out.dtype == jnp.float32
    assert bool(jnp.all(jnp.isfinite(out)))
    print("KERNEL_OK")
</pallas_src>

<mosaic_0001>
module attributes {stable_mosaic.version = 11 : i64} {
  func.func @_lstmnet_kernel(%arg0: i32, %arg1: memref<256x512xbf16, #tpu.memory_space<vmem>>, %arg2: memref<256x512xbf16, #tpu.memory_space<vmem>>, %arg3: memref<16x1xf32, #tpu.memory_space<vmem>>, %arg4: memref<16x256xf32, #tpu.memory_space<vmem>>) attributes {dimension_semantics = [#tpu.dimension_semantics<parallel>], iteration_bounds = array<i64: 1>, scalar_prefetch = 0 : i64, scratch_operands = 0 : i64, tpu.core_type = #tpu.core_type<tc>, window_params = [{transform_indices = @transform_0, window_bounds = array<i64: 256, 512>}, {pipeline_mode = #tpu.pipeline_mode<synchronous>, transform_indices = @transform_1, window_bounds = array<i64: 256, 512>}, {pipeline_mode = #tpu.pipeline_mode<synchronous>, transform_indices = @transform_2, window_bounds = array<i64: 16, 1>}, {transform_indices = @transform_3, window_bounds = array<i64: 16, 256>}]} {
    %c0 = arith.constant 0 : index
    %c0_0 = arith.constant 0 : index
    %0 = vector.load %arg2[%c0, %c0_0] : memref<256x512xbf16, #tpu.memory_space<vmem>>, vector<256x256xbf16>
    %c0_1 = arith.constant 0 : index
    %c256 = arith.constant 256 : index
    %1 = vector.load %arg2[%c0_1, %c256] : memref<256x512xbf16, #tpu.memory_space<vmem>>, vector<256x64xbf16>
    %c0_2 = arith.constant 0 : index
    %c384 = arith.constant 384 : index
    %2 = vector.load %arg2[%c0_2, %c384] : memref<256x512xbf16, #tpu.memory_space<vmem>>, vector<16x128xbf16>
    %c0_3 = arith.constant 0 : index
    %c0_4 = arith.constant 0 : index
    %3 = vector.load %arg1[%c0_3, %c0_4] : memref<256x512xbf16, #tpu.memory_space<vmem>>, vector<256x512xbf16>
    %cst = arith.constant dense<0.000000e+00> : vector<256x512xf32>
    %4 = tpu.matmul %0, %3, %cst {dimension_numbers = #tpu.dot_dimension_numbers<[1], [0], [0], [1], [0, 0, 1, 1], [], []>} : vector<256x256xbf16>, vector<256x512xbf16>, vector<256x512xf32> -> vector<256x512xf32>
    %5 = vector.extract_strided_slice %4 {offsets = [0, 0], sizes = [256, 256], strides = [1, 1]} : vector<256x512xf32> to vector<256x256xf32>
    %6 = vector.extract_strided_slice %5 {offsets = [0, 0], sizes = [64, 256], strides = [1, 1]} : vector<256x256xf32> to vector<64x256xf32>
    %7 = arith.negf %6 : vector<64x256xf32>
    %8 = math.exp %7 : vector<64x256xf32>
    %cst_5 = arith.constant 1.000000e+00 : f32
    %9 = vector.broadcast %cst_5 : f32 to vector<64x256xf32>
    %10 = arith.addf %9, %8 : vector<64x256xf32>
    %11 = arith.divf %9, %10 : vector<64x256xf32>
    %12 = vector.extract_strided_slice %5 {offsets = [128, 0], sizes = [64, 256], strides = [1, 1]} : vector<256x256xf32> to vector<64x256xf32>
    %13 = math.tanh %12 : vector<64x256xf32>
    %14 = vector.extract_strided_slice %5 {offsets = [192, 0], sizes = [64, 256], strides = [1, 1]} : vector<256x256xf32> to vector<64x256xf32>
    %15 = arith.negf %14 : vector<64x256xf32>
    %16 = math.exp %15 : vector<64x256xf32>
    %cst_6 = arith.constant 1.000000e+00 : f32
    %17 = vector.broadcast %cst_6 : f32 to vector<64x256xf32>
    %18 = arith.addf %17, %16 : vector<64x256xf32>
    %19 = arith.divf %17, %18 : vector<64x256xf32>
    %20 = arith.mulf %11, %13 : vector<64x256xf32>
    %21 = math.tanh %20 : vector<64x256xf32>
    %22 = arith.mulf %19, %21 : vector<64x256xf32>
    %23 = arith.truncf %22 : vector<64x256xf32> to vector<64x256xbf16>
    %24 = vector.extract_strided_slice %4 {offsets = [0, 256], sizes = [256, 256], strides = [1, 1]} : vector<256x512xf32> to vector<256x256xf32>
    %25 = arith.truncf %22 : vector<64x256xf32> to vector<64x256xbf16>
    %cst_7 = arith.constant dense<0.000000e+00> : vector<256x256xf32>
    %26 = tpu.matmul %1, %25, %cst_7 {dimension_numbers = #tpu.dot_dimension_numbers<[1], [0], [0], [1], [0, 0, 1, 1], [], []>} : vector<256x64xbf16>, vector<64x256xbf16>, vector<256x256xf32> -> vector<256x256xf32>
    %27 = arith.addf %24, %26 : vector<256x256xf32>
    %28 = vector.extract_strided_slice %27 {offsets = [0, 0], sizes = [64, 256], strides = [1, 1]} : vector<256x256xf32> to vector<64x256xf32>
    %29 = arith.negf %28 : vector<64x256xf32>
    %30 = math.exp %29 : vector<64x256xf32>
    %cst_8 = arith.constant 1.000000e+00 : f32
    %31 = vector.broadcast %cst_8 : f32 to vector<64x256xf32>
    %32 = arith.addf %31, %30 : vector<64x256xf32>
    %33 = arith.divf %31, %32 : vector<64x256xf32>
    %34 = vector.extract_strided_slice %27 {offsets = [64, 0], sizes = [64, 256], strides = [1, 1]} : vector<256x256xf32> to vector<64x256xf32>
    %35 = arith.negf %34 : vector<64x256xf32>
    %36 = math.exp %35 : vector<64x256xf32>
    %cst_9 = arith.constant 1.000000e+00 : f32
    %37 = vector.broadcast %cst_9 : f32 to vector<64x256xf32>
    %38 = arith.addf %37, %36 : vector<64x256xf32>
    %39 = arith.divf %37, %38 : vector<64x256xf32>
    %40 = vector.extract_strided_slice %27 {offsets = [128, 0], sizes = [64, 256], strides = [1, 1]} : vector<256x256xf32> to vector<64x256xf32>
    %41 = math.tanh %40 : vector<64x256xf32>
    %42 = vector.extract_strided_slice %27 {offsets = [192, 0], sizes = [64, 256], strides = [1, 1]} : vector<256x256xf32> to vector<64x256xf32>
    %43 = arith.negf %42 : vector<64x256xf32>
    %44 = math.exp %43 : vector<64x256xf32>
    %cst_10 = arith.constant 1.000000e+00 : f32
    %45 = vector.broadcast %cst_10 : f32 to vector<64x256xf32>
    %46 = arith.addf %45, %44 : vector<64x256xf32>
    %47 = arith.divf %45, %46 : vector<64x256xf32>
    %48 = arith.mulf %39, %20 : vector<64x256xf32>
    %49 = arith.mulf %33, %41 : vector<64x256xf32>
    %50 = arith.addf %48, %49 : vector<64x256xf32>
    %51 = math.tanh %50 : vector<64x256xf32>
    %52 = arith.mulf %47, %51 : vector<64x256xf32>
    %53 = arith.truncf %52 : vector<64x256xf32> to vector<64x256xbf16>
    %54 = tpu.concatenate %23, %53 in 0 : vector<64x256xbf16>, vector<64x256xbf16> -> vector<128x256xbf16>
    %cst_11 = arith.constant dense<0.000000e+00> : vector<16x256xf32>
    %55 = tpu.matmul %2, %54, %cst_11 {dimension_numbers = #tpu.dot_dimension_numbers<[1], [0], [0], [1], [0, 0, 1, 1], [], []>} : vector<16x128xbf16>, vector<128x256xbf16>, vector<16x256xf32> -> vector<16x256xf32>
    %c0_12 = arith.constant 0 : index
    %c0_13 = arith.constant 0 : index
    %56 = vector.load %arg3[%c0_12, %c0_13] : memref<16x1xf32, #tpu.memory_space<vmem>>, vector<16x1xf32>
    %57 = vector.broadcast %56 : vector<16x1xf32> to vector<16x256xf32>
    %58 = arith.addf %55, %57 : vector<16x256xf32>
    %c0_14 = arith.constant 0 : index
    %c0_15 = arith.constant 0 : index
    %59 = vector.load %arg4[%c0_14, %c0_15] : memref<16x256xf32, #tpu.memory_space<vmem>>, vector<16x256xf32>
    tpu.vector_store %arg4[%c0_14, %c0_15], %58 {strides = array<i32>} : memref<16x256xf32, #tpu.memory_space<vmem>>, vector<16x256xf32>,
    return
  }
  func.func @transform_0(%arg0: i32) -> (i32, i32) {
    %c0_i32 = arith.constant 0 : i32
    %c0_i32_0 = arith.constant 0 : i32
    return %c0_i32, %arg0 : i32, i32
  }
  func.func @transform_1(%arg0: i32) -> (i32, i32) {
    %c0_i32 = arith.constant 0 : i32
    %c0_i32_0 = arith.constant 0 : i32
    %c0_i32_1 = arith.constant 0 : i32
    return %c0_i32, %c0_i32_0 : i32, i32
  }
  func.func @transform_2(%arg0: i32) -> (i32, i32) {
    %c0_i32 = arith.constant 0 : i32
    %c0_i32_0 = arith.constant 0 : i32
    %c0_i32_1 = arith.constant 0 : i32
    return %c0_i32, %c0_i32_0 : i32, i32
  }
  func.func @transform_3(%arg0: i32) -> (i32, i32) {
    %c0_i32 = arith.constant 0 : i32
    %c0_i32_0 = arith.constant 0 : i32
    return %c0_i32, %arg0 : i32, i32
  }
}

</mosaic_0001>

<bundles_post_ra>
// kernel: lstmnet_forward.1
= control target key start
LH: loop header
LB: loop body
LE: loop exit
PB: predicated region body
PF: predicated region fallthrough
CT: control target
= control target key end

     0   :  { %s8297_s0 = inlined_call_operand.vmem [shape: bf16[256,512], index: 0, kind: input, shape index: {}]   ;;  %s8298_s1 = inlined_call_operand.vmem [shape: bf16[256,512], index: 1, kind: input, shape index: {}]   ;;  %s8299_s2 = inlined_call_operand.vmem [shape: f32[16,1], index: 2, kind: input, shape index: {}]   ;;  %s8300_s3 = inlined_call_operand.vmem [shape: f32[16,256], index: 3, kind: output, shape index: {}]  }
   0x1   :  { %v3748_v0 = vld [vmem:[%s8297_s0 + $0xe0] sm:$0xf]  ;;  %v4149_v1 = vld [vmem:[%s8297_s0 + $0xec] sm:$0xf0]  ;;  %v4070_v51 = vld [vmem:[%s8298_s1 + $0x4] sm:$0xf] }
   0x2   :  { %v3876_v2 = vld [vmem:[%s8297_s0 + $0x1e0] sm:$0xf]  ;;  %v3749_v3 = vor.u32 %v4149_v1, %v3748_v0  ;;  %v4181_v4 = vld [vmem:[%s8297_s0 + $0x1ec] sm:$0xf0]  ;;  %v3510_v53 = vld [vmem:[%s8298_s1 + $0x10] sm:$0xf0] }
   0x3   :  { %v3732_v5 = vld [vmem:[%s8297_s0 + $0xc0] sm:$0xf]  ;;  %v4145_v6 = vld [vmem:[%s8297_s0 + $0xcc] sm:$0xf0]  ;;  %v3877_v7 = vor.u32 %v4181_v4, %v3876_v2  ;;  %v4088_v54 = vld [vmem:[%s8298_s1 + $0x124] sm:$0xf]  ;;  %v4794_v58 = vor.u32 %v4070_v51, %v3510_v53 }
   0x4   :  { %v3860_v8 = vld [vmem:[%s8297_s0 + $0x1c0] sm:$0xf]  ;;  %v4177_v9 = vld [vmem:[%s8297_s0 + $0x1cc] sm:$0xf0]  ;;  %625 = vmatpush.bf16.msra.mxu0 %v3749_v3  ;;  %4183 = vmatpush.bf16.msra.mxu2 %v3749_v3  ;;  %v3733_v10 = vor.u32 %v4145_v6, %v3732_v5  ;;  %v3582_v55 = vld [vmem:[%s8298_s1 + $0x130] sm:$0xf0] }
   0x5   :  { %706 = vmatpush.bf16.msra.mxu1 %v3877_v7  ;;  %4191 = vmatpush.bf16.msra.mxu3 %v3877_v7  ;;  %v3861_v11 = vor.u32 %v4177_v9, %v3860_v8  ;;  %v3716_v12 = vld [vmem:[%s8297_s0 + $0xa0] sm:$0xf]  ;;  %v4141_v13 = vld [vmem:[%s8297_s0 + $0xac] sm:$0xf0]  ;;  %8371 = vst [vmem:[#allocation4_spill] sm:$0xff] %v4794_v58  ;;  %v4796_v59 = vor.u32 %v4088_v54, %v3582_v55 }
   0x6   :  { %v3844_v14 = vld [vmem:[%s8297_s0 + $0x1a0] sm:$0xf]  ;;  %v4173_v15 = vld [vmem:[%s8297_s0 + $0x1ac] sm:$0xf0]  ;;  %v3717_v16 = vor.u32 %v4141_v13, %v3716_v12  ;;  %v4072_v0 = vld [vmem:[%s8298_s1 + $0x24] sm:$0xf] }
   0x7   :  { %v3845_v17 = vor.u32 %v4173_v15, %v3844_v14  ;;  %v3700_v18 = vld [vmem:[%s8297_s0 + $0x80] sm:$0xf]  ;;  %v4137_v19 = vld [vmem:[%s8297_s0 + $0x8c] sm:$0xf0]  ;;  %8372 = vst [vmem:[#allocation5_spill] sm:$0xff] %v4796_v59 }
   0x8   :  { %626 = vmatpush.bf16.msra.mxu0 %v3733_v10  ;;  %4184 = vmatpush.bf16.msra.mxu2 %v3733_v10  ;;  %v3828_v20 = vld [vmem:[%s8297_s0 + $0x180] sm:$0xf]  ;;  %v4169_v21 = vld [vmem:[%s8297_s0 + $0x18c] sm:$0xf0]  ;;  %v3701_v22 = vor.u32 %v4137_v19, %v3700_v18  ;;  %v3518_v1 = vld [vmem:[%s8298_s1 + $0x30] sm:$0xf0] }
   0x9   :  { %707 = vmatpush.bf16.msra.mxu1 %v3861_v11  ;;  %4192 = vmatpush.bf16.msra.mxu3 %v3861_v11  ;;  %v3829_v23 = vor.u32 %v4169_v21, %v3828_v20  ;;  %v3684_v24 = vld [vmem:[%s8297_s0 + $0x60] sm:$0xf]  ;;  %v4133_v25 = vld [vmem:[%s8297_s0 + $0x6c] sm:$0xf0]  ;;  %v4090_v2 = vld [vmem:[%s8298_s1 + $0x144] sm:$0xf]  ;;  %v4830_v6 = vor.u32 %v4072_v0, %v3518_v1 }
   0xa   :  { %v3812_v26 = vld [vmem:[%s8297_s0 + $0x160] sm:$0xf]  ;;  %v4165_v27 = vld [vmem:[%s8297_s0 + $0x16c] sm:$0xf0]  ;;  %v3685_v28 = vor.u32 %v4133_v25, %v3684_v24  ;;  %v3590_v3 = vld [vmem:[%s8298_s1 + $0x150] sm:$0xf0] }
   0xb   :  { %v3813_v29 = vor.u32 %v4165_v27, %v3812_v26  ;;  %v3668_v30 = vld [vmem:[%s8297_s0 + $0x40] sm:$0xf]  ;;  %v4129_v31 = vld [vmem:[%s8297_s0 + $0x4c] sm:$0xf0]  ;;  %8375 = vst [vmem:[#allocation8_spill] sm:$0xff] %v4830_v6  ;;  %v4832_v7 = vor.u32 %v4090_v2, %v3590_v3 }
   0xc   :  { %627 = vmatpush.bf16.msra.mxu0 %v3717_v16  ;;  %4185 = vmatpush.bf16.msra.mxu2 %v3717_v16  ;;  %v3796_v32 = vld [vmem:[%s8297_s0 + $0x140] sm:$0xf]  ;;  %v4161_v33 = vld [vmem:[%s8297_s0 + $0x14c] sm:$0xf0]  ;;  %v3669_v34 = vor.u32 %v4129_v31, %v3668_v30  ;;  %v4074_v12 = vld [vmem:[%s8298_s1 + $0x44] sm:$0xf] }
   0xd   :  { %708 = vmatpush.bf16.msra.mxu1 %v3845_v17  ;;  %4193 = vmatpush.bf16.msra.mxu3 %v3845_v17  ;;  %v3797_v35 = vor.u32 %v4161_v33, %v3796_v32  ;;  %v3652_v36 = vld [vmem:[%s8297_s0 + $0x20] sm:$0xf]  ;;  %v4125_v37 = vld [vmem:[%s8297_s0 + $0x2c] sm:$0xf0]  ;;  %8376 = vst [vmem:[#allocation9_spill] sm:$0xff] %v4832_v7 }
   0xe   :  { %v3780_v38 = vld [vmem:[%s8297_s0 + $0x120] sm:$0xf]  ;;  %v4157_v39 = vld [vmem:[%s8297_s0 + $0x12c] sm:$0xf0]  ;;  %v3653_v40 = vor.u32 %v4125_v37, %v3652_v36  ;;  %v3526_v13 = vld [vmem:[%s8298_s1 + $0x50] sm:$0xf0] }
   0xf   :  { %v3781_v41 = vor.u32 %v4157_v39, %v3780_v38  ;;  %v3636_v42 = vld [vmem:[%s8297_s0] sm:$0xf]  ;;  %v4121_v43 = vld [vmem:[%s8297_s0 + $0xc] sm:$0xf0]  ;;  %v4092_v14 = vld [vmem:[%s8298_s1 + $0x164] sm:$0xf]  ;;  %v4866_v18 = vor.u32 %v4074_v12, %v3526_v13 }
  0x10   :  { %628 = vmatpush.bf16.msra.mxu0 %v3701_v22  ;;  %4186 = vmatpush.bf16.msra.mxu2 %v3701_v22  ;;  %v3764_v44 = vld [vmem:[%s8297_s0 + $0x100] sm:$0xf]  ;;  %v4153_v45 = vld [vmem:[%s8297_s0 + $0x10c] sm:$0xf0]  ;;  %v3637_v48 = vor.u32 %v4121_v43, %v3636_v42  ;;  %v3598_v15 = vld [vmem:[%s8298_s1 + $0x170] sm:$0xf0] }
  0x11   :  { %709 = vmatpush.bf16.msra.mxu1 %v3829_v23  ;;  %4194 = vmatpush.bf16.msra.mxu3 %v3829_v23  ;;  %v3508_v46 = vld [vmem:[%s8298_s1] sm:$0xf]  ;;  %v4071_v47 = vld [vmem:[%s8298_s1 + $0xc] sm:$0xf0]  ;;  %v3765_v52 = vor.u32 %v4153_v45, %v3764_v44  ;;  %8378 = vst [vmem:[#allocation11_spill] sm:$0xff] %v4866_v18  ;;  %v4868_v19 = vor.u32 %v4092_v14, %v3598_v15 }
  0x12   :  { %v3580_v49 = vld [vmem:[%s8298_s1 + $0x120] sm:$0xf]  ;;  %v4089_v50 = vld [vmem:[%s8298_s1 + $0x12c] sm:$0xf0]  ;;  %v4790_v56 = vor.u32 %v4071_v47, %v3508_v46  ;;  %v4076_v24 = vld [vmem:[%s8298_s1 + $0x64] sm:$0xf] }
  0x13   :  { %v4792_v57 = vor.u32 %v4089_v50, %v3580_v49  ;;  %v3516_v60 = vld [vmem:[%s8298_s1 + $0x20] sm:$0xf]  ;;  %v4073_v61 = vld [vmem:[%s8298_s1 + $0x2c] sm:$0xf0]  ;;  %v3534_v25 = vld [vmem:[%s8298_s1 + $0x70] sm:$0xf0] }
  0x14   :  { %629 = vmatpush.bf16.msra.mxu0 %v3685_v28  ;;  %4187 = vmatpush.bf16.msra.mxu2 %v3685_v28  ;;  %8369 = vst [vmem:[#allocation2_spill] sm:$0xff] %v4790_v56  ;;  %v3588_v62 = vld [vmem:[%s8298_s1 + $0x140] sm:$0xf]  ;;  %v4091_v63 = vld [vmem:[%s8298_s1 + $0x14c] sm:$0xf0]  ;;  %v4826_v4 = vor.u32 %v4073_v61, %v3516_v60  ;;  %v4902_v30 = vor.u32 %v4076_v24, %v3534_v25 }
  0x15   :  { %710 = vmatpush.bf16.msra.mxu1 %v3813_v29  ;;  %4195 = vmatpush.bf16.msra.mxu3 %v3813_v29  ;;  %8370 = vst [vmem:[#allocation3_spill] sm:$0xff] %v4792_v57  ;;  %v4828_v5 = vor.u32 %v4091_v63, %v3588_v62  ;;  %v3524_v8 = vld [vmem:[%s8298_s1 + $0x40] sm:$0xf]  ;;  %v4075_v9 = vld [vmem:[%s8298_s1 + $0x4c] sm:$0xf0] }
  0x16   :  { %8373 = vst [vmem:[#allocation6_spill] sm:$0xff] %v4826_v4  ;;  %v3596_v10 = vld [vmem:[%s8298_s1 + $0x160] sm:$0xf]  ;;  %v4093_v11 = vld [vmem:[%s8298_s1 + $0x16c] sm:$0xf0]  ;;  %v4862_v16 = vor.u32 %v4075_v9, %v3524_v8 }
  0x17   :  { %8374 = vst [vmem:[#allocation7_spill] sm:$0xff] %v4828_v5  ;;  %v4864_v17 = vor.u32 %v4093_v11, %v3596_v10  ;;  %v3532_v20 = vld [vmem:[%s8298_s1 + $0x60] sm:$0xf]  ;;  %v4077_v21 = vld [vmem:[%s8298_s1 + $0x6c] sm:$0xf0] }
  0x18   :  { %630 = vmatpush.bf16.msra.mxu0 %v3669_v34  ;;  %4188 = vmatpush.bf16.msra.mxu2 %v3669_v34  ;;  %8377 = vst [vmem:[#allocation10_spill] sm:$0xff] %v4862_v16  ;;  %v3604_v22 = vld [vmem:[%s8298_s1 + $0x180] sm:$0xf]  ;;  %v4095_v23 = vld [vmem:[%s8298_s1 + $0x18c] sm:$0xf0]  ;;  %v4898_v28 = vor.u32 %v4077_v21, %v3532_v20 }
  0x19   :  { %711 = vmatpush.bf16.msra.mxu1 %v3797_v35  ;;  %4196 = vmatpush.bf16.msra.mxu3 %v3797_v35  ;;  %v4094_v26 = vld [vmem:[%s8298_s1 + $0x184] sm:$0xf]  ;;  %v3606_v27 = vld [vmem:[%s8298_s1 + $0x190] sm:$0xf0]  ;;  %v4900_v29 = vor.u32 %v4095_v23, %v3604_v22  ;;  %8380 = vst [vmem:[#allocation13_spill] sm:$0xff] %v4902_v30 }
  0x1a   :  { %8379 = vst [vmem:[#allocation12_spill] sm:$0xff] %v4898_v28  ;;  %v4904_v31 = vor.u32 %v4094_v26, %v3606_v27  ;;  %v4147_v32 = vld [vmem:[%s8297_s0 + $0xe4] sm:$0xf]  ;;  %v3750_v33 = vld [vmem:[%s8297_s0 + $0xf0] sm:$0xf0] }
  0x1b   :  { %v4179_v34 = vld [vmem:[%s8297_s0 + $0x1e4] sm:$0xf]  ;;  %v3753_v35 = vor.u32 %v4147_v32, %v3750_v33  ;;  %v3878_v36 = vld [vmem:[%s8297_s0 + $0x1f0] sm:$0xf0]  ;;  %v4079_v50 = vld [vmem:[%s8298_s1 + $0x8c] sm:$0xf0] }
  0x1c   :  { %631 = vmatpush.bf16.msra.mxu0 %v3653_v40  ;;  %4189 = vmatpush.bf16.msra.mxu2 %v3653_v40  ;;  %v4143_v37 = vld [vmem:[%s8297_s0 + $0xc4] sm:$0xf]  ;;  %v3734_v38 = vld [vmem:[%s8297_s0 + $0xd0] sm:$0xf0]  ;;  %v3881_v39 = vor.u32 %v4179_v34, %v3878_v36  ;;  %v3612_v54 = vld [vmem:[%s8298_s1 + $0x1a0] sm:$0xf] }
  0x1d   :  { %712 = vmatpush.bf16.msra.mxu1 %v3781_v41  ;;  %4197 = vmatpush.bf16.msra.mxu3 %v3781_v41  ;;  %v4175_v40 = vld [vmem:[%s8297_s0 + $0x1c4] sm:$0xf]  ;;  %v3862_v41 = vld [vmem:[%s8297_s0 + $0x1d0] sm:$0xf0]  ;;  %v3737_v42 = vor.u32 %v4143_v37, %v3734_v38  ;;  %v4097_v55 = vld [vmem:[%s8298_s1 + $0x1ac] sm:$0xf0] }
  0x1e   :  { %v3865_v43 = vor.u32 %v4175_v40, %v3862_v41  ;;  %v4139_v44 = vld [vmem:[%s8297_s0 + $0xa4] sm:$0xf]  ;;  %v3718_v45 = vld [vmem:[%s8297_s0 + $0xb0] sm:$0xf0]  ;;  %v4984_v8 = vor.u32 %v4097_v55, %v3612_v54  ;;  %v3548_v34 = vld [vmem:[%s8298_s1 + $0xa0] sm:$0xf] }
  0x1f   :  { %v4171_v46 = vld [vmem:[%s8297_s0 + $0x1a4] sm:$0xf]  ;;  %v3846_v47 = vld [vmem:[%s8297_s0 + $0x1b0] sm:$0xf0]  ;;  %v3721_v49 = vor.u32 %v4139_v44, %v3718_v45  ;;  %v4081_v38 = vld [vmem:[%s8298_s1 + $0xac] sm:$0xf0] }
  0x20   :  { %632 = vmatpush.bf16.msra.mxu0 %v3637_v48  ;;  %4190 = vmatpush.bf16.msra.mxu2 %v3637_v48  ;;  %v3540_v48 = vld [vmem:[%s8298_s1 + $0x80] sm:$0xf]  ;;  %v3849_v51 = vor.u32 %v4171_v46, %v3846_v47  ;;  %v3702_v53 = vld [vmem:[%s8297_s0 + $0x90] sm:$0xf0]  ;;  %v4078_v60 = vld [vmem:[%s8298_s1 + $0x84] sm:$0xf] }
  0x21   :  { %713 = vmatpush.bf16.msra.mxu1 %v3765_v52  ;;  %4198 = vmatpush.bf16.msra.mxu3 %v3765_v52  ;;  %v4135_v52 = vld [vmem:[%s8297_s0 + $0x84] sm:$0xf]  ;;  %v3542_v61 = vld [vmem:[%s8298_s1 + $0x90] sm:$0xf0]  ;;  %v4982_v3 = vor.u32 %v4079_v50, %v3540_v48  ;;  %v3620_v41 = vld [vmem:[%s8298_s1 + $0x1c0] sm:$0xf] }
  0x22   :  { %v4096_v62 = vld [vmem:[%s8298_s1 + $0x1a4] sm:$0xf]  ;;  %v3614_v63 = vld [vmem:[%s8298_s1 + $0x1b0] sm:$0xf0]  ;;  %v3705_v0 = vor.u32 %v4135_v52, %v3702_v53  ;;  %v4986_v9 = vor.u32 %v4078_v60, %v3542_v61  ;;  %v3556_v60 = vld [vmem:[%s8298_s1 + $0xc0] sm:$0xf] }
  0x23   :  { %633 = vmatmul.bf16.vlgmr.msra.gmra.mxu0 %v4790_v56  ;;  %670 = vmatmul.bf16.vlgmr.msra.gmra.mxu2 %v4792_v57  ;;  %v4167_v1 = vld [vmem:[%s8297_s0 + $0x184] sm:$0xf]  ;;  %v3830_v2 = vld [vmem:[%s8297_s0 + $0x190] sm:$0xf0]  ;;  %8381 = vst [vmem:[#allocation14_spill] sm:$0xff] %v4982_v3  ;;  %v4988_v10 = vor.u32 %v4096_v62, %v3614_v63 }
  0x24   :  { %714 = vmatmul.bf16.vlgmr.msra.gmra.mxu1 %v4794_v58  ;;  %751 = vmatmul.bf16.vlgmr.msra.gmra.mxu3 %v4796_v59  ;;  %8382 = vst [vmem:[#allocation15_spill] sm:$0xff] %v4986_v9  ;;  %v3833_v11 = vor.u32 %v4167_v1, %v3830_v2  ;;  %v4131_v12 = vld [vmem:[%s8297_s0 + $0x64] sm:$0xf]  ;;  %v3686_v13 = vld [vmem:[%s8297_s0 + $0x70] sm:$0xf0] }
  0x25   :  { %787 = vmatpush.bf16.msrb.mxu2 %v3753_v35  ;;  %868 = vmatpush.bf16.msrb.mxu3 %v3881_v39  ;;  %v4163_v14 = vld [vmem:[%s8297_s0 + $0x164] sm:$0xf]  ;;  %v3689_v15 = vor.u32 %v4131_v12, %v3686_v13  ;;  %v3814_v20 = vld [vmem:[%s8297_s0 + $0x170] sm:$0xf0]  ;;  %v4083_v61 = vld [vmem:[%s8298_s1 + $0xcc] sm:$0xf0] }
  0x26   :  { %v4127_v21 = vld [vmem:[%s8297_s0 + $0x44] sm:$0xf]  ;;  %v3670_v22 = vld [vmem:[%s8297_s0 + $0x50] sm:$0xf0]  ;;  %v3817_v23 = vor.u32 %v4163_v14, %v3814_v20  ;;  %v3628_v62 = vld [vmem:[%s8298_s1 + $0x1e0] sm:$0xf]  ;;  %v5102_v12 = vor.u32 %v4083_v61, %v3556_v60 }
  0x27   :  { %v3673_v24 = vor.u32 %v4127_v21, %v3670_v22  ;;  %v4159_v25 = vld [vmem:[%s8297_s0 + $0x144] sm:$0xf]  ;;  %v3798_v26 = vld [vmem:[%s8297_s0 + $0x150] sm:$0xf0]  ;;  %v4101_v63 = vld [vmem:[%s8298_s1 + $0x1ec] sm:$0xf0] }
  0x28   :  { %v4123_v27 = vld [vmem:[%s8297_s0 + $0x24] sm:$0xf]  ;;  %v3654_v32 = vld [vmem:[%s8297_s0 + $0x30] sm:$0xf0]  ;;  %v3801_v33 = vor.u32 %v4159_v25, %v3798_v26  ;;  %8387 = vst [vmem:[#allocation20_spill] sm:$0xff] %v5102_v12  ;;  %v5104_v13 = vor.u32 %v4101_v63, %v3628_v62 }
  0x29   :  { %788 = vmatpush.bf16.msrb.mxu2 %v3737_v42  ;;  %869 = vmatpush.bf16.msrb.mxu3 %v3865_v43  ;;  %v3657_v35 = vor.u32 %v4123_v27, %v3654_v32  ;;  %v4155_v36 = vld [vmem:[%s8297_s0 + $0x124] sm:$0xf]  ;;  %v3782_v37 = vld [vmem:[%s8297_s0 + $0x130] sm:$0xf0]  ;;  %v4099_v42 = vld [vmem:[%s8298_s1 + $0x1cc] sm:$0xf0] }
  0x2a   :  { %v4119_v39 = vld [vmem:[%s8297_s0 + $0x4] sm:$0xf]  ;;  %v3638_v40 = vld [vmem:[%s8297_s0 + $0x10] sm:$0xf0]  ;;  %v3785_v47 = vor.u32 %v4155_v36, %v3782_v37  ;;  %v5068_v52 = vor.u32 %v4099_v42, %v3620_v41  ;;  %8388 = vst [vmem:[#allocation21_spill] sm:$0xff] %v5104_v13 }
  0x2b   :  { %v4080_v43 = vld [vmem:[%s8298_s1 + $0xa4] sm:$0xf]  ;;  %v3550_v44 = vld [vmem:[%s8298_s1 + $0xb0] sm:$0xf0]  ;;  %v3641_v48 = vor.u32 %v4119_v39, %v3638_v40  ;;  %v3564_v20 = vld [vmem:[%s8298_s1 + $0xe0] sm:$0xf] }
  0x2c   :  { %v4098_v45 = vld [vmem:[%s8298_s1 + $0x1c4] sm:$0xf]  ;;  %v3622_v46 = vld [vmem:[%s8298_s1 + $0x1d0] sm:$0xf0]  ;;  %8384 = vst [vmem:[#allocation17_spill] sm:$0xff] %v5068_v52  ;;  %v5070_v53 = vor.u32 %v4080_v43, %v3550_v44 }
  0x2d   :  { %789 = vmatpush.bf16.msrb.mxu2 %v3721_v49  ;;  %870 = vmatpush.bf16.msrb.mxu3 %v3849_v51  ;;  %v4151_v49 = vld [vmem:[%s8297_s0 + $0x104] sm:$0xf]  ;;  %v3766_v50 = vld [vmem:[%s8297_s0 + $0x110] sm:$0xf0]  ;;  %v5066_v51 = vor.u32 %v4081_v38, %v3548_v34  ;;  %v5072_v54 = vor.u32 %v4098_v45, %v3622_v46  ;;  %v4085_v21 = vld [vmem:[%s8298_s1 + $0xec] sm:$0xf0] }
  0x2e   :  { %8385 = vst [vmem:[#allocation18_spill] sm:$0xff] %v5070_v53  ;;  %v3769_v55 = vor.u32 %v4151_v49, %v3766_v50  ;;  %v3558_v1 = vld [vmem:[%s8298_s1 + $0xd0] sm:$0xf0]  ;;  %v4100_v2 = vld [vmem:[%s8298_s1 + $0x1e4] sm:$0xf] }
  0x2f   :  { %8383 = vst [vmem:[#allocation16_spill] sm:$0xff] %v5066_v51  ;;  %v4084_v22 = vld [vmem:[%s8298_s1 + $0xe4] sm:$0xf]  ;;  %v3572_v26 = vld [vmem:[%s8298_s1 + $0x100] sm:$0xf] }
  0x30   :  { %8386 = vst [vmem:[#allocation19_spill] sm:$0xff] %v5072_v54  ;;  %v4087_v27 = vld [vmem:[%s8298_s1 + $0x10c] sm:$0xf0]  ;;  %v4086_v32 = vld [vmem:[%s8298_s1 + $0x104] sm:$0xf] }
  0x31   :  { %790 = vmatpush.bf16.msrb.mxu2 %v3705_v0  ;;  %871 = vmatpush.bf16.msrb.mxu3 %v3833_v11  ;;  %v4082_v0 = vld [vmem:[%s8298_s1 + $0xc4] sm:$0xf]  ;;  %v3630_v11 = vld [vmem:[%s8298_s1 + $0x1f0] sm:$0xf0]  ;;  %v5146_v34 = vor.u32 %v4087_v27, %v3572_v26 }
  0x32   :  { %v5106_v14 = vor.u32 %v4082_v0, %v3558_v1 }
  0x33   :  { %638 = vmatmul.bf16.gmra.mxu0 %v4826_v4  ;;  %675 = vmatmul.bf16.gmra.mxu2 %v4828_v5  ;;  %8393 = vst [vmem:[#allocation26_spill] sm:$0xff] %v5146_v34 }
  0x34   :  { %719 = vmatmul.bf16.gmra.mxu1 %v4830_v6  ;;  %756 = vmatmul.bf16.gmra.mxu3 %v4832_v7  ;;  %8389 = vst [vmem:[#allocation22_spill] sm:$0xff] %v5106_v14 }
  0x35   :  { %791 = vmatpush.bf16.msrb.mxu2 %v3689_v15  ;;  %872 = vmatpush.bf16.msrb.mxu3 %v3817_v23  ;;  %v5108_v15 = vor.u32 %v4100_v2, %v3630_v11  ;;  %v3566_v23 = vld [vmem:[%s8298_s1 + $0xf0] sm:$0xf0] }
  0x36   :  { %v5128_v25 = vor.u32 %v4084_v22, %v3566_v23 }
  0x37   :  { %8390 = vst [vmem:[#allocation23_spill] sm:$0xff] %v5108_v15 }
  0x38   :  { %8392 = vst [vmem:[#allocation25_spill] sm:$0xff] %v5128_v25 }
  0x39   :  { %792 = vmatpush.bf16.msrb.mxu2 %v3673_v24  ;;  %873 = vmatpush.bf16.msrb.mxu3 %v3801_v33  ;;  %v5126_v24 = vor.u32 %v4085_v21, %v3564_v20  ;;  %v3574_v33 = vld [vmem:[%s8298_s1 + $0x110] sm:$0xf0] }
  0x3a   :  { %v5148_v36 = vor.u32 %v4086_v32, %v3574_v33 }
  0x3b   :  { %8391 = vst [vmem:[#allocation24_spill] sm:$0xff] %v5126_v24 }
  0x3c   :  { %8394 = vst [vmem:[#allocation27_spill] sm:$0xff] %v5148_v36 }
  0x3d   :  { %793 = vmatpush.bf16.msrb.mxu2 %v3657_v35  ;;  %874 = vmatpush.bf16.msrb.mxu3 %v3785_v47 }
  0x41   :  { %794 = vmatpush.bf16.msrb.mxu2 %v3641_v48  ;;  %875 = vmatpush.bf16.msrb.mxu3 %v3769_v55 }
  0x43   :  { %643 = vmatmul.bf16.gmra.mxu0 %v4862_v16  ;;  %680 = vmatmul.bf16.gmra.mxu2 %v4864_v17 }
  0x44   :  { %724 = vmatmul.bf16.gmra.mxu1 %v4866_v18  ;;  %761 = vmatmul.bf16.gmra.mxu3 %v4868_v19 }
  0x53   :  { %648 = vmatmul.bf16.gmra.mxu0 %v4898_v28  ;;  %685 = vmatmul.bf16.gmra.mxu2 %v4900_v29 }
  0x54   :  { %729 = vmatmul.bf16.gmra.mxu1 %v4902_v30  ;;  %766 = vmatmul.bf16.gmra.mxu3 %v4904_v31 }
  0x63   :  { %653 = vmatmul.bf16.gmra.mxu0 %v4982_v3  ;;  %690 = vmatmul.bf16.gmra.mxu2 %v4984_v8 }
  0x64   :  { %734 = vmatmul.bf16.gmra.mxu1 %v4986_v9  ;;  %771 = vmatmul.bf16.gmra.mxu3 %v4988_v10 }
  0x73   :  { %656 = vmatmul.bf16.gmra.mxu0 %v5066_v51  ;;  %695 = vmatmul.bf16.gmra.mxu2 %v5068_v52 }
  0x74   :  { %737 = vmatmul.bf16.gmra.mxu1 %v5070_v53  ;;  %776 = vmatmul.bf16.gmra.mxu3 %v5072_v54 }
  0x83   :  { %659 = vmatmul.bf16.gmra.mxu0 %v5102_v12  ;;  %700 = vmatmul.bf16.gmra.mxu2 %v5104_v13 }
  0x84   :  { %740 = vmatmul.bf16.gmra.mxu1 %v5106_v14  ;;  %781 = vmatmul.bf16.gmra.mxu3 %v5108_v15 }
  0x93   :  { %662 = vmatmul.bf16.gmra.mxu0 %v5126_v24  ;;  %795 = vmatmul.bf16.vlgmr.msrb.gmra.mxu2 %v4790_v56 }
  0x94   :  { %743 = vmatmul.bf16.gmra.mxu1 %v5128_v25  ;;  %876 = vmatmul.bf16.vlgmr.msrb.gmra.mxu3 %v4794_v58 }
  0xa0   :  { %v634_v35 = vpop.f32.mrf.mxu0 }
  0xa1   :  { %v715_v37 = vpop.f32.mrf.mxu1 }
  0xa2   :  { %v5150_v38 = vadd.f32 %v715_v37, %v634_v35 }
  0xa3   :  { %665 = vmatmul.bf16.gmra.mxu0 %v5146_v34  ;;  %800 = vmatmul.bf16.gmra.mxu2 %v4826_v4 }
  0xa4   :  { %746 = vmatmul.bf16.gmra.mxu1 %v5148_v36  ;;  %881 = vmatmul.bf16.gmra.mxu3 %v4830_v6 }
  0xa6   :  { %v671_v39 = vpop.f32.mrf.mxu2 }
  0xa7   :  { %v752_v40 = vpop.f32.mrf.mxu3 }
  0xa8   :  { %v753_v41 = vadd.f32 %v752_v40, %v671_v39  ;;  %v5156_v42 = vpop.f32.mrf.mxu0 }
  0xa9   :  { %v5158_v43 = vpop.f32.mrf.mxu1 }
  0xae   :  { %v673_v44 = vpop.f32.mrf.mxu2 }
  0xaf   :  { %v754_v45 = vpop.f32.mrf.mxu3 }
  0xb0   :  { %v5160_v46 = vadd.f32 %v754_v45, %v673_v44  ;;  %v639_v47 = vpop.f32.mrf.mxu0 }
  0xb1   :  { %v720_v48 = vpop.f32.mrf.mxu1 }
  0xb2   :  { %8395 = vst [vmem:[#allocation28_spill] sm:$0xff] %v5160_v46  ;;  %v721_v49 = vadd.f32 %v720_v48, %v639_v47 }
  0xb3   :  { %805 = vmatmul.bf16.gmra.mxu2 %v4862_v16 }
  0xb4   :  { %v3894_v50 = vmul.f32 -1.442695, %v721_v49  ;;  %886 = vmatmul.bf16.gmra.mxu3 %v4866_v18 }
  0xb6   :  { %4201 = vpow2.f32 %v3894_v50  ;;  %v676_v55 = vpop.f32.mrf.mxu2 }
  0xb7   :  { %v757_v60 = vpop.f32.mrf.mxu3 }
  0xb8   :  { %v758_v61 = vadd.f32 %v757_v60, %v676_v55  ;;  %v5164_v62 = vpop.f32.mrf.mxu0 }
  0xb9   :  { %v5166_v63 = vpop.f32.mrf.mxu1 }
  0xbc   :  { %v4202_v0 = vpop.eup %4201 }
  0xbd   :  { %v1357_v1 = vadd.f32 1.0, %v4202_v0 }
  0xbe   :  { %v678_v2 = vpop.f32.mrf.mxu2 }
  0xbf   :  { %4203 = vrcp.f32 %v1357_v1  ;;  %v759_v11 = vpop.f32.mrf.mxu3  ;;  %vm1434_vm0 = vweird.f32 %v1357_v1  ;;  %v1440_v35 = vand.u32 2147483648, %v1357_v1  ;;  %v1438_v40 = vand.u32 2147483647, %v1357_v1 }
  0xc0   :  { %v5168_v20 = vadd.f32 %v759_v11, %v678_v2  ;;  %v644_v21 = vpop.f32.mrf.mxu0 }
  0xc1   :  { %v725_v22 = vpop.f32.mrf.mxu1  ;;  %v1441_v49 = vor.u32 1.1754944e-38, %v1440_v35  ;;  %vm1439_vm3 = vcmp.eq.f32.partialorder %v1438_v40, 8.507059e+37 }
  0xc2   :  { %8396 = vst [vmem:[#allocation29_spill] sm:$0xff] %v5168_v20  ;;  %v726_v23 = vadd.f32 %v725_v22, %v644_v21 }
  0xc3   :  { %810 = vmatmul.bf16.gmra.mxu2 %v4898_v28 }
  0xc4   :  { %v3898_v26 = vmul.f32 -1.442695, %v726_v23  ;;  %891 = vmatmul.bf16.gmra.mxu3 %v4902_v30 }
  0xc5   :  { %v4204_v27 = vpop.eup %4203 }
  0xc6   :  { %v1430_v32 = vmul.f32 %v4204_v27, %v1357_v1  ;;  %4205 = vpow2.f32 %v3898_v26  ;;  %v681_v33 = vpop.f32.mrf.mxu2  ;;  %vm1435_vm1 = vweird.f32 %v4204_v27 }
  0xc7   :  { %v762_v37 = vpop.f32.mrf.mxu3  ;;  %4207 = vtanh.f32 %v753_v41  ;;  %vm1436_vm2 = vmor %vm1434_vm0, %vm1435_vm1 }
  0xc8   :  { %v1431_v39 = vsub.f32 1.0, %v1430_v32  ;;  %v5172_v44 = vadd.f32 %v762_v37, %v681_v33  ;;  %v5174_v45 = vpop.f32.mrf.mxu0 }
  0xc9   :  { %v5176_v47 = vpop.f32.mrf.mxu1 }
  0xca   :  { %v1432_v48 = vmul.f32 %v4204_v27, %v1431_v39 }
  0xcc   :  { %v4206_v50 = vpop.eup %4205  ;;  %v1433_v55 = vadd.f32 %v4204_v27, %v1432_v48 }
  0xcd   :  { %v1361_v60 = vadd.f32 1.0, %v4206_v50  ;;  %v4208_v11 = vpop.eup %4207 }
  0xce   :  { %v1437_v0 = vsel %vm1436_vm2, %v4204_v27, %v1433_v55  ;;  %v683_v2 = vpop.f32.mrf.mxu2 }
  0xcf   :  { %v1442_v21 = vsel %vm1439_vm3, %v1441_v49, %v1437_v0  ;;  %4209 = vrcp.f32 %v1361_v60  ;;  %v764_v1 = vpop.f32.mrf.mxu3  ;;  %vm1494_vm4 = vweird.f32 %v1361_v60  ;;  %v1500_v39 = vand.u32 2147483648, %v1361_v60 }
  0xd0   :  { %v5178_v22 = vadd.f32 %v764_v1, %v683_v2  ;;  %v649_v23 = vpop.f32.mrf.mxu0  ;;  %v5180_v26 = vmul.f32 %v4208_v11, %v1442_v21  ;;  %v1498_v49 = vand.u32 2147483647, %v1361_v60 }
  0xd1   :  { %v730_v41 = vpop.f32.mrf.mxu1  ;;  %v1501_v11 = vor.u32 1.1754944e-38, %v1500_v39 }
  0xd2   :  { %8397 = vst [vmem:[#allocation30_spill] sm:$0xff] %v5178_v22  ;;  %v731_v32 = vadd.f32 %v730_v41, %v649_v23  ;;  %vm1499_vm7 = vcmp.eq.f32.partialorder %v1498_v49, 8.507059e+37 }
  0xd3   :  { %8398 = vst [vmem:[#allocation31_spill] sm:$0xff] %v5180_v26  ;;  %815 = vmatmul.bf16.gmra.mxu2 %v4982_v3 }
  0xd4   :  { %v3902_v33 = vmul.f32 -1.442695, %v731_v32  ;;  %896 = vmatmul.bf16.gmra.mxu3 %v4986_v9 }
  0xd5   :  { %v4210_v35 = vpop.eup %4209 }
  0xd6   :  { %v1490_v37 = vmul.f32 %v4210_v35, %v1361_v60  ;;  %4211 = vpow2.f32 %v3902_v33  ;;  %v686_v27 = vpop.f32.mrf.mxu2  ;;  %vm1495_vm5 = vweird.f32 %v4210_v35 }
  0xd7   :  { %v767_v40 = vpop.f32.mrf.mxu3  ;;  %4213 = vtanh.f32 %v758_v61  ;;  %vm1496_vm6 = vmor %vm1494_vm4, %vm1495_vm5 }
  0xd8   :  { %v1491_v48 = vsub.f32 1.0, %v1490_v37  ;;  %v5184_v50 = vadd.f32 %v767_v40, %v686_v27  ;;  %v5186_v55 = vpop.f32.mrf.mxu0 }
  0xd9   :  { %v5188_v0 = vpop.f32.mrf.mxu1 }
  0xda   :  { %v1492_v2 = vmul.f32 %v4210_v35, %v1491_v48 }
  0xdc   :  { %v4212_v21 = vpop.eup %4211  ;;  %v1493_v1 = vadd.f32 %v4210_v35, %v1492_v2 }
  0xdd   :  { %v1365_v23 = vadd.f32 1.0, %v4212_v21  ;;  %v4214_v33 = vpop.eup %4213 }
  0xde   :  { %v1497_v41 = vsel %vm1496_vm6, %v4210_v35, %v1493_v1  ;;  %v688_v32 = vpop.f32.mrf.mxu2 }
  0xdf   :  { %v1502_v37 = vsel %vm1499_vm7, %v1501_v11, %v1497_v41  ;;  %4215 = vrcp.f32 %v1365_v23  ;;  %v769_v60 = vpop.f32.mrf.mxu3  ;;  %vm1554_vm8 = vweird.f32 %v1365_v23  ;;  %v1560_v35 = vand.u32 2147483648, %v1365_v23 }
  0xe0   :  { %v5190_v27 = vadd.f32 %v769_v60, %v688_v32  ;;  %v654_v40 = vpop.f32.mrf.mxu0  ;;  %v5192_v26 = vmul.f32 %v4214_v33, %v1502_v37  ;;  %v1558_v11 = vand.u32 2147483647, %v1365_v23  ;;  %4217 = vtanh.f32 %v5172_v44 }
  0xe1   :  { %v735_v61 = vpop.f32.mrf.mxu1  ;;  %v1561_v37 = vor.u32 1.1754944e-38, %v1560_v35 }
  0xe2   :  { %8399 = vst [vmem:[#allocation32_spill] sm:$0xff] %v5192_v26  ;;  %vm1559_vm11 = vcmp.eq.f32.partialorder %v1558_v11, 8.507059e+37  ;;  %v3890_v11 = vmul.f32 -1.442695, %v5150_v38 }
  0xe3   :  { %818 = vmatmul.bf16.gmra.mxu2 %v5066_v51 }
  0xe4   :  { %899 = vmatmul.bf16.gmra.mxu3 %v5070_v53  ;;  %4219 = vpow2.f32 %v3890_v11  ;;  %v3724_v11 = vld [vmem:[%s8297_s0 + $0xa8] sm:$0xf] }
  0xe5   :  { %v4216_v39 = vpop.eup %4215 }
  0xe6   :  { %v1550_v48 = vmul.f32 %v4216_v39, %v1365_v23  ;;  %v691_v49 = vpop.f32.mrf.mxu2  ;;  %vm1555_vm9 = vweird.f32 %v4216_v39  ;;  %v4218_v26 = vpop.eup %4217 }
  0xe7   :  { %v772_v2 = vpop.f32.mrf.mxu3  ;;  %vm1556_vm10 = vmor %vm1554_vm8, %vm1555_vm9 }
  0xe8   :  { %v1551_v21 = vsub.f32 1.0, %v1550_v48  ;;  %v5196_v1 = vadd.f32 %v772_v2, %v691_v49  ;;  %v655_v41 = vpop.f32.mrf.mxu0 }
  0xe9   :  { %v736_v32 = vpop.f32.mrf.mxu1 }
  0xea   :  { %v1552_v33 = vmul.f32 %v4216_v39, %v1551_v21 }
  0xec   :  { %v1553_v60 = vadd.f32 %v4216_v39, %v1552_v33  ;;  %v4182_v33 = vld [vmem:[%s8297_s0 + $0x1f4] sm:$0xf0] }
  0xee   :  { %v1557_v40 = vsel %vm1556_vm10, %v4216_v39, %v1553_v60  ;;  %v693_v61 = vpop.f32.mrf.mxu2 }
  0xef   :  { %v1562_v22 = vsel %vm1559_vm11, %v1561_v37, %v1557_v40  ;;  %v774_v20 = vpop.f32.mrf.mxu3 }
  0xf0   :  { %v5199_v46 = vmul.f32 %v4218_v26, %v1562_v22  ;;  %v5201_v48 = vadd.f32 %v774_v20, %v693_v61  ;;  %v657_v23 = vpop.f32.mrf.mxu0  ;;  %v3756_v22 = vld [vmem:[%s8297_s0 + $0xe8] sm:$0xf]  ;;  %v4150_v20 = vld [vmem:[%s8297_s0 + $0xf4] sm:$0xf0] }
  0xf1   :  { %v738_v49 = vpop.f32.mrf.mxu1  ;;  %v3884_v26 = vld [vmem:[%s8297_s0 + $0x1e8] sm:$0xf]  ;;  %v3757_v32 = vor.u32 %v4150_v20, %v3756_v22  ;;  %v4142_v22 = vld [vmem:[%s8297_s0 + $0xb4] sm:$0xf0] }
  0xf2   :  { %8400 = vst [vmem:[#allocation33_spill] sm:$0xff] %v5199_v46  ;;  %v3885_v38 = vor.u32 %v4182_v33, %v3884_v26  ;;  %v3740_v23 = vld [vmem:[%s8297_s0 + $0xc8] sm:$0xf]  ;;  %v4146_v49 = vld [vmem:[%s8297_s0 + $0xd4] sm:$0xf0]  ;;  %v3725_v26 = vor.u32 %v4142_v22, %v3724_v11  ;;  %v4220_v33 = vpop.eup %4219 }
  0xf3   :  { %821 = vmatmul.bf16.gmra.mxu2 %v5102_v12  ;;  %949 = vmatpush.bf16.msrb.mxu0 %v3757_v32  ;;  %v4174_v32 = vld [vmem:[%s8297_s0 + $0x1b4] sm:$0xf0] }
  0xf4   :  { %902 = vmatmul.bf16.gmra.mxu3 %v5106_v14  ;;  %1038 = vmatpush.bf16.msrb.mxu1 %v3885_v38  ;;  %v4170_v11 = vld [vmem:[%s8297_s0 + $0x194] sm:$0xf0] }
  0xf6   :  { %v696_v44 = vpop.f32.mrf.mxu2 }
  0xf7   :  { %v777_v2 = vpop.f32.mrf.mxu3 }
  0xf8   :  { %v5205_v35 = vadd.f32 %v777_v2, %v696_v44  ;;  %v658_v21 = vpop.f32.mrf.mxu0  ;;  %v3868_v44 = vld [vmem:[%s8297_s0 + $0x1c8] sm:$0xf]  ;;  %v3741_v2 = vor.u32 %v4146_v49, %v3740_v23 }
  0xf9   :  { %v739_v39 = vpop.f32.mrf.mxu1  ;;  %v4178_v21 = vld [vmem:[%s8297_s0 + $0x1d4] sm:$0xf0]  ;;  %v3708_v49 = vld [vmem:[%s8297_s0 + $0x88] sm:$0xf] }
  0xfa   :  { %v3869_v39 = vor.u32 %v4178_v21, %v3868_v44  ;;  %950 = vmatpush.bf16.msrb.mxu0 %v3741_v2  ;;  %v4138_v44 = vld [vmem:[%s8297_s0 + $0x94] sm:$0xf0]  ;;  %v5256_v2 = vadd.f32 1.0, %v4220_v33 }
  0xfb   :  { %v3709_v21 = vor.u32 %v4138_v44, %v3708_v49 }
  0xfc   :  { %1039 = vmatpush.bf16.msrb.mxu1 %v3869_v39  ;;  %v3836_v39 = vld [vmem:[%s8297_s0 + $0x188] sm:$0xf]  ;;  %4221 = vrcp.f32 %v5256_v2  ;;  %vm1374_vm12 = vweird.f32 %v5256_v2 }
  0xfd   :  { %v3837_v22 = vor.u32 %v4170_v11, %v3836_v39  ;;  %v4130_v39 = vld [vmem:[%s8297_s0 + $0x54] sm:$0xf0] }
  0xfe   :  { %v698_v41 = vpop.f32.mrf.mxu2  ;;  %951 = vmatpush.bf16.msrb.mxu0 %v3725_v26  ;;  %v4134_v26 = vld [vmem:[%s8297_s0 + $0x74] sm:$0xf0] }
  0xff   :  { %v779_v37 = vpop.f32.mrf.mxu3 }
 0x100   :  { %v5220_v60 = vadd.f32 %v779_v37, %v698_v41  ;;  %v660_v40 = vpop.f32.mrf.mxu0  ;;  %v3852_v41 = vld [vmem:[%s8297_s0 + $0x1a8] sm:$0xf] }
 0x101   :  { %v741_v61 = vpop.f32.mrf.mxu1 }
 0x102   :  { %v3853_v61 = vor.u32 %v4174_v32, %v3852_v41  ;;  %952 = vmatpush.bf16.msrb.mxu0 %v3709_v21  ;;  %v3820_v41 = vld [vmem:[%s8297_s0 + $0x168] sm:$0xf] }
 0x103   :  { %824 = vmatmul.bf16.gmra.mxu2 %v5126_v24  ;;  %v3676_v21 = vld [vmem:[%s8297_s0 + $0x48] sm:$0xf] }
 0x104   :  { %905 = vmatmul.bf16.gmra.mxu3 %v5128_v25  ;;  %1040 = vmatpush.bf16.msrb.mxu1 %v3853_v61  ;;  %v3677_v11 = vor.u32 %v4130_v39, %v3676_v21  ;;  %v4158_v21 = vld [vmem:[%s8297_s0 + $0x134] sm:$0xf0] }
 0x106   :  { %v701_v20 = vpop.f32.mrf.mxu2 }
 0x107   :  { %v782_v37 = vpop.f32.mrf.mxu3 }
 0x108   :  { %v5248_v38 = vadd.f32 %v782_v37, %v701_v20  ;;  %v661_v40 = vpop.f32.mrf.mxu0  ;;  %v3692_v20 = vld [vmem:[%s8297_s0 + $0x68] sm:$0xf]  ;;  %1041 = vmatpush.bf16.msrb.mxu1 %v3837_v22  ;;  %v4166_v37 = vld [vmem:[%s8297_s0 + $0x174] sm:$0xf0] }
 0x109   :  { %v742_v23 = vpop.f32.mrf.mxu1  ;;  %v3693_v33 = vor.u32 %v4134_v26, %v3692_v20  ;;  %v3821_v61 = vor.u32 %v4166_v37, %v3820_v41  ;;  %v3804_v22 = vld [vmem:[%s8297_s0 + $0x148] sm:$0xf]  ;;  %v4162_v20 = vld [vmem:[%s8297_s0 + $0x154] sm:$0xf0]  ;;  %v4222_v26 = vpop.eup %4221 }
 0x10a   :  { %8401 = vst [vmem:[#allocation34_spill] sm:$0xff] %v5248_v38  ;;  %v3805_v41 = vor.u32 %v4162_v20, %v3804_v22  ;;  %v4126_v37 = vld [vmem:[%s8297_s0 + $0x34] sm:$0xf0]  ;;  %vm1375_vm13 = vweird.f32 %v4222_v26 }
 0x10b   :  { %953 = vmatpush.bf16.msrb.mxu0 %v3693_v33  ;;  %vm1376_vm14 = vmor %vm1374_vm12, %vm1375_vm13 }
 0x10c   :  { %1042 = vmatpush.bf16.msrb.mxu1 %v3821_v61  ;;  %v1370_v61 = vmul.f32 %v4222_v26, %v5256_v2 }
 0x10e   :  { %v703_v32 = vpop.f32.mrf.mxu2 }
 0x10f   :  { %v784_v40 = vpop.f32.mrf.mxu3  ;;  %954 = vmatpush.bf16.msrb.mxu0 %v3677_v11 }
 0x110   :  { %v5277_v23 = vadd.f32 %v784_v40, %v703_v32  ;;  %v663_v49 = vpop.f32.mrf.mxu0  ;;  %v3660_v32 = vld [vmem:[%s8297_s0 + $0x28] sm:$0xf]  ;;  %1043 = vmatpush.bf16.msrb.mxu1 %v3805_v41 }
 0x111   :  { %v744_v44 = vpop.f32.mrf.mxu1  ;;  %v3788_v40 = vld [vmem:[%s8297_s0 + $0x128] sm:$0xf] }
 0x112   :  { %8402 = vst [vmem:[#allocation35_spill] sm:$0xff] %v5277_v23  ;;  %v3661_v44 = vor.u32 %v4126_v37, %v3660_v32  ;;  %v3789_v22 = vor.u32 %v4158_v21, %v3788_v40  ;;  %v3644_v41 = vld [vmem:[%s8297_s0 + $0x8] sm:$0xf]  ;;  %v4122_v23 = vld [vmem:[%s8297_s0 + $0x14] sm:$0xf0]  ;;  %v1371_v40 = vsub.f32 1.0, %v1370_v61 }
 0x113   :  { %827 = vmatmul.bf16.gmra.mxu2 %v5146_v34  ;;  %v3772_v32 = vld [vmem:[%s8297_s0 + $0x108] sm:$0xf]  ;;  %v3645_v37 = vor.u32 %v4122_v23, %v3644_v41  ;;  %v1380_v61 = vand.u32 2147483648, %v5256_v2  ;;  %v1378_v41 = vand.u32 2147483647, %v5256_v2 }
 0x114   :  { %908 = vmatmul.bf16.gmra.mxu3 %v5148_v36  ;;  %955 = vmatpush.bf16.msrb.mxu0 %v3661_v44 }
 0x115   :  { %1044 = vmatpush.bf16.msrb.mxu1 %v3789_v22  ;;  %vm1379_vm15 = vcmp.eq.f32.partialorder %v1378_v41, 8.507059e+37 }
 0x116   :  { %v796_v33 = vpop.f32.mrf.mxu2 }
 0x117   :  { %v877_v49 = vpop.f32.mrf.mxu3 }
 0x118   :  { %v5306_v39 = vadd.f32 %v877_v49, %v796_v33  ;;  %v664_v11 = vpop.f32.mrf.mxu0  ;;  %v4154_v33 = vld [vmem:[%s8297_s0 + $0x114] sm:$0xf0]  ;;  %956 = vmatpush.bf16.msrb.mxu0 %v3645_v37 }
 0x119   :  { %v745_v20 = vpop.f32.mrf.mxu1  ;;  %v3773_v49 = vor.u32 %v4154_v33, %v3772_v32  ;;  %v1372_v11 = vmul.f32 %v4222_v26, %v1371_v40  ;;  %v1381_v32 = vor.u32 1.1754944e-38, %v1380_v61 }
 0x11b   :  { %1045 = vmatpush.bf16.msrb.mxu1 %v3773_v49  ;;  %957 = vmatmul.bf16.vlgmr.msrb.gmra.mxu0 %v4790_v56  ;;  %v1373_v22 = vadd.f32 %v4222_v26, %v1372_v11 }
 0x11d   :  { %v1377_v33 = vsel %vm1376_vm14, %v4222_v26, %v1373_v22 }
 0x11e   :  { %v798_v44 = vpop.f32.mrf.mxu2  ;;  %1046 = vmatmul.bf16.vlgmr.msrb.gmra.mxu1 %v4794_v58 }
 0x11f   :  { %v879_v21 = vpop.f32.mrf.mxu3 }
 0x120   :  { %v5320_v20 = vadd.f32 %v879_v21, %v798_v44  ;;  %v666_v46 = vpop.f32.mrf.mxu0  ;;  %v1382_v44 = vsel %vm1379_vm15, %v1381_v32, %v1377_v33 }
 0x121   :  { %v747_v38 = vpop.f32.mrf.mxu1 }
 0x122   :  { %v748_v23 = vadd.f32 %v747_v38, %v666_v46 }
 0x123   :  { %832 = vmatmul.bf16.gmra.mxu2 %v4792_v57 }
 0x124   :  { %913 = vmatmul.bf16.gmra.mxu3 %v4796_v59  ;;  %4223 = vtanh.f32 %v748_v23 }
 0x126   :  { %v801_v37 = vpop.f32.mrf.mxu2 }
 0x127   :  { %v882_v40 = vpop.f32.mrf.mxu3 }
 0x128   :  { %v883_v49 = vadd.f32 %v882_v40, %v801_v37 }
 0x12a   :  { %v4224_v21 = vpop.eup %4223 }
 0x12b   :  { %v5329_v46 = vmul.f32 %v4224_v21, %v1382_v44  ;;  %962 = vmatmul.bf16.gmra.mxu0 %v4826_v4  ;;  %v8428_v4 = vld [vmem:[#allocation31_spill] sm:$0xff] }
 0x12d   :  { %8403 = vst [vmem:[#allocation36_spill] sm:$0xff] %v5329_v46 }
 0x12e   :  { %v803_v38 = vpop.f32.mrf.mxu2  ;;  %1051 = vmatmul.bf16.gmra.mxu1 %v4830_v6 }
 0x12f   :  { %v884_v11 = vpop.f32.mrf.mxu3 }
 0x130   :  { %v5331_v58 = vadd.f32 %v884_v11, %v803_v38 }
 0x133   :  { %837 = vmatmul.bf16.gmra.mxu2 %v4828_v5 }
 0x134   :  { %918 = vmatmul.bf16.gmra.mxu3 %v4832_v7 }
 0x136   :  { %v806_v2 = vpop.f32.mrf.mxu2 }
 0x137   :  { %v887_v26 = vpop.f32.mrf.mxu3 }
 0x138   :  { %v5337_v23 = vadd.f32 %v887_v26, %v806_v2 }
 0x13b   :  { %967 = vmatmul.bf16.gmra.mxu0 %v4862_v16 }
 0x13e   :  { %v808_v61 = vpop.f32.mrf.mxu2  ;;  %1056 = vmatmul.bf16.gmra.mxu1 %v4866_v18 }
 0x13f   :  { %v889_v22 = vpop.f32.mrf.mxu3 }
 0x140   :  { %v5339_v41 = vadd.f32 %v889_v22, %v808_v61 }
 0x143   :  { %842 = vmatmul.bf16.gmra.mxu2 %v4864_v17 }
 0x144   :  { %923 = vmatmul.bf16.gmra.mxu3 %v4868_v19 }
 0x146   :  { %v811_v32 = vpop.f32.mrf.mxu2 }
 0x147   :  { %v892_v37 = vpop.f32.mrf.mxu3 }
 0x148   :  { %v5345_v33 = vadd.f32 %v892_v37, %v811_v32 }
 0x14b   :  { %972 = vmatmul.bf16.gmra.mxu0 %v4898_v28 }
 0x14e   :  { %v813_v40 = vpop.f32.mrf.mxu2  ;;  %1061 = vmatmul.bf16.gmra.mxu1 %v4902_v30 }
 0x14f   :  { %v894_v44 = vpop.f32.mrf.mxu3 }
 0x150   :  { %v5347_v21 = vadd.f32 %v894_v44, %v813_v40  ;;  %v3891_v40 = vmul.f32 -1.442695, %v5306_v39  ;;  %v723_v39 = vadd.f32 %v5166_v63, %v5164_v62  ;;  %v3899_v63 = vmul.f32 -1.442695, %v5337_v23 }
 0x152   :  { %4225 = vpow2.f32 %v3891_v40 }
 0x153   :  { %847 = vmatmul.bf16.gmra.mxu2 %v4900_v29 }
 0x154   :  { %928 = vmatmul.bf16.gmra.mxu3 %v4904_v31 }
 0x156   :  { %v816_v38 = vpop.f32.mrf.mxu2 }
 0x157   :  { %v897_v11 = vpop.f32.mrf.mxu3 }
 0x158   :  { %v4226_v11 = vpop.eup %4225 }
 0x15b   :  { %977 = vmatmul.bf16.gmra.mxu0 %v4982_v3 }
 0x15e   :  { %v817_v2 = vpop.f32.mrf.mxu2  ;;  %1066 = vmatmul.bf16.gmra.mxu1 %v4986_v9 }
 0x15f   :  { %v898_v26 = vpop.f32.mrf.mxu3 }
 0x163   :  { %852 = vmatmul.bf16.gmra.mxu2 %v4984_v8 }
 0x164   :  { %933 = vmatmul.bf16.gmra.mxu3 %v4988_v10 }
 0x166   :  { %v819_v61 = vpop.f32.mrf.mxu2 }
 0x167   :  { %v900_v22 = vpop.f32.mrf.mxu3  ;;  %v1354_v61 = vadd.f32 1.0, %v4226_v11 }
 0x168   :  { %v3895_v22 = vmul.f32 -1.442695, %v883_v49 }
 0x169   :  { %4227 = vrcp.f32 %v1354_v61  ;;  %vm1389_vm1 = vweird.f32 %v1354_v61 }
 0x16a   :  { %4229 = vpow2.f32 %v3895_v22 }
 0x16b   :  { %982 = vmatmul.bf16.gmra.mxu0 %v5066_v51  ;;  %v3912_v51 = vmul.f32 -1.442695, %v5201_v48  ;;  %v8414_v48 = vld [vmem:[#allocation29_spill] sm:$0xff] }
 0x16e   :  { %v820_v32 = vpop.f32.mrf.mxu2  ;;  %1071 = vmatmul.bf16.gmra.mxu1 %v5070_v53 }
 0x16f   :  { %v901_v37 = vpop.f32.mrf.mxu3  ;;  %v4228_v40 = vpop.eup %4227 }
 0x170   :  { %v1385_v11 = vmul.f32 %v4228_v40, %v1354_v61  ;;  %vm1390_vm0 = vweird.f32 %v4228_v40 }
 0x171   :  { %vm5387_vm2 = vmor %vm1389_vm1, %vm1390_vm0 }
 0x173   :  { %857 = vmatmul.bf16.gmra.mxu2 %v5068_v52 }
 0x174   :  { %938 = vmatmul.bf16.gmra.mxu3 %v5072_v54 }
 0x176   :  { %v822_v44 = vpop.f32.mrf.mxu2 }
 0x177   :  { %v903_v38 = vpop.f32.mrf.mxu3  ;;  %v3896_v44 = vmul.f32 -1.442695, %v723_v39  ;;  %v5376_v39 = vpop.f32.mrf.mxu0 }
 0x178   :  { %v4230_v38 = vpop.eup %4229 }
 0x179   :  { %4231 = vpow2.f32 %v3896_v44 }
 0x17b   :  { %987 = vmatmul.bf16.gmra.mxu0 %v5102_v12  ;;  %v1386_v12 = vsub.f32 1.0, %v1385_v11 }
 0x17e   :  { %v823_v2 = vpop.f32.mrf.mxu2  ;;  %1076 = vmatmul.bf16.gmra.mxu1 %v5106_v14  ;;  %v5370_v14 = vadd.f32 1.0, %v4230_v38  ;;  %v718_v38 = vadd.f32 %v5158_v43, %v5156_v42  ;;  %v733_v42 = vadd.f32 %v5188_v0, %v5186_v55 }
 0x17f   :  { %v904_v26 = vpop.f32.mrf.mxu3  ;;  %v728_v2 = vadd.f32 %v5176_v47, %v5174_v45  ;;  %v4232_v22 = vpop.eup %4231 }
 0x180   :  { %4233 = vrcp.f32 %v5370_v14  ;;  %v5378_v45 = vpop.f32.mrf.mxu1  ;;  %vm1449_vm5 = vweird.f32 %v5370_v14 }
 0x181   :  { %v3900_v62 = vmul.f32 -1.442695, %v728_v2 }
 0x183   :  { %862 = vmatmul.bf16.gmra.mxu2 %v5104_v13  ;;  %4235 = vpow2.f32 %v3900_v62  ;;  %v3892_v62 = vmul.f32 -1.442695, %v718_v38 }
 0x184   :  { %943 = vmatmul.bf16.gmra.mxu3 %v5108_v15  ;;  %4237 = vpow2.f32 %v3899_v63 }
 0x186   :  { %v825_v32 = vpop.f32.mrf.mxu2  ;;  %v5384_v23 = vpop.eup %4233 }
 0x187   :  { %v906_v37 = vpop.f32.mrf.mxu3  ;;  %v1387_v32 = vmul.f32 %v4228_v40, %v1386_v12  ;;  %v1393_v12 = vand.u32 2147483647, %v1354_v61  ;;  %v1445_v43 = vmul.f32 %v5384_v23, %v5370_v14  ;;  %vm1450_vm4 = vweird.f32 %v5384_v23 }
 0x188   :  { %v5380_v37 = vadd.f32 1.0, %v4232_v22  ;;  %vm5439_vm6 = vmor %vm1449_vm5, %vm1450_vm4 }
 0x189   :  { %v1388_v2 = vadd.f32 %v4228_v40, %v1387_v32  ;;  %vm1394_vm3 = vcmp.eq.f32.partialorder %v1393_v12, 8.507059e+37  ;;  %v3903_v12 = vmul.f32 -1.442695, %v5345_v33 }
 0x18a   :  { %vm1464_vm7 = vweird.f32 %v5380_v37 }
 0x18b   :  { %992 = vmatmul.bf16.gmra.mxu0 %v5126_v24  ;;  %v1392_v32 = vsel %vm5387_vm2, %v4228_v40, %v1388_v2  ;;  %v3904_v40 = vmul.f32 -1.442695, %v733_v42  ;;  %v1446_v2 = vsub.f32 1.0, %v1445_v43 }
 0x18d   :  { %v1447_v22 = vmul.f32 %v5384_v23, %v1446_v2  ;;  %v3910_v2 = vmul.f32 -1.442695, %v5196_v1 }
 0x18e   :  { %v826_v49 = vpop.f32.mrf.mxu2  ;;  %1081 = vmatmul.bf16.gmra.mxu1 %v5128_v25 }
 0x18f   :  { %v907_v26 = vpop.f32.mrf.mxu3  ;;  %v1395_v49 = vand.u32 2147483648, %v1354_v61 }
 0x190   :  { %v4236_v26 = vpop.eup %4235 }
 0x191   :  { %v4238_v63 = vpop.eup %4237  ;;  %v5399_v38 = vadd.f32 1.0, %v4236_v26 }
 0x192   :  { %v5403_v53 = vadd.f32 1.0, %v4238_v63 }
 0x193   :  { %vm1524_vm12 = vweird.f32 %v5399_v38 }
 0x194   :  { %vm1509_vm0 = vweird.f32 %v5403_v53 }
 0x196   :  { %v828_v47 = vpop.f32.mrf.mxu2 }
 0x197   :  { %v909_v44 = vpop.f32.mrf.mxu3 }
 0x198   :  { %v910_v11 = vadd.f32 %v909_v44, %v828_v47  ;;  %v958_v47 = vpop.f32.mrf.mxu0  ;;  %v1396_v44 = vor.u32 1.1754944e-38, %v1395_v49 }
 0x19a   :  { %4239 = vtanh.f32 %v910_v11  ;;  %v1397_v55 = vsel %vm1394_vm3, %v1396_v44, %v1392_v32 }
 0x19b   :  { %4241 = vrcp.f32 %v5380_v37  ;;  %v1047_v61 = vpop.f32.mrf.mxu1  ;;  %997 = vmatmul.bf16.gmra.mxu0 %v5146_v34 }
 0x19c   :  { %4243 = vpow2.f32 %v3892_v62  ;;  %v3906_v62 = vmul.f32 -1.442695, %v5184_v50  ;;  %v5418_v63 = vadd.f32 %v1047_v61, %v958_v47  ;;  %v1448_v47 = vadd.f32 %v5384_v23, %v1447_v22 }
 0x19d   :  { %4245 = vrcp.f32 %v5399_v38 }
 0x19e   :  { %v5397_v11 = vpop.f32.mrf.mxu2  ;;  %1086 = vmatmul.bf16.gmra.mxu1 %v5148_v36  ;;  %4247 = vrcp.f32 %v5403_v53  ;;  %8407 = vst [vmem:[#allocation38_spill] sm:$0xff] %v5418_v63  ;;  %v3908_v36 = vmul.f32 -1.442695, %v5190_v27  ;;  %v1453_v27 = vand.u32 2147483647, %v5370_v14  ;;  %v1470_v63 = vand.u32 2147483648, %v5380_v37 }
 0x19f   :  { %v5401_v25 = vpop.f32.mrf.mxu3  ;;  %4249 = vpow2.f32 %v3904_v40 }
 0x1a0   :  { %v4240_v24 = vpop.eup %4239  ;;  %4251 = vpow2.f32 %v3903_v12  ;;  %v1455_v12 = vand.u32 2147483648, %v5370_v14  ;;  %v1452_v14 = vsel %vm5439_vm6, %v5384_v23, %v1448_v47  ;;  %vm1454_vm9 = vcmp.eq.f32.partialorder %v1453_v27, 8.507059e+37 }
 0x1a1   :  { %v5406_v0 = vpop.eup %4241  ;;  %v5408_v49 = vmul.f32 %v4240_v24, %v1397_v55  ;;  %v960_v24 = vpop.f32.mrf.mxu0  ;;  %4253 = vpow2.f32 %v3906_v62  ;;  %v8409_v62 = vld [vmem:[#allocation28_spill] sm:$0xff] }
 0x1a2   :  { %v1460_v26 = vmul.f32 %v5406_v0, %v5380_v37  ;;  %v4244_v42 = vpop.eup %4243  ;;  %vm1465_vm8 = vweird.f32 %v5406_v0 }
 0x1a3   :  { %8406 = vst [vmem:[#allocation37_spill] sm:$0xff] %v5408_v49  ;;  %v1049_v32 = vpop.f32.mrf.mxu1  ;;  %v5423_v34 = vpop.eup %4245  ;;  %v5425_v40 = vadd.f32 1.0, %v4244_v42  ;;  %vm5468_vm10 = vmor %vm1464_vm7, %vm1465_vm8 }
 0x1a4   :  { %v5420_v55 = vadd.f32 %v1049_v32, %v960_v24  ;;  %v1461_v33 = vsub.f32 1.0, %v1460_v26  ;;  %v5429_v61 = vpop.eup %4247  ;;  %v1520_v22 = vmul.f32 %v5423_v34, %v5399_v38  ;;  %vm1525_vm13 = vweird.f32 %v5423_v34 }
 0x1a5   :  { %v4250_v26 = vpop.eup %4249  ;;  %vm1510_vm14 = vweird.f32 %v5429_v61  ;;  %vm5525_vm15 = vmor %vm1524_vm12, %vm1525_vm13 }
 0x1a6   :  { %v833_v43 = vpop.f32.mrf.mxu2  ;;  %8408 = vst [vmem:[#allocation39_spill] sm:$0xff] %v5420_v55  ;;  %v1462_v24 = vmul.f32 %v5406_v0, %v1461_v33  ;;  %v4252_v1 = vpop.eup %4251  ;;  %v1456_v33 = vor.u32 1.1754944e-38, %v1455_v12  ;;  %v1468_v55 = vand.u32 2147483647, %v5380_v37  ;;  %v1521_v9 = vsub.f32 1.0, %v1520_v22  ;;  %vm5548_vm2 = vmor %vm1509_vm0, %vm1510_vm14 }
 0x1a7   :  { %v914_v44 = vpop.f32.mrf.mxu3  ;;  %v1515_v37 = vand.u32 2147483648, %v5403_v53 }
 0x1a8   :  { %v915_v50 = vadd.f32 %v914_v44, %v833_v43  ;;  %v1505_v43 = vmul.f32 %v5429_v61, %v5403_v53  ;;  %v4254_v44 = vpop.eup %4253  ;;  %v1463_v47 = vadd.f32 %v5406_v0, %v1462_v24  ;;  %vm5481_vm11 = vcmp.eq.f32.partialorder %v1468_v55, 8.507059e+37 }
 0x1a9   :  { %v963_v32 = vpop.f32.mrf.mxu0  ;;  %v5473_v27 = vadd.f32 1.0, %v4254_v44  ;;  %v1516_v18 = vor.u32 1.1754944e-38, %v1515_v37 }
 0x1aa   :  { %4255 = vtanh.f32 %v915_v50  ;;  %v1506_v24 = vsub.f32 1.0, %v1505_v43  ;;  %v1467_v44 = vsel %vm5468_vm10, %v5406_v0, %v1463_v47  ;;  %v1471_v43 = vor.u32 1.1754944e-38, %v1470_v63 }
 0x1ab   :  { %4257 = vtanh.f32 %v8409_v62  ;;  %v1052_v62 = vpop.f32.mrf.mxu1  ;;  %1002 = vmatmul.bf16.gmra.mxu0 %v4792_v57  ;;  %vm1694_vm4 = vweird.f32 %v5473_v27 }
 0x1ac   :  { %4259 = vpow2.f32 %v3908_v36  ;;  %v5451_v36 = vadd.f32 1.0, %v4250_v26  ;;  %v5461_v26 = vadd.f32 1.0, %v4252_v1  ;;  %v1507_v55 = vmul.f32 %v5429_v61, %v1506_v24 }
 0x1ad   :  { %4261 = vrcp.f32 %v5425_v40  ;;  %v1530_v24 = vand.u32 2147483648, %v5399_v38 }
 0x1ae   :  { %4263 = vpow2.f32 %v3910_v2  ;;  %v5453_v50 = vpop.f32.mrf.mxu2  ;;  %v1457_v2 = vsel %vm1454_vm9, %v1456_v33, %v1452_v14  ;;  %1091 = vmatmul.bf16.gmra.mxu1 %v4796_v59  ;;  %vm1584_vm5 = vweird.f32 %v5451_v36 }
 0x1af   :  { %v5458_v42 = vpop.f32.mrf.mxu3  ;;  %4265 = vtanh.f32 %v8414_v48  ;;  %v5494_v48 = vadd.f32 %v1052_v62, %v963_v32  ;;  %v1472_v32 = vsel %vm5481_vm11, %v1471_v43, %v1467_v44  ;;  %v1528_v62 = vand.u32 2147483647, %v5399_v38 }
 0x1b0   :  { %v4256_v23 = vpop.eup %4255  ;;  %4267 = vrcp.f32 %v5451_v36  ;;  %v1513_v43 = vand.u32 2147483647, %v5403_v53  ;;  %v1700_v38 = vand.u32 2147483648, %v5473_v27  ;;  %vm1569_vm11 = vweird.f32 %v5461_v26 }
 0x1b1   :  { %v4258_v12 = vpop.eup %4257  ;;  %v5475_v22 = vmul.f32 %v4256_v23, %v1457_v2  ;;  %4269 = vpow2.f32 %v3912_v51  ;;  %v1522_v23 = vmul.f32 %v5423_v34, %v1521_v9  ;;  %8418 = vst [vmem:[#allocation29_spill] sm:$0xff] %v5494_v48  ;;  %v965_v59 = vpop.f32.mrf.mxu0  ;;  %v8419_v51 = vld [vmem:[#allocation30_spill] sm:$0xff]  ;;  %vm5539_vm1 = vcmp.eq.f32.partialorder %v1528_v62, 8.507059e+37 }
 0x1b2   :  { %v4260_v1 = vpop.eup %4259  ;;  %4271 = vrcp.f32 %v5461_v26  ;;  %vm1514_vm3 = vcmp.eq.f32.partialorder %v1513_v43, 8.507059e+37  ;;  %v5613_v15 = vor.u32 1.1754944e-38, %v1700_v38 }
 0x1b3   :  { %8415 = vst [vmem:[#allocation28_spill] sm:$0xff] %v5475_v22  ;;  %v5479_v14 = vpop.eup %4261  ;;  %4273 = vrcp.f32 %v5473_v27  ;;  %v5491_v2 = vadd.f32 1.0, %v4260_v1  ;;  %v1054_v30 = vpop.f32.mrf.mxu1  ;;  %v1523_v48 = vadd.f32 %v5423_v34, %v1522_v23  ;;  %v5535_v23 = vmul.f32 %v4258_v12, %v1472_v32 }
 0x1b4   :  { %v4264_v33 = vpop.eup %4263  ;;  %4275 = vtanh.f32 %v8419_v51  ;;  %v5503_v63 = vadd.f32 %v1054_v30, %v965_v59  ;;  %v5519_v30 = vmul.f32 %v5479_v14, %v5425_v40 }
 0x1b5   :  { %v5497_v3 = vpop.eup %4265  ;;  %v5501_v9 = vadd.f32 1.0, %v4264_v33  ;;  %4277 = vrcp.f32 %v5491_v2  ;;  %v1508_v33 = vadd.f32 %v5429_v61, %v1507_v55  ;;  %8423 = vst [vmem:[#allocation40_spill] sm:$0xff] %v5535_v23  ;;  %v1527_v53 = vsel %vm5525_vm15, %v5423_v34, %v1523_v48 }
 0x1b6   :  { %v838_v57 = vpop.f32.mrf.mxu2  ;;  %8420 = vst [vmem:[#allocation30_spill] sm:$0xff] %v5503_v63  ;;  %v5505_v47 = vpop.eup %4267  ;;  %v3914_v63 = vmul.f32 -1.442695, %v5205_v35  ;;  %vm1724_vm13 = vweird.f32 %v5491_v2 }
 0x1b7   :  { %v919_v0 = vpop.f32.mrf.mxu3  ;;  %v4270_v51 = vpop.eup %4269  ;;  %v1512_v62 = vsel %vm5548_vm2, %v5429_v61, %v1508_v33  ;;  %vm1585_vm6 = vweird.f32 %v5505_v47 }
 0x1b8   :  { %v920_v1 = vadd.f32 %v919_v0, %v838_v57  ;;  %v5515_v59 = vpop.eup %4271  ;;  %v1531_v0 = vor.u32 1.1754944e-38, %v1530_v24  ;;  %v5555_v12 = vadd.f32 1.0, %v4270_v51  ;;  %v3893_v51 = vmul.f32 -1.442695, %v5320_v20  ;;  %vm5628_vm9 = vmor %vm1584_vm5, %vm1585_vm6 }
 0x1b9   :  { %v5530_v44 = vpop.eup %4273  ;;  %v1565_v32 = vmul.f32 %v5515_v59, %v5461_v26  ;;  %v968_v35 = vpop.f32.mrf.mxu0  ;;  %v1517_v37 = vsel %vm1514_vm3, %v1516_v18, %v1512_v62  ;;  %v3916_v20 = vmul.f32 -1.442695, %v5220_v60  ;;  %v1590_v18 = vand.u32 2147483648, %v5451_v36 }
 0x1ba   :  { %4279 = vtanh.f32 %v920_v1  ;;  %v5537_v55 = vpop.eup %4275  ;;  %v1580_v1 = vmul.f32 %v5505_v47, %v5451_v36  ;;  %v1690_v24 = vmul.f32 %v5530_v44, %v5473_v27  ;;  %v1532_v61 = vsel %vm5539_vm1, %v1531_v0, %v1527_v53 }
 0x1bb   :  { %4281 = vrcp.f32 %v5501_v9  ;;  %v1057_v6 = vpop.f32.mrf.mxu1  ;;  %v5567_v34 = vpop.eup %4277  ;;  %1007 = vmatmul.bf16.gmra.mxu0 %v4828_v5  ;;  %v1566_v43 = vsub.f32 1.0, %v1565_v32  ;;  %v1588_v0 = vand.u32 2147483647, %v5451_v36  ;;  %v1698_v60 = vand.u32 2147483647, %v5473_v27 }
 0x1bc   :  { %4283 = vtanh.f32 %v8428_v4  ;;  %v1581_v33 = vsub.f32 1.0, %v1580_v1  ;;  %v5589_v1 = vmul.f32 %v5497_v3, %v1532_v61  ;;  %v1720_v62 = vmul.f32 %v5567_v34, %v5491_v2 }
 0x1bd   :  { %4285 = vtanh.f32 %v5535_v23  ;;  %v1691_v23 = vsub.f32 1.0, %v1690_v24  ;;  %v3897_v3 = vmul.f32 -1.442695, %v5331_v58  ;;  %v5605_v61 = vadd.f32 %v1057_v6, %v968_v35 }
 0x1be   :  { %v5564_v16 = vpop.f32.mrf.mxu2  ;;  %4287 = vpow2.f32 %v3914_v63  ;;  %1096 = vmatmul.bf16.gmra.mxu1 %v4832_v7  ;;  %v8430_v63 = vld [vmem:[#allocation32_spill] sm:$0xff]  ;;  %8431 = vst [vmem:[#allocation42_spill] sm:$0xff] %v5589_v1  ;;  %v1582_v32 = vmul.f32 %v5505_v47, %v1581_v33  ;;  %vm5609_vm7 = vcmp.eq.f32.partialorder %v1588_v0, 8.507059e+37  ;;  %v1591_v58 = vor.u32 1.1754944e-38, %v1590_v18 }
 0x1bf   :  { %v5571_v57 = vpop.f32.mrf.mxu3  ;;  %4289 = vrcp.f32 %v5555_v12  ;;  %8432 = vst [vmem:[#allocation43_spill] sm:$0xff] %v5605_v61  ;;  %v1692_v33 = vmul.f32 %v5530_v44, %v1691_v23  ;;  %vm1695_vm8 = vweird.f32 %v5530_v44  ;;  %v1721_v0 = vsub.f32 1.0, %v1720_v62 }
 0x1c0   :  { %v4280_v28 = vpop.eup %4279  ;;  %4291 = vtanh.f32 %v8430_v63  ;;  %v1583_v35 = vadd.f32 %v5505_v47, %v1582_v32  ;;  %vm1570_vm10 = vweird.f32 %v5515_v59  ;;  %vm5642_vm12 = vcmp.eq.f32.partialorder %v1698_v60, 8.507059e+37  ;;  %vm5671_vm15 = vmor %vm1694_vm4, %vm1695_vm8 }
 0x1c1   :  { %v5577_v4 = vpop.eup %4281  ;;  %v5581_v48 = vmul.f32 %v4280_v28, %v1517_v37  ;;  %4293 = vpow2.f32 %v3893_v51  ;;  %v1567_v28 = vmul.f32 %v5515_v59, %v1566_v43  ;;  %v970_v37 = vpop.f32.mrf.mxu0  ;;  %v1693_v62 = vadd.f32 %v5530_v44, %v1692_v33  ;;  %vm5654_vm14 = vmor %vm1569_vm11, %vm1570_vm10 }
 0x1c2   :  { %v5592_v53 = vpop.eup %4283  ;;  %v1750_v24 = vmul.f32 %v5577_v4, %v5501_v9  ;;  %4295 = vpow2.f32 %v3916_v20  ;;  %v1760_v33 = vand.u32 2147483648, %v5501_v9  ;;  %vm1725_vm1 = vweird.f32 %v5567_v34 }
 0x1c3   :  { %8429 = vst [vmem:[#allocation41_spill] sm:$0xff] %v5581_v48  ;;  %v5601_v51 = vpop.eup %4285  ;;  %v1059_v56 = vpop.f32.mrf.mxu1  ;;  %4297 = vtanh.f32 %v5589_v1  ;;  %v1568_v18 = vadd.f32 %v5515_v59, %v1567_v28  ;;  %v1587_v28 = vsel %vm5628_vm9, %v5505_v47, %v1583_v35  ;;  %v8444_v1 = vld [vmem:[#allocation34_spill] sm:$0xff]  ;;  %vm1755_vm2 = vweird.f32 %v5577_v4  ;;  %vm5716_vm5 = vmor %vm1724_vm13, %vm1725_vm1 }
 0x1c4   :  { %v4288_v63 = vpop.eup %4287  ;;  %v5617_v6 = vadd.f32 %v1059_v56, %v970_v37  ;;  %v1751_v61 = vsub.f32 1.0, %v1750_v24  ;;  %4299 = vpow2.f32 %v3897_v3  ;;  %v1573_v24 = vand.u32 2147483647, %v5461_v26 }
 0x1c5   :  { %v5615_v20 = vpop.eup %4289  ;;  %v5632_v56 = vadd.f32 1.0, %v4288_v63  ;;  %v1728_v3 = vand.u32 2147483647, %v5491_v2  ;;  %v1572_v47 = vsel %vm5654_vm14, %v5515_v59, %v1568_v18  ;;  %v1697_v59 = vsel %vm5671_vm15, %v5530_v44, %v1693_v62 }
 0x1c6   :  { %v843_v5 = vpop.f32.mrf.mxu2  ;;  %8435 = vst [vmem:[#allocation44_spill] sm:$0xff] %v5617_v6  ;;  %v5621_v23 = vpop.eup %4291  ;;  %v1780_v32 = vmul.f32 %v5615_v20, %v5555_v12  ;;  %v3918_v6 = vmul.f32 -1.442695, %v8444_v1  ;;  %vm1574_vm0 = vcmp.eq.f32.partialorder %v1573_v24, 8.507059e+37  ;;  %vm1754_vm4 = vweird.f32 %v5501_v9 }
 0x1c7   :  { %v924_v43 = vpop.f32.mrf.mxu3  ;;  %8436 = vst [vmem:[#allocation45_spill] sm:$0xff] %v5621_v23  ;;  %v4294_v48 = vpop.eup %4293  ;;  %v1758_v23 = vand.u32 2147483647, %v5501_v9  ;;  %vm5701_vm3 = vcmp.eq.f32.partialorder %v1728_v3, 8.507059e+37  ;;  %vm5720_vm6 = vmor %vm1754_vm4, %vm1755_vm2  ;;  %v1788_v9 = vand.u32 2147483647, %v5555_v12  ;;  %vm1785_vm8 = vweird.f32 %v5615_v20 }
 0x1c8   :  { %v925_v13 = vadd.f32 %v924_v43, %v843_v5  ;;  %v1575_v5 = vand.u32 2147483648, %v5461_v26  ;;  %v4296_v36 = vpop.eup %4295  ;;  %v5652_v37 = vadd.f32 1.0, %v4294_v48  ;;  %v1730_v26 = vand.u32 2147483648, %v5491_v2 }
 0x1c9   :  { %v5659_v60 = vpop.eup %4297  ;;  %v1752_v43 = vmul.f32 %v5577_v4, %v1751_v61  ;;  %v973_v48 = vpop.f32.mrf.mxu0  ;;  %v5675_v38 = vadd.f32 1.0, %v4296_v36  ;;  %v5733_v2 = vsel %vm5642_vm12, %v5613_v15, %v1697_v59  ;;  %vm1784_vm9 = vweird.f32 %v5555_v12 }
 0x1ca   :  { %4301 = vtanh.f32 %v925_v13  ;;  %v1722_v13 = vmul.f32 %v5567_v34, %v1721_v0  ;;  %8443 = vst [vmem:[#allocation46_spill] sm:$0xff] %v5659_v60  ;;  %v1781_v0 = vsub.f32 1.0, %v1780_v32  ;;  %v1576_v61 = vor.u32 1.1754944e-38, %v1575_v5  ;;  %v4300_v18 = vpop.eup %4299  ;;  %vm5777_vm11 = vmor %vm1784_vm9, %vm1785_vm8 }
 0x1cb   :  { %4303 = vrcp.f32 %v5632_v56  ;;  %v1062_v1 = vpop.f32.mrf.mxu1  ;;  %v1592_v5 = vsel %vm5609_vm7, %v1591_v58, %v1587_v28  ;;  %1012 = vmatmul.bf16.gmra.mxu0 %v4864_v17  ;;  %v1753_v24 = vadd.f32 %v5577_v4, %v1752_v43  ;;  %v5699_v7 = vadd.f32 1.0, %v4300_v18 }
 0x1cc   :  { %4305 = vrcp.f32 %v5652_v37  ;;  %v1577_v36 = vsel %vm1574_vm0, %v1576_v61, %v1572_v47  ;;  %v1723_v44 = vadd.f32 %v5567_v34, %v1722_v13  ;;  %v1782_v35 = vmul.f32 %v5615_v20, %v1781_v0  ;;  %v8451_v13 = vld [vmem:[#allocation33_spill] sm:$0xff] }
 0x1cd   :  { %4307 = vpow2.f32 %v3918_v6  ;;  %v5708_v6 = vmul.f32 %v5537_v55, %v1592_v5  ;;  %v1731_v3 = vor.u32 1.1754944e-38, %v1730_v26  ;;  %vm5724_vm7 = vcmp.eq.f32.partialorder %v1758_v23, 8.507059e+37 }
 0x1ce   :  { %v5677_v60 = vpop.f32.mrf.mxu2  ;;  %1101 = vmatmul.bf16.gmra.mxu1 %v4868_v19  ;;  %4309 = vrcp.f32 %v5675_v38  ;;  %v1790_v0 = vand.u32 2147483648, %v5555_v12  ;;  %v5735_v61 = vadd.f32 %v1062_v1, %v973_v48  ;;  %v1757_v18 = vsel %vm5720_vm6, %v5577_v4, %v1753_v24 }
 0x1cf   :  { %v5683_v27 = vpop.f32.mrf.mxu3  ;;  %8450 = vst [vmem:[#allocation47_spill] sm:$0xff] %v5708_v6  ;;  %4311 = vtanh.f32 %v8451_v13  ;;  %v1761_v23 = vor.u32 1.1754944e-38, %v1760_v33  ;;  %v1783_v48 = vadd.f32 %v5615_v20, %v1782_v35  ;;  %v3901_v4 = vmul.f32 -1.442695, %v5339_v41 }
 0x1d0   :  { %v4302_v32 = vpop.eup %4301  ;;  %4313 = vrcp.f32 %v5699_v7  ;;  %vm5757_vm10 = vcmp.eq.f32.partialorder %v1788_v9, 8.507059e+37  ;;  %v1791_v35 = vor.u32 1.1754944e-38, %v1790_v0  ;;  %v1820_v47 = vand.u32 2147483648, %v5632_v56 }
 0x1d1   :  { %v5692_v62 = vmul.f32 %v4302_v32, %v1577_v36  ;;  %v5705_v28 = vpop.eup %4303  ;;  %v975_v26 = vpop.f32.mrf.mxu0  ;;  %v1727_v32 = vsel %vm5716_vm5, %v5567_v34, %v1723_v44  ;;  %4315 = vtanh.f32 %v5708_v6  ;;  %v8461_v12 = vsub.f32 1.0, %v5519_v30 }
 0x1d2   :  { %v5743_v5 = vpop.eup %4305  ;;  %v1810_v36 = vmul.f32 %v5705_v28, %v5632_v56  ;;  %v5763_v43 = vsel %vm5701_vm3, %v1731_v3, %v1727_v32  ;;  %v1762_v9 = vsel %vm5724_vm7, %v1761_v23, %v1757_v18  ;;  %vm1404_vm12 = vweird.f32 %v5425_v40 }
 0x1d3   :  { %8447 = vst [vmem:[#allocation34_spill] sm:$0xff] %v5692_v62  ;;  %v1064_v63 = vpop.f32.mrf.mxu1  ;;  %v4308_v1 = vpop.eup %4307  ;;  %v1787_v32 = vsel %vm5777_vm11, %v5615_v20, %v1783_v48  ;;  %vm1405_vm13 = vweird.f32 %v5479_v14  ;;  %4317 = vpow2.f32 %v3901_v4  ;;  %vm1814_vm14 = vweird.f32 %v5632_v56 }
 0x1d4   :  { %v5751_v33 = vadd.f32 %v1064_v63, %v975_v26  ;;  %v5755_v34 = vpop.eup %4309  ;;  %v1415_v26 = vmul.f32 %v5743_v5, %v5652_v37  ;;  %v1811_v3 = vsub.f32 1.0, %v1810_v36  ;;  %v5787_v63 = vadd.f32 1.0, %v4308_v1  ;;  %vm5805_vm15 = vmor %vm1404_vm12, %vm1405_vm13 }
 0x1d5   :  { %v5765_v41 = vpop.eup %4311  ;;  %v1840_v30 = vmul.f32 %v5755_v34, %v5675_v38  ;;  %v750_v18 = vadd.f32 %v5378_v45, %v5376_v39  ;;  %v1410_v23 = vand.u32 2147483648, %v5425_v40  ;;  %v1408_v1 = vand.u32 2147483647, %v5425_v40 }
 0x1d6   :  { %v848_v15 = vpop.f32.mrf.mxu2  ;;  %8458 = vst [vmem:[#allocation48_spill] sm:$0xff] %v5751_v33  ;;  %v5790_v55 = vpop.eup %4313  ;;  %v1416_v20 = vsub.f32 1.0, %v1415_v26  ;;  %v1812_v4 = vmul.f32 %v5705_v28, %v1811_v3  ;;  %v1792_v26 = vsel %vm5757_vm10, %v1791_v35, %v1787_v32  ;;  %v8466_v3 = vld [vmem:[#allocation35_spill] sm:$0xff]  ;;  %v1850_v24 = vand.u32 2147483648, %v5675_v38 }
 0x1d7   :  { %v929_v59 = vpop.f32.mrf.mxu3  ;;  %v5796_v36 = vpop.eup %4315  ;;  %v1475_v40 = vmul.f32 %v5790_v55, %v5699_v7  ;;  %v1411_v13 = vor.u32 1.1754944e-38, %v1410_v23  ;;  %vm1409_vm0 = vcmp.eq.f32.partialorder %v1408_v1, 8.507059e+37  ;;  %vm1815_vm1 = vweird.f32 %v5705_v28 }
 0x1d8   :  { %v930_v44 = vadd.f32 %v929_v59, %v848_v15  ;;  %v1402_v15 = vmul.f32 %v5479_v14, %v8461_v12  ;;  %v5832_v23 = vmul.f32 %v5601_v51, %v1792_v26  ;;  %vm1420_vm2 = vweird.f32 %v5743_v5  ;;  %vm5854_vm3 = vmor %vm1814_vm14, %vm1815_vm1 }
 0x1d9   :  { %v978_v59 = vpop.f32.mrf.mxu0  ;;  %v4318_v35 = vpop.eup %4317  ;;  %vm1419_vm4 = vweird.f32 %v5652_v37  ;;  %vm1480_vm6 = vweird.f32 %v5790_v55  ;;  %vm1479_vm8 = vweird.f32 %v5699_v7  ;;  %vm1845_vm1 = vweird.f32 %v5755_v34 }
 0x1da   :  { %v3907_v0 = vmul.f32 -1.442695, %v930_v44  ;;  %v1403_v48 = vadd.f32 %v5479_v14, %v1402_v15  ;;  %v5800_v44 = vor.u32 1.1754944e-38, %v1820_v47  ;;  %v5813_v15 = vmul.f32 %v5592_v53, %v1762_v9  ;;  %vm5881_vm5 = vmor %vm1419_vm4, %vm1420_vm2 }
 0x1db   :  { %v1067_v45 = vpop.f32.mrf.mxu1  ;;  %v1841_v47 = vsub.f32 1.0, %v1840_v30  ;;  %1017 = vmatmul.bf16.gmra.mxu0 %v4900_v29  ;;  %v1417_v9 = vmul.f32 %v5743_v5, %v1416_v20  ;;  %v5837_v1 = vadd.f32 1.0, %v4318_v35  ;;  %v3905_v35 = vmul.f32 -1.442695, %v5347_v21  ;;  %vm5915_vm9 = vmor %vm1479_vm8, %vm1480_vm6 }
 0x1dc   :  { %4319 = vpow2.f32 %v3907_v0  ;;  %v3920_v0 = vmul.f32 -1.442695, %v8466_v3  ;;  %v1407_v53 = vsel %vm5805_vm15, %v5479_v14, %v1403_v48  ;;  %v1476_v14 = vsub.f32 1.0, %v1475_v40 }
 0x1dd   :  { %4321 = vrcp.f32 %v5787_v63  ;;  %v1842_v12 = vmul.f32 %v5755_v34, %v1841_v47  ;;  %v1412_v20 = vsel %vm1409_vm0, %v1411_v13, %v1407_v53  ;;  %v5846_v51 = vadd.f32 %v1067_v45, %v978_v59  ;;  %v4156_v13 = vld [vmem:[%s8297_s0 + $0x12c] sm:$0xf] }
 0x1de   :  { %v850_v39 = vpop.f32.mrf.mxu2  ;;  %4323 = vtanh.f32 %v750_v18  ;;  %1106 = vmatmul.bf16.gmra.mxu1 %v4904_v31  ;;  %v912_v40 = vadd.f32 %v5401_v25, %v5397_v11  ;;  %v1477_v53 = vmul.f32 %v5790_v55, %v1476_v14  ;;  %v1425_v21 = vand.u32 2147483648, %v5652_v37 }
 0x1df   :  { %v931_v6 = vpop.f32.mrf.mxu3  ;;  %4325 = vpow2.f32 %v3920_v0  ;;  %8467 = vst [vmem:[#allocation35_spill] sm:$0xff] %v5846_v51  ;;  %v1423_v3 = vand.u32 2147483647, %v5652_v37  ;;  %vm1539_vm6 = vweird.f32 %v5837_v1 }
 0x1e0   :  { %v932_v33 = vadd.f32 %v931_v6, %v850_v39  ;;  %v5828_v6 = vadd.f32 %v5705_v28, %v1812_v4  ;;  %v5839_v39 = vor.u32 1.1754944e-38, %v1850_v24  ;;  %v1418_v4 = vadd.f32 %v5743_v5, %v1417_v9 }
 0x1e1   :  { %v5848_v26 = vpop.f32.mrf.mxu0  ;;  %v1485_v24 = vand.u32 2147483648, %v5699_v7  ;;  %v1426_v37 = vor.u32 1.1754944e-38, %v1425_v21  ;;  %vm1424_vm7 = vcmp.eq.f32.partialorder %v1423_v3, 8.507059e+37 }
 0x1e2   :  { %v4320_v32 = vpop.eup %4319  ;;  %v3909_v30 = vmul.f32 -1.442695, %v932_v33  ;;  %8468 = vst [vmem:[#allocation49_spill] sm:$0xff] %v5848_v26  ;;  %v1422_v0 = vsel %vm5881_vm5, %v5743_v5, %v1418_v4  ;;  %vm1844_vm5 = vweird.f32 %v5675_v38 }
 0x1e3   :  { %v5835_v48 = vadd.f32 1.0, %v4320_v32  ;;  %v5841_v33 = vpop.eup %4321  ;;  %v5862_v45 = vpop.f32.mrf.mxu1  ;;  %v5872_v32 = vadd.f32 %v5755_v34, %v1842_v12  ;;  %v1486_v21 = vor.u32 1.1754944e-38, %v1485_v24 }
 0x1e4   :  { %4327 = vpow2.f32 %v3909_v30  ;;  %v4324_v47 = vpop.eup %4323  ;;  %8471 = vst [vmem:[#allocation50_spill] sm:$0xff] %v5862_v45  ;;  %v5876_v25 = vmul.f32 %v5841_v33, %v5787_v63 }
 0x1e5   :  { %4329 = vrcp.f32 %v5835_v48  ;;  %v4326_v14 = vpop.eup %4325  ;;  %v5887_v12 = vmul.f32 %v4324_v47, %v1412_v20  ;;  %v917_v20 = vadd.f32 %v5458_v42, %v5453_v50  ;;  %v1478_v47 = vadd.f32 %v5790_v55, %v1477_v53 }
 0x1e6   :  { %v853_v59 = vpop.f32.mrf.mxu2  ;;  %4331 = vrcp.f32 %v5837_v1  ;;  %v5902_v5 = vadd.f32 1.0, %v4326_v14  ;;  %v1715_v42 = vand.u32 2147483648, %v5835_v48  ;;  %vm1709_vm12 = vweird.f32 %v5835_v48 }
 0x1e7   :  { %v934_v9 = vpop.f32.mrf.mxu3  ;;  %4333 = vtanh.f32 %v5329_v46  ;;  %8474 = vst [vmem:[#allocation51_spill] sm:$0xff] %v5887_v12  ;;  %v1482_v11 = vsel %vm5915_vm9, %v5790_v55, %v1478_v47  ;;  %v1713_v55 = vand.u32 2147483647, %v5835_v48 }
 0x1e8   :  { %v935_v30 = vadd.f32 %v934_v9, %v853_v59  ;;  %4335 = vtanh.f32 %v912_v40  ;;  %v1483_v40 = vand.u32 2147483647, %v5699_v7 }
 0x1e9   :  { %4337 = vpow2.f32 %v3905_v35  ;;  %v983_v35 = vpop.f32.mrf.mxu0  ;;  %vm1714_vm14 = vcmp.eq.f32.partialorder %v1713_v55, 8.507059e+37 }
 0x1ea   :  { %v4328_v18 = vpop.eup %4327  ;;  %v3911_v58 = vmul.f32 -1.442695, %v935_v30  ;;  %v1545_v30 = vand.u32 2147483648, %v5837_v1  ;;  %vm1484_vm11 = vcmp.eq.f32.partialorder %v1483_v40, 8.507059e+37 }
 0x1eb   :  { %v5895_v51 = vpop.eup %4329  ;;  %v5900_v59 = vadd.f32 1.0, %v4328_v18  ;;  %v1427_v18 = vsel %vm1424_vm7, %v1426_v37, %v1422_v0  ;;  %v1072_v9 = vpop.f32.mrf.mxu1  ;;  %1022 = vmatmul.bf16.gmra.mxu0 %v4984_v8 }
 0x1ec   :  { %v1705_v4 = vmul.f32 %v5895_v51, %v5835_v48  ;;  %4339 = vpow2.f32 %v3911_v58  ;;  %v5909_v50 = vpop.eup %4331  ;;  %vm1710_vm10 = vweird.f32 %v5895_v51  ;;  %v5943_v45 = vor.u32 1.1754944e-38, %v1545_v30 }
 0x1ed   :  { %4341 = vrcp.f32 %v5900_v59  ;;  %v5919_v7 = vpop.eup %4333  ;;  %v5931_v53 = vmul.f32 %v5909_v50, %v5837_v1  ;;  %vm5949_vm13 = vmor %vm1709_vm12, %vm1710_vm10  ;;  %vm1739_vm0 = vweird.f32 %v5900_v59  ;;  %vm1540_vm7 = vweird.f32 %v5909_v50 }
 0x1ee   :  { %4343 = vtanh.f32 %v5887_v12  ;;  %v1706_v58 = vsub.f32 1.0, %v1705_v4  ;;  %v855_v3 = vpop.f32.mrf.mxu2  ;;  %v4336_v14 = vpop.eup %4335  ;;  %1111 = vmatmul.bf16.gmra.mxu1 %v4988_v10 }
 0x1ef   :  { %4345 = vtanh.f32 %v917_v20  ;;  %v936_v0 = vpop.f32.mrf.mxu3  ;;  %v4338_v4 = vpop.eup %4337  ;;  %v1487_v20 = vsel %vm1484_vm11, %v1486_v21, %v1482_v11  ;;  %v1716_v11 = vor.u32 1.1754944e-38, %v1715_v42  ;;  %v1536_v30 = vsub.f32 1.0, %v5931_v53 }
 0x1f0   :  { %v1707_v37 = vmul.f32 %v5895_v51, %v1706_v58  ;;  %v937_v12 = vadd.f32 %v936_v0, %v855_v3  ;;  %4347 = vtanh.f32 %v5408_v49  ;;  %v5940_v0 = vmul.f32 %v4336_v14, %v1427_v18 }
 0x1f1   :  { %v5960_v14 = vadd.f32 %v1072_v9, %v983_v35  ;;  %v5970_v49 = vadd.f32 1.0, %v4338_v4  ;;  %v4180_v35 = vld [vmem:[%s8297_s0 + $0x1ec] sm:$0xf]  ;;  %v3886_v9 = vld [vmem:[%s8297_s0 + $0x1f8] sm:$0xf0] }
 0x1f2   :  { %v4340_v24 = vpop.eup %4339  ;;  %v3913_v47 = vmul.f32 -1.442695, %v937_v12  ;;  %v1708_v58 = vadd.f32 %v5895_v51, %v1707_v37  ;;  %8477 = vst [vmem:[#allocation52_spill] sm:$0xff] %v5940_v0  ;;  %v5962_v37 = vpop.f32.mrf.mxu0  ;;  %v3889_v4 = vor.u32 %v4180_v35, %v3886_v9 }
 0x1f3   :  { %v5938_v3 = vpop.eup %4341  ;;  %v5945_v40 = vadd.f32 1.0, %v4340_v24  ;;  %8480 = vst [vmem:[#allocation53_spill] sm:$0xff] %v5960_v14  ;;  %v4148_v24 = vld [vmem:[%s8297_s0 + $0xec] sm:$0xf]  ;;  %v5972_v53 = vpop.f32.mrf.mxu1 }
 0x1f4   :  { %v4344_v48 = vpop.eup %4343  ;;  %v1735_v12 = vmul.f32 %v5938_v3, %v5900_v59  ;;  %4349 = vpow2.f32 %v3913_v47  ;;  %v1712_v18 = vsel %vm5949_vm13, %v5895_v51, %v1708_v58  ;;  %8481 = vst [vmem:[#allocation54_spill] sm:$0xff] %v5962_v37  ;;  %v3758_v47 = vld [vmem:[%s8297_s0 + $0xf8] sm:$0xf0]  ;;  %v1745_v37 = vand.u32 2147483648, %v5900_v59  ;;  %1216 = vmatpush.bf16.msra.mxu3 %v3889_v4  ;;  %vm6123_vm13 = vmor %vm1844_vm5, %vm1845_vm1 }
 0x1f5   :  { %v4346_v21 = vpop.eup %4345  ;;  %4351 = vrcp.f32 %v5945_v40  ;;  %8482 = vst [vmem:[#allocation55_spill] sm:$0xff] %v5972_v53  ;;  %v3761_v58 = vor.u32 %v4148_v24, %v3758_v47  ;;  %v1717_v46 = vsel %vm1714_vm14, %v1716_v11, %v1712_v18  ;;  %vm1740_vm15 = vweird.f32 %v5938_v3  ;;  %v4144_v18 = vld [vmem:[%s8297_s0 + $0xcc] sm:$0xf]  ;;  %v3742_v11 = vld [vmem:[%s8297_s0 + $0xd8] sm:$0xf0]  ;;  %vm6136_vm14 = vmor %vm1539_vm6, %vm1540_vm7 }
 0x1f6   :  { %v1736_v51 = vsub.f32 1.0, %v1735_v12  ;;  %v858_v42 = vpop.f32.mrf.mxu2  ;;  %v4348_v14 = vpop.eup %4347  ;;  %4353 = vtanh.f32 %v5940_v0  ;;  %v1743_v12 = vand.u32 2147483647, %v5900_v59  ;;  %v5986_v26 = vmul.f32 %v4346_v21, %v1487_v20  ;;  %vm6012_vm2 = vmor %vm1739_vm0, %vm1740_vm15 }
 0x1f7   :  { %v939_v55 = vpop.f32.mrf.mxu3  ;;  %1127 = vmatpush.bf16.msra.mxu2 %v3761_v58  ;;  %v1962_v53 = vmul.f32 %v4348_v14, %v1717_v46  ;;  %4355 = vrcp.f32 %v5902_v5  ;;  %v1961_v46 = vmul.f32 %v5919_v7, %v5733_v2  ;;  %v1963_v14 = vmul.f32 %v4344_v48, %v5763_v43  ;;  %v3870_v58 = vld [vmem:[%s8297_s0 + $0x1d8] sm:$0xf0] }
 0x1f8   :  { %v1737_v24 = vmul.f32 %v5938_v3, %v1736_v51  ;;  %v940_v47 = vadd.f32 %v939_v55, %v858_v42  ;;  %8483 = vst [vmem:[#allocation56_spill] sm:$0xff] %v5986_v26  ;;  %v4176_v51 = vld [vmem:[%s8297_s0 + $0x1cc] sm:$0xf]  ;;  %v3745_v42 = vor.u32 %v4144_v18, %v3742_v11  ;;  %v1746_v43 = vor.u32 1.1754944e-38, %v1745_v37  ;;  %v3726_v11 = vld [vmem:[%s8297_s0 + $0xb8] sm:$0xf0] }
 0x1f9   :  { %v3873_v4 = vor.u32 %v4176_v51, %v3870_v58  ;;  %v6016_v7 = vpack.c.bf16 %v1962_v53, %v1961_v46  ;;  %vm1744_vm4 = vcmp.eq.f32.partialorder %v1743_v12, 8.507059e+37  ;;  %v1537_v18 = vmul.f32 %v5909_v50, %v1536_v30  ;;  %v4140_v53 = vld [vmem:[%s8297_s0 + $0xac] sm:$0xf]  ;;  %v3854_v46 = vld [vmem:[%s8297_s0 + $0x1b8] sm:$0xf0] }
 0x1fa   :  { %v4350_v20 = vpop.eup %4349  ;;  %v3915_v21 = vmul.f32 -1.442695, %v940_v47  ;;  %v1738_v35 = vadd.f32 %v5938_v3, %v1737_v24  ;;  %v922_v47 = vadd.f32 %v5571_v57, %v5564_v16  ;;  %v988_v37 = vpop.f32.mrf.mxu0  ;;  %v3729_v51 = vor.u32 %v4140_v53, %v3726_v11  ;;  %v4168_v11 = vld [vmem:[%s8297_s0 + $0x18c] sm:$0xf] }
 0x1fb   :  { %v6005_v9 = vpop.eup %4351  ;;  %v6007_v55 = vadd.f32 1.0, %v4350_v20  ;;  %1128 = vmatpush.bf16.msra.mxu2 %v3745_v42  ;;  %1217 = vmatpush.bf16.msra.mxu3 %v3873_v4  ;;  %v1077_v12 = vpop.f32.mrf.mxu1  ;;  %v6058_v53 = vadd.f32 %v5909_v50, %v1537_v18  ;;  %vm1769_vm10 = vweird.f32 %v5945_v40 }
 0x1fc   :  { %v1765_v48 = vmul.f32 %v6005_v9, %v5945_v40  ;;  %4357 = vpow2.f32 %v3915_v21  ;;  %v1742_v59 = vsel %vm6012_vm2, %v5938_v3, %v1738_v35  ;;  %v4354_v24 = vpop.eup %4353  ;;  %v4172_v3 = vld [vmem:[%s8297_s0 + $0x1ac] sm:$0xf]  ;;  %v1775_v21 = vand.u32 2147483648, %v5945_v40  ;;  %1027 = vmatmul.bf16.gmra.mxu0 %v5068_v52 }
 0x1fd   :  { %4359 = vrcp.f32 %v6007_v55  ;;  %v1747_v16 = vsel %vm1744_vm4, %v1746_v43, %v1742_v59  ;;  %v6043_v20 = vpop.eup %4355  ;;  %v3857_v58 = vor.u32 %v4172_v3, %v3854_v46  ;;  %v8486_v43 = vand.u32 2147483647, %v5632_v56  ;;  %v3710_v56 = vld [vmem:[%s8297_s0 + $0x98] sm:$0xf0] }
 0x1fe   :  { %4361 = vrcp.f32 %v5970_v49  ;;  %v1766_v57 = vsub.f32 1.0, %v1765_v48  ;;  %v860_v30 = vpop.f32.mrf.mxu2  ;;  %v1964_v35 = vmul.f32 %v4354_v24, %v1747_v16  ;;  %v1773_v59 = vand.u32 2147483647, %v5945_v40  ;;  %1116 = vmatmul.bf16.gmra.mxu1 %v5072_v54  ;;  %v4136_v24 = vld [vmem:[%s8297_s0 + $0x8c] sm:$0xf] }
 0x1ff   :  { %4363 = vtanh.f32 %v5475_v22  ;;  %v941_v42 = vpop.f32.mrf.mxu3  ;;  %1129 = vmatpush.bf16.msra.mxu2 %v3729_v51  ;;  %vm6052_vm8 = vcmp.eq.f32.partialorder %v8486_v43, 8.507059e+37  ;;  %1218 = vmatpush.bf16.msra.mxu3 %v3857_v58  ;;  %vm1770_vm9 = vweird.f32 %v6005_v9  ;;  %v3713_v16 = vor.u32 %v4136_v24, %v3710_v56  ;;  %v4132_v56 = vld [vmem:[%s8297_s0 + $0x6c] sm:$0xf]  ;;  %v3678_v54 = vld [vmem:[%s8297_s0 + $0x58] sm:$0xf0] }
 0x200   :  { %4365 = vtanh.f32 %v5986_v26  ;;  %v1767_v4 = vmul.f32 %v6005_v9, %v1766_v57  ;;  %v942_v2 = vadd.f32 %v941_v42, %v860_v30  ;;  %v1978_v18 = vpack.c.bf16 %v1964_v35, %v1963_v14  ;;  %v3838_v57 = vld [vmem:[%s8297_s0 + $0x198] sm:$0xf0]  ;;  %vm6086_vm11 = vmor %vm1769_vm10, %vm1770_vm9 }
 0x201   :  { %4367 = vtanh.f32 %v922_v47  ;;  %v3841_v42 = vor.u32 %v4168_v11, %v3838_v57  ;;  %v1776_v58 = vor.u32 1.1754944e-38, %v1775_v21  ;;  %v2073_v35 = vunpack.c.l.b16 %v6016_v7  ;;  %v3694_v11 = vld [vmem:[%s8297_s0 + $0x78] sm:$0xf0] }
 0x202   :  { %v4358_v3 = vpop.eup %4357  ;;  %v3917_v47 = vmul.f32 -1.442695, %v942_v2  ;;  %v1768_v30 = vadd.f32 %v6005_v9, %v1767_v4  ;;  %v2075_v43 = vunpack.c.l.b16 %v1978_v18  ;;  %v2076_v4 = vunpack.c.h.b16 %v1978_v18  ;;  %v6094_v24 = vpop.f32.mrf.mxu0  ;;  %v3822_v14 = vld [vmem:[%s8297_s0 + $0x178] sm:$0xf0] }
 0x203   :  { %v6076_v51 = vpop.eup %4359  ;;  %v6078_v46 = vadd.f32 1.0, %v4358_v3  ;;  %1130 = vmatpush.bf16.msra.mxu2 %v3713_v16  ;;  %v6092_v21 = vadd.f32 %v1077_v12, %v988_v37  ;;  %1219 = vmatpush.bf16.msra.mxu3 %v3841_v42  ;;  %vm6105_vm12 = vcmp.eq.f32.partialorder %v1773_v59, 8.507059e+37  ;;  %v6111_v16 = vpop.f32.mrf.mxu1  ;;  %v3697_v57 = vor.u32 %v4132_v56, %v3694_v11  ;;  %v4164_v42 = vld [vmem:[%s8297_s0 + $0x16c] sm:$0xf] }
 0x204   :  { %v6080_v26 = vpop.eup %4361  ;;  %v1795_v40 = vmul.f32 %v6076_v51, %v6007_v55  ;;  %4369 = vpow2.f32 %v3917_v47  ;;  %v1772_v18 = vsel %vm6086_vm11, %v6005_v9, %v1768_v30  ;;  %v6127_v59 = vpack.c.b16 %v2075_v43, %v2073_v35  ;;  %v8517_v9 = vld [vmem:[#allocation4_spill] sm:$0xff] }
 0x205   :  { %v4364_v2 = vpop.eup %4363  ;;  %4371 = vrcp.f32 %v6078_v46  ;;  %8491 = vst [vmem:[#allocation57_spill] sm:$0xff] %v6092_v21  ;;  %v2074_v30 = vunpack.c.h.b16 %v6016_v7  ;;  %v3825_v22 = vor.u32 %v4164_v42, %v3822_v14  ;;  %vm1800_vm15 = vweird.f32 %v6076_v51  ;;  %v4128_v21 = vld [vmem:[%s8297_s0 + $0x4c] sm:$0xf] }
 0x206   :  { %v6109_v37 = vpop.eup %4365  ;;  %v1796_v12 = vsub.f32 1.0, %v1795_v40  ;;  %v863_v47 = vpop.f32.mrf.mxu2  ;;  %8496 = vst [vmem:[#allocation58_spill] sm:$0xff] %v6127_v59  ;;  %v1803_v0 = vand.u32 2147483647, %v6007_v55  ;;  %v1805_v43 = vand.u32 2147483648, %v6007_v55  ;;  %v1777_v14 = vsel %vm6105_vm12, %v1776_v58, %v1772_v18 }
 0x207   :  { %v6130_v40 = vpop.eup %4367  ;;  %v944_v11 = vpop.f32.mrf.mxu3  ;;  %1131 = vmatpush.bf16.msra.mxu2 %v3697_v57  ;;  %v4160_v42 = vld [vmem:[%s8297_s0 + $0x14c] sm:$0xf]  ;;  %v6155_v52 = vpack.c.b16 %v2076_v4, %v2074_v30  ;;  %1220 = vmatpush.bf16.msra.mxu3 %v3825_v22  ;;  %v3806_v57 = vld [vmem:[%s8297_s0 + $0x158] sm:$0xf0]  ;;  %v8500_v4 = vsel %vm5854_vm3, %v5705_v28, %v5828_v6  ;;  %v1847_v22 = vsel %vm6123_vm13, %v5755_v34, %v5872_v32  ;;  %vm1799_vm3 = vweird.f32 %v6007_v55 }
 0x208   :  { %v1797_v7 = vmul.f32 %v6076_v51, %v1796_v12  ;;  %v945_v35 = vadd.f32 %v944_v11, %v863_v47  ;;  %v1542_v12 = vsel %vm6136_vm14, %v5909_v50, %v6058_v53  ;;  %v3681_v47 = vor.u32 %v4128_v21, %v3678_v54  ;;  %v4124_v11 = vld [vmem:[%s8297_s0 + $0x2c] sm:$0xf]  ;;  %v3662_v58 = vld [vmem:[%s8297_s0 + $0x38] sm:$0xf0]  ;;  %vm6202_vm0 = vmor %vm1799_vm3, %vm1800_vm15 }
 0x209   :  { %8499 = vst [vmem:[#allocation59_spill] sm:$0xff] %v6155_v52  ;;  %v6178_v54 = vsel %vm6052_vm8, %v5800_v44, %v8500_v4  ;;  %v3809_v21 = vor.u32 %v4160_v42, %v3806_v57  ;;  %v3790_v28 = vld [vmem:[%s8297_s0 + $0x138] sm:$0xf0]  ;;  %v6196_v48 = vmul.f32 %v6080_v26, %v5970_v49  ;;  %v1806_v30 = vor.u32 1.1754944e-38, %v1805_v43 }
 0x20a   :  { %v4370_v50 = vpop.eup %4369  ;;  %v3919_v53 = vmul.f32 -1.442695, %v945_v35  ;;  %v1798_v6 = vadd.f32 %v6076_v51, %v1797_v7  ;;  %v1966_v56 = vmul.f32 %v4364_v2, %v1777_v14  ;;  %v3665_v55 = vor.u32 %v4124_v11, %v3662_v58  ;;  %v993_v57 = vpop.f32.mrf.mxu0 }
 0x20b   :  { %v6192_v44 = vpop.eup %4371  ;;  %v6198_v18 = vadd.f32 1.0, %v4370_v50  ;;  %1132 = vmatpush.bf16.msra.mxu2 %v3681_v47  ;;  %v8503_v42 = vand.u32 2147483647, %v5837_v1  ;;  %1221 = vmatpush.bf16.msra.mxu3 %v3809_v21  ;;  %v3793_v4 = vor.u32 %v4156_v13, %v3790_v28  ;;  %vm1804_vm2 = vcmp.eq.f32.partialorder %v1803_v0, 8.507059e+37  ;;  %v1082_v11 = vpop.f32.mrf.mxu1 }
 0x20c   :  { %v1825_v7 = vmul.f32 %v6192_v44, %v6078_v46  ;;  %4373 = vpow2.f32 %v3919_v53  ;;  %v1802_v35 = vsel %vm6202_vm0, %v6076_v51, %v1798_v6  ;;  %v6216_v2 = vmul.f32 %v6043_v20, %v5902_v5  ;;  %v8507_v53 = vld [vmem:[#allocation41_spill] sm:$0xff] }
 0x20d   :  { %vm1544_vm1 = vcmp.eq.f32.partialorder %v8503_v42, 8.507059e+37  ;;  %4375 = vrcp.f32 %v6198_v18  ;;  %v8504_v51 = vand.u32 2147483647, %v5675_v38  ;;  %v1807_v58 = vsel %vm1804_vm2, %v1806_v30, %v1802_v35  ;;  %v8508_v38 = vld [vmem:[#allocation21_spill] sm:$0xff] }
 0x20e   :  { %v1547_v43 = vsel %vm1544_vm1, %v5943_v45, %v1542_v12  ;;  %v1826_v14 = vsub.f32 1.0, %v1825_v7  ;;  %v865_v47 = vpop.f32.mrf.mxu2  ;;  %v1596_v50 = vsub.f32 1.0, %v6196_v48  ;;  %4377 = vtanh.f32 %v8507_v53  ;;  %1032 = vmatmul.bf16.gmra.mxu0 %v8508_v38  ;;  %v8510_v48 = vld [vmem:[#allocation23_spill] sm:$0xff]  ;;  %v3646_v30 = vld [vmem:[%s8297_s0 + $0x18] sm:$0xf0] }
 0x20f   :  { %vm6221_vm4 = vcmp.eq.f32.partialorder %v8504_v51, 8.507059e+37  ;;  %v946_v0 = vpop.f32.mrf.mxu3  ;;  %v6227_v21 = vadd.f32 %v1082_v11, %v993_v57  ;;  %v1968_v13 = vmul.f32 %v6109_v37, %v1807_v58  ;;  %v1835_v12 = vand.u32 2147483648, %v6078_v46  ;;  %1133 = vmatpush.bf16.msra.mxu2 %v3665_v55  ;;  %1121 = vmatmul.bf16.gmra.mxu1 %v8510_v48  ;;  %v4120_v37 = vld [vmem:[%s8297_s0 + $0xc] sm:$0xf]  ;;  %v3774_v35 = vld [vmem:[%s8297_s0 + $0x118] sm:$0xf0] }
 0x210   :  { %v1827_v45 = vmul.f32 %v6192_v44, %v1826_v14  ;;  %v947_v28 = vadd.f32 %v946_v0, %v865_v47  ;;  %v1979_v6 = vpack.c.bf16 %v1966_v56, %v5813_v15  ;;  %v6235_v3 = vmul.f32 %v6130_v40, %v1547_v43  ;;  %1222 = vmatpush.bf16.msra.mxu3 %v3793_v4  ;;  %v4152_v15 = vld [vmem:[%s8297_s0 + $0x10c] sm:$0xf] }
 0x211   :  { %vm1829_vm5 = vweird.f32 %v6078_v46  ;;  %vm1830_vm6 = vweird.f32 %v6192_v44  ;;  %v1980_v40 = vpack.c.bf16 %v1968_v13, %v5832_v23  ;;  %v3649_v55 = vor.u32 %v4120_v37, %v3646_v30 }
 0x212   :  { %8509 = vst [vmem:[#allocation21_spill] sm:$0xff] %v6235_v3  ;;  %v4374_v56 = vpop.eup %4373  ;;  %v3921_v7 = vmul.f32 -1.442695, %v947_v28  ;;  %v1828_v42 = vadd.f32 %v6192_v44, %v1827_v45  ;;  %v1833_v57 = vand.u32 2147483647, %v6078_v46  ;;  %v3777_v14 = vor.u32 %v4152_v15, %v3774_v35  ;;  %vm6265_vm7 = vmor %vm1829_vm5, %vm1830_vm6  ;;  %v6273_v37 = vpop.f32.mrf.mxu0 }
 0x213   :  { %v6255_v4 = vpop.eup %4375  ;;  %v6257_v43 = vadd.f32 1.0, %v4374_v56  ;;  %v2079_v47 = vunpack.c.l.b16 %v1980_v40  ;;  %v2080_v11 = vunpack.c.h.b16 %v1980_v40  ;;  %1134 = vmatpush.bf16.msra.mxu2 %v3649_v55  ;;  %v2077_v58 = vunpack.c.l.b16 %v1979_v6  ;;  %v6278_v15 = vpop.f32.mrf.mxu1 }
 0x214   :  { %v1855_v23 = vmul.f32 %v6255_v4, %v6198_v18  ;;  %4379 = vpow2.f32 %v3921_v7  ;;  %v2078_v0 = vunpack.c.h.b16 %v1979_v6  ;;  %v4378_v13 = vpop.eup %4377  ;;  %v927_v45 = vadd.f32 %v5683_v27, %v5677_v60  ;;  %1223 = vmatpush.bf16.msra.mxu3 %v3777_v14  ;;  %v8515_v27 = vld [vmem:[#allocation45_spill] sm:$0xff] }
 0x215   :  { %v1597_v28 = vmul.f32 %v6080_v26, %v1596_v50  ;;  %4381 = vrcp.f32 %v6257_v43  ;;  %v1832_v46 = vsel %vm6265_vm7, %v6192_v44, %v1828_v42  ;;  %v1836_v40 = vor.u32 1.1754944e-38, %v1835_v12  ;;  %v8516_v50 = vld [vmem:[#allocation2_spill] sm:$0xff] }
 0x216   :  { %v1856_v30 = vsub.f32 1.0, %v1855_v23  ;;  %v6280_v6 = vpack.c.b16 %v2079_v47, %v2077_v58  ;;  %v6282_v56 = vpack.c.b16 %v2080_v11, %v2078_v0  ;;  %4383 = vtanh.f32 %v6235_v3  ;;  %1135 = vmatmul.bf16.vlgmr.msra.gmra.mxu2 %v8516_v50 }
 0x217   :  { %vm1834_vm8 = vcmp.eq.f32.partialorder %v1833_v57, 8.507059e+37  ;;  %v1852_v60 = vsel %vm6221_vm4, %v5839_v39, %v1847_v22  ;;  %v1969_v44 = vmul.f32 %v8515_v27, %v6178_v54  ;;  %vm1860_vm9 = vweird.f32 %v6255_v4  ;;  %1224 = vmatmul.bf16.vlgmr.msra.gmra.mxu3 %v8517_v9 }
 0x218   :  { %8513 = vst [vmem:[#allocation23_spill] sm:$0xff] %v6280_v6  ;;  %v1857_v12 = vmul.f32 %v6255_v4, %v1856_v30  ;;  %v1837_v7 = vsel %vm1834_vm8, %v1836_v40, %v1832_v46  ;;  %v1865_v55 = vand.u32 2147483648, %v6198_v18  ;;  %v8518_v34 = vsub.f32 1.0, %v5876_v25 }
 0x219   :  { %8514 = vst [vmem:[#allocation60_spill] sm:$0xff] %v6282_v56  ;;  %v1901_v39 = vsub.f32 1.0, %v6216_v2  ;;  %4385 = vtanh.f32 %v927_v45  ;;  %v1863_v54 = vand.u32 2147483647, %v6198_v18  ;;  %v1598_v1 = vadd.f32 %v6080_v26, %v1597_v28 }
 0x21a   :  { %v1872_v32 = vmul.f32 %v5841_v33, %v8518_v34  ;;  %v4380_v22 = vpop.eup %4379  ;;  %vm1600_vm10 = vweird.f32 %v6080_v26  ;;  %v1858_v35 = vadd.f32 %v6255_v4, %v1857_v12  ;;  %vm1859_vm11 = vweird.f32 %v6198_v18  ;;  %v998_v46 = vpop.f32.mrf.mxu0 }
 0x21b   :  { %v6309_v42 = vpop.eup %4381  ;;  %vm1599_vm12 = vweird.f32 %v5970_v49  ;;  %v1605_v25 = vand.u32 2147483648, %v5970_v49  ;;  %v6313_v57 = vadd.f32 1.0, %v4380_v22  ;;  %vm6317_vm13 = vmor %vm1859_vm11, %vm1860_vm9  ;;  %v1970_v14 = vmul.f32 %v4378_v13, %v1837_v7  ;;  %v1087_v30 = vpop.f32.mrf.mxu1 }
 0x21c   :  { %vm1874_vm14 = vweird.f32 %v5787_v63  ;;  %v1603_v47 = vand.u32 2147483647, %v5970_v49  ;;  %v1885_v18 = vmul.f32 %v6309_v42, %v6257_v43  ;;  %v1862_v11 = vsel %vm6317_vm13, %v6255_v4, %v1858_v35  ;;  %v4384_v51 = vpop.eup %4383  ;;  %vm6331_vm3 = vmor %vm1599_vm12, %vm1600_vm10  ;;  %v8523_v49 = vld [vmem:[#allocation46_spill] sm:$0xff] }
 0x21d   :  { %v1866_v23 = vor.u32 1.1754944e-38, %v1865_v55  ;;  %vm1875_vm15 = vweird.f32 %v5841_v33  ;;  %4387 = vrcp.f32 %v6313_v57  ;;  %vm1864_vm0 = vcmp.eq.f32.partialorder %v1863_v54, 8.507059e+37 }
 0x21e   :  { %v1971_v0 = vmul.f32 %v8523_v49, %v1852_v60  ;;  %v1873_v13 = vadd.f32 %v5841_v33, %v1872_v32  ;;  %vm1904_vm1 = vweird.f32 %v5902_v5  ;;  %v1602_v4 = vsel %vm6331_vm3, %v6080_v26, %v1598_v1  ;;  %vm6374_vm9 = vmor %vm1874_vm14, %vm1875_vm15 }
 0x21f   :  { %v1886_v45 = vsub.f32 1.0, %v1885_v18  ;;  %v1867_v28 = vsel %vm1864_vm0, %v1866_v23, %v1862_v11  ;;  %v4386_v40 = vpop.eup %4385  ;;  %v1606_v27 = vor.u32 1.1754944e-38, %v1605_v25  ;;  %v1981_v12 = vpack.c.bf16 %v1970_v14, %v1969_v44 }
 0x220   :  { %v1972_v50 = vmul.f32 %v4384_v51, %v1867_v28  ;;  %v6342_v7 = vadd.f32 %v1087_v30, %v998_v46  ;;  %v8524_v60 = vand.u32 2147483647, %v5787_v63  ;;  %v1902_v9 = vmul.f32 %v6043_v20, %v1901_v39 }
 0x221   :  { %vm1604_vm4 = vcmp.eq.f32.partialorder %v1603_v47, 8.507059e+37  ;;  %v1887_v26 = vmul.f32 %v6309_v42, %v1886_v45  ;;  %vm1890_vm5 = vweird.f32 %v6309_v42  ;;  %4389 = vtanh.f32 %v5692_v62 }
 0x222   :  { %vm6346_vm2 = vcmp.eq.f32.partialorder %v8524_v60, 8.507059e+37  ;;  %v1607_v34 = vsel %vm1604_vm4, %v1606_v27, %v1602_v4  ;;  %v1895_v44 = vand.u32 2147483648, %v6257_v43  ;;  %v1982_v32 = vpack.c.bf16 %v1972_v50, %v1971_v0  ;;  %v6387_v28 = vpop.f32.mrf.mxu0 }
 0x223   :  { %v6355_v54 = vmul.f32 %v4386_v40, %v1607_v34  ;;  %v1888_v22 = vadd.f32 %v6309_v42, %v1887_v26  ;;  %vm1889_vm6 = vweird.f32 %v6257_v43  ;;  %v1893_v1 = vand.u32 2147483647, %v6257_v43  ;;  %v4388_v39 = vpop.eup %4387  ;;  %v6389_v46 = vpop.f32.mrf.mxu1 }
 0x224   :  { %vm6360_vm7 = vmor %vm1889_vm6, %vm1890_vm5  ;;  %v2081_v25 = vunpack.c.l.b16 %v1981_v12  ;;  %v2083_v2 = vunpack.c.l.b16 %v1982_v32  ;;  %v2082_v14 = vunpack.c.h.b16 %v1981_v12  ;;  %v2084_v47 = vunpack.c.h.b16 %v1982_v32  ;;  %v8537_v12 = vld [vmem:[#allocation6_spill] sm:$0xff] }
 0x225   :  { %8527 = vst [vmem:[#allocation45_spill] sm:$0xff] %v6355_v54  ;;  %vm1905_vm8 = vweird.f32 %v6043_v20  ;;  %v1915_v18 = vmul.f32 %v4388_v39, %v6313_v57  ;;  %v1892_v11 = vsel %vm6360_vm7, %v6309_v42, %v1888_v22  ;;  %v1903_v23 = vadd.f32 %v6043_v20, %v1902_v9 }
 0x226   :  { %v1910_v51 = vand.u32 2147483648, %v5902_v5  ;;  %v1896_v58 = vor.u32 1.1754944e-38, %v1895_v44  ;;  %v6379_v49 = vpack.c.b16 %v2083_v2, %v2081_v25  ;;  %v6381_v0 = vpack.c.b16 %v2084_v47, %v2082_v14  ;;  %vm6397_vm11 = vmor %vm1904_vm1, %vm1905_vm8  ;;  %1140 = vmatmul.bf16.gmra.mxu2 %v8537_v12 }
 0x227   :  { %v1908_v4 = vand.u32 2147483647, %v5902_v5  ;;  %vm1894_vm10 = vcmp.eq.f32.partialorder %v1893_v1, 8.507059e+37  ;;  %v1916_v42 = vsub.f32 1.0, %v1915_v18  ;;  %v1877_v45 = vsel %vm6374_vm9, %v5841_v33, %v1873_v13  ;;  %v4390_v30 = vpop.eup %4389  ;;  %v8538_v5 = vld [vmem:[#allocation8_spill] sm:$0xff] }
 0x228   :  { %8532 = vst [vmem:[#allocation2_spill] sm:$0xff] %v6379_v49  ;;  %v8534_v40 = vand.u32 2147483648, %v5787_v63  ;;  %4391 = vtanh.f32 %v6355_v54  ;;  %v1925_v33 = vand.u32 2147483648, %v6313_v57  ;;  %v1897_v13 = vsel %vm1894_vm10, %v1896_v58, %v1892_v11  ;;  %1229 = vmatmul.bf16.gmra.mxu3 %v8538_v5  ;;  %v8545_v5 = vld [vmem:[#allocation13_spill] sm:$0xff] }
 0x229   :  { %8533 = vst [vmem:[#allocation4_spill] sm:$0xff] %v6381_v0  ;;  %v1917_v60 = vmul.f32 %v4388_v39, %v1916_v42  ;;  %vm1920_vm12 = vweird.f32 %v4388_v39  ;;  %v1923_v63 = vand.u32 2147483647, %v6313_v57  ;;  %v1907_v9 = vsel %vm6397_vm11, %v6043_v20, %v1903_v23 }
 0x22a   :  { %v1881_v27 = vor.u32 1.1754944e-38, %v8534_v40  ;;  %v1911_v26 = vor.u32 1.1754944e-38, %v1910_v51  ;;  %vm1919_vm13 = vweird.f32 %v6313_v57  ;;  %vm1909_vm14 = vcmp.eq.f32.partialorder %v1908_v4, 8.507059e+37  ;;  %v1003_v55 = vpop.f32.mrf.mxu0  ;;  %v3924_v40 = vld [vmem:[%s8298_s1 + $0x8] sm:$0xf] }
 0x22b   :  { %v1918_v44 = vadd.f32 %v4388_v39, %v1917_v60  ;;  %v1974_v32 = vmul.f32 %v4390_v30, %v1897_v13  ;;  %vm1921_vm15 = vmor %vm1919_vm13, %vm1920_vm12  ;;  %v1926_v22 = vor.u32 1.1754944e-38, %v1925_v33  ;;  %vm1924_vm3 = vcmp.eq.f32.partialorder %v1923_v63, 8.507059e+37  ;;  %v1092_v11 = vpop.f32.mrf.mxu1  ;;  %v8542_v30 = vld [vmem:[#allocation11_spill] sm:$0xff] }
 0x22c   :  { %v1882_v34 = vsel %vm6346_vm2, %v1881_v27, %v1877_v45  ;;  %v1912_v1 = vsel %vm1909_vm14, %v1911_v26, %v1907_v9  ;;  %v6414_v23 = vadd.f32 %v1092_v11, %v1003_v55  ;;  %v8541_v45 = vld [vmem:[#allocation10_spill] sm:$0xff]  ;;  %v4102_v27 = vld [vmem:[%s8298_s1 + $0x14] sm:$0xf0]  ;;  %vm2105_vm0 = vcmask 523264   ;;  %v8544_v9 = vld [vmem:[#allocation12_spill] sm:$0xff] }
 0x22d   :  { %v1922_v35 = vsel %vm1921_vm15, %v4388_v39, %v1918_v44  ;;  %v1973_v25 = vmul.f32 %v5765_v41, %v1882_v34  ;;  %v1975_v14 = vmul.f32 %v5796_v36, %v1912_v1  ;;  %v3925_v12 = vor.u32 %v4102_v27, %v3924_v40  ;;  %v3928_v26 = vld [vmem:[%s8298_s1 + $0x28] sm:$0xf]  ;;  %v4103_v34 = vld [vmem:[%s8298_s1 + $0x34] sm:$0xf0] }
 0x22e   :  { %v4392_v2 = vpop.eup %4391  ;;  %v1927_v20 = vsel %vm1924_vm3, %v1926_v22, %v1922_v35  ;;  %v3929_v1 = vor.u32 %v4103_v34, %v3928_v26  ;;  %v8558_v26 = vld [vmem:[#allocation22_spill] sm:$0xff]  ;;  %v3940_v34 = vld [vmem:[%s8298_s1 + $0x88] sm:$0xf] }
 0x22f   :  { %v1976_v47 = vmul.f32 %v4392_v2, %v1927_v20  ;;  %v1983_v18 = vpack.c.bf16 %v1974_v32, %v1973_v25  ;;  %v8547_v2 = vld [vmem:[#allocation14_spill] sm:$0xff]  ;;  %v8548_v20 = vld [vmem:[#allocation15_spill] sm:$0xff] }
 0x231   :  { %v1984_v57 = vpack.c.bf16 %v1976_v47, %v1975_v14  ;;  %v2085_v43 = vunpack.c.l.b16 %v1983_v18  ;;  %v2086_v58 = vunpack.c.h.b16 %v1983_v18  ;;  %v3932_v14 = vld [vmem:[%s8298_s1 + $0x48] sm:$0xf]  ;;  %v4104_v47 = vld [vmem:[%s8298_s1 + $0x54] sm:$0xf0] }
 0x232   :  { %v6422_v41 = vpop.f32.mrf.mxu0 }
 0x233   :  { %v2087_v51 = vunpack.c.l.b16 %v1984_v57  ;;  %v2088_v4 = vunpack.c.h.b16 %v1984_v57  ;;  %v6424_v36 = vpop.f32.mrf.mxu1  ;;  %v3933_v57 = vor.u32 %v4104_v47, %v3932_v14 }
 0x235   :  { %v6416_v42 = vpack.c.b16 %v2087_v51, %v2085_v43  ;;  %v6418_v39 = vpack.c.b16 %v2088_v4, %v2086_v58  ;;  %v8552_v58 = vld [vmem:[#allocation16_spill] sm:$0xff]  ;;  %v8553_v4 = vld [vmem:[#allocation18_spill] sm:$0xff] }
 0x236   :  { %1145 = vmatmul.bf16.gmra.mxu2 %v8541_v45  ;;  %v3936_v45 = vld [vmem:[%s8298_s1 + $0x68] sm:$0xf] }
 0x237   :  { %8539 = vst [vmem:[#allocation46_spill] sm:$0xff] %v6416_v42  ;;  %2158 = vmatpush.bf16.msra.mxu0 %v6416_v42  ;;  %2247 = vmatpush.bf16.msra.mxu1 %v6418_v39 }
 0x238   :  { %8540 = vst [vmem:[#allocation6_spill] sm:$0xff] %v6418_v39  ;;  %1234 = vmatmul.bf16.gmra.mxu3 %v8542_v30  ;;  %v4105_v30 = vld [vmem:[%s8298_s1 + $0x74] sm:$0xf0] }
 0x23a   :  { %v1008_v50 = vpop.f32.mrf.mxu0 }
 0x23b   :  { %2159 = vmatpush.bf16.msra.mxu0 %v6379_v49  ;;  %2248 = vmatpush.bf16.msra.mxu1 %v6381_v0  ;;  %v1097_v33 = vpop.f32.mrf.mxu1 }
 0x23c   :  { %v6438_v13 = vadd.f32 %v1097_v33, %v1008_v50  ;;  %v3937_v33 = vor.u32 %v4105_v30, %v3936_v45 }
 0x23e   :  { %8543 = vst [vmem:[#allocation8_spill] sm:$0xff] %v6438_v13 }
 0x23f   :  { %2160 = vmatpush.bf16.msra.mxu0 %v6280_v6  ;;  %2249 = vmatpush.bf16.msra.mxu1 %v6282_v56 }
 0x242   :  { %v6444_v60 = vpop.f32.mrf.mxu0 }
 0x243   :  { %2161 = vmatpush.bf16.msra.mxu0 %v6127_v59  ;;  %2250 = vmatpush.bf16.msra.mxu1 %v6155_v52  ;;  %v6446_v63 = vpop.f32.mrf.mxu1 }
 0x246   :  { %3986 = vmatmul.msk.bf16.vlgmr.msra.gmra.mxu0 %vm2105_vm0, %v3925_v12  ;;  %4002 = vmatmul.msk.bf16.vlgmr.msra.gmra.mxu1 %vm2105_vm0, %v3925_v12 }
 0x247   :  { %1150 = vmatmul.bf16.gmra.mxu2 %v8544_v9 }
 0x248   :  { %1239 = vmatmul.bf16.gmra.mxu3 %v8545_v5  ;;  %v8557_v5 = vld [vmem:[#allocation20_spill] sm:$0xff] }
 0x24a   :  { %v1013_v44 = vpop.f32.mrf.mxu0 }
 0x24b   :  { %v1102_v32 = vpop.f32.mrf.mxu1 }
 0x24c   :  { %v6456_v22 = vadd.f32 %v1102_v32, %v1013_v44  ;;  %v4106_v44 = vld [vmem:[%s8298_s1 + $0x94] sm:$0xf0] }
 0x24e   :  { %8546 = vst [vmem:[#allocation10_spill] sm:$0xff] %v6456_v22 }
 0x252   :  { %v6460_v35 = vpop.f32.mrf.mxu0 }
 0x253   :  { %v6462_v25 = vpop.f32.mrf.mxu1 }
 0x256   :  { %3987 = vmatmul.msk.bf16.gmra.mxu0 %vm2105_vm0, %v3929_v1  ;;  %4003 = vmatmul.msk.bf16.gmra.mxu1 %vm2105_vm0, %v3929_v1 }
 0x257   :  { %1155 = vmatmul.bf16.gmra.mxu2 %v8547_v2 }
 0x258   :  { %1244 = vmatmul.bf16.gmra.mxu3 %v8548_v20  ;;  %v3941_v20 = vor.u32 %v4106_v44, %v3940_v34  ;;  %v3948_v44 = vld [vmem:[%s8298_s1 + $0xc8] sm:$0xf] }
 0x25a   :  { %v1018_v18 = vpop.f32.mrf.mxu0 }
 0x25b   :  { %v1107_v55 = vpop.f32.mrf.mxu1 }
 0x25c   :  { %v6472_v11 = vadd.f32 %v1107_v55, %v1018_v18  ;;  %v8562_v18 = vld [vmem:[#allocation24_spill] sm:$0xff]  ;;  %v8563_v55 = vld [vmem:[#allocation25_spill] sm:$0xff] }
 0x25e   :  { %8549 = vst [vmem:[#allocation11_spill] sm:$0xff] %v6472_v11 }
 0x262   :  { %v6476_v43 = vpop.f32.mrf.mxu0 }
 0x263   :  { %8550 = vst [vmem:[#allocation12_spill] sm:$0xff] %v6476_v43  ;;  %v6478_v51 = vpop.f32.mrf.mxu1 }
 0x264   :  { %8551 = vst [vmem:[#allocation13_spill] sm:$0xff] %v6478_v51 }
 0x266   :  { %3988 = vmatmul.msk.bf16.gmra.mxu0 %vm2105_vm0, %v3933_v57  ;;  %4004 = vmatmul.msk.bf16.gmra.mxu1 %vm2105_vm0, %v3933_v57  ;;  %v3944_v57 = vld [vmem:[%s8298_s1 + $0xa8] sm:$0xf] }
 0x267   :  { %1160 = vmatmul.bf16.gmra.mxu2 %v8552_v58  ;;  %v4107_v58 = vld [vmem:[%s8298_s1 + $0xb4] sm:$0xf0] }
 0x268   :  { %1249 = vmatmul.bf16.gmra.mxu3 %v8553_v4 }
 0x26a   :  { %v1023_v40 = vpop.f32.mrf.mxu0 }
 0x26b   :  { %v1112_v27 = vpop.f32.mrf.mxu1 }
 0x26c   :  { %v6488_v50 = vadd.f32 %v1112_v27, %v1023_v40  ;;  %v3945_v40 = vor.u32 %v4107_v58, %v3944_v57  ;;  %v8565_v27 = vld [vmem:[#allocation26_spill] sm:$0xff]  ;;  %v8568_v58 = vld [vmem:[#allocation5_spill] sm:$0xff] }
 0x26e   :  { %8554 = vst [vmem:[#allocation14_spill] sm:$0xff] %v6488_v50 }
 0x272   :  { %v6492_v12 = vpop.f32.mrf.mxu0 }
 0x273   :  { %8555 = vst [vmem:[#allocation15_spill] sm:$0xff] %v6492_v12  ;;  %v6494_v9 = vpop.f32.mrf.mxu1 }
 0x274   :  { %8556 = vst [vmem:[#allocation16_spill] sm:$0xff] %v6494_v9 }
 0x276   :  { %3989 = vmatmul.msk.bf16.gmra.mxu0 %vm2105_vm0, %v3937_v33  ;;  %4005 = vmatmul.msk.bf16.gmra.mxu1 %vm2105_vm0, %v3937_v33  ;;  %v8566_v33 = vld [vmem:[#allocation27_spill] sm:$0xff] }
 0x277   :  { %1165 = vmatmul.bf16.gmra.mxu2 %v8557_v5 }
 0x278   :  { %1254 = vmatmul.bf16.gmra.mxu3 %v8558_v26 }
 0x27a   :  { %v1028_v32 = vpop.f32.mrf.mxu0 }
 0x27b   :  { %v1117_v1 = vpop.f32.mrf.mxu1 }
 0x27c   :  { %v6504_v2 = vadd.f32 %v1117_v1, %v1028_v32  ;;  %v4108_v32 = vld [vmem:[%s8298_s1 + $0xd4] sm:$0xf0] }
 0x27d   :  { %v3949_v1 = vor.u32 %v4108_v32, %v3948_v44  ;;  %v8569_v44 = vld [vmem:[#allocation7_spill] sm:$0xff] }
 0x27e   :  { %8559 = vst [vmem:[#allocation18_spill] sm:$0xff] %v6504_v2  ;;  %v8580_v2 = vld [vmem:[#allocation50_spill] sm:$0xff] }
 0x282   :  { %v6508_v14 = vpop.f32.mrf.mxu0 }
 0x283   :  { %8560 = vst [vmem:[#allocation20_spill] sm:$0xff] %v6508_v14  ;;  %v6510_v47 = vpop.f32.mrf.mxu1 }
 0x284   :  { %8561 = vst [vmem:[#allocation22_spill] sm:$0xff] %v6510_v47 }
 0x286   :  { %3990 = vmatmul.msk.bf16.gmra.mxu0 %vm2105_vm0, %v3941_v20  ;;  %4006 = vmatmul.msk.bf16.gmra.mxu1 %vm2105_vm0, %v3941_v20 }
 0x287   :  { %1170 = vmatmul.bf16.gmra.mxu2 %v8562_v18 }
 0x288   :  { %1259 = vmatmul.bf16.gmra.mxu3 %v8563_v55  ;;  %v8567_v55 = vld [vmem:[#allocation3_spill] sm:$0xff] }
 0x28b   :  { %v1033_v4 = vpop.f32.mrf.mxu0 }
 0x28c   :  { %v1122_v45 = vpop.f32.mrf.mxu1 }
 0x28d   :  { %v6520_v30 = vadd.f32 %v1122_v45, %v1033_v4  ;;  %v3952_v4 = vld [vmem:[%s8298_s1 + $0xe8] sm:$0xf]  ;;  %v4109_v45 = vld [vmem:[%s8298_s1 + $0xf4] sm:$0xf0] }
 0x28f   :  { %8564 = vst [vmem:[#allocation24_spill] sm:$0xff] %v6520_v30 }
 0x296   :  { %3991 = vmatmul.msk.bf16.gmra.mxu0 %vm2105_vm0, %v3945_v40  ;;  %4007 = vmatmul.msk.bf16.gmra.mxu1 %vm2105_vm0, %v3945_v40 }
 0x297   :  { %1175 = vmatmul.bf16.gmra.mxu2 %v8565_v27 }
 0x298   :  { %1264 = vmatmul.bf16.gmra.mxu3 %v8566_v33  ;;  %v3953_v33 = vor.u32 %v4109_v45, %v3952_v4  ;;  %v4110_v4 = vld [vmem:[%s8298_s1 + $0x114] sm:$0xf0] }
 0x299   :  { %v1136_v5 = vpop.f32.mrf.mxu2 }
 0x29a   :  { %v1225_v26 = vpop.f32.mrf.mxu3 }
 0x29b   :  { %v1226_v34 = vadd.f32 %v1225_v26, %v1136_v5 }
 0x2a1   :  { %v1138_v20 = vpop.f32.mrf.mxu2 }
 0x2a2   :  { %v1227_v18 = vpop.f32.mrf.mxu3 }
 0x2a3   :  { %v1228_v57 = vadd.f32 %v1227_v18, %v1138_v20  ;;  %v8570_v20 = vld [vmem:[#allocation9_spill] sm:$0xff]  ;;  %v6546_v18 = vpop.f32.mrf.mxu0 }
 0x2a4   :  { %8571 = vst [vmem:[#allocation25_spill] sm:$0xff] %v6546_v18 }
 0x2a6   :  { %3992 = vmatmul.msk.bf16.gmra.mxu0 %vm2105_vm0, %v3949_v1  ;;  %4008 = vmatmul.msk.bf16.gmra.mxu1 %vm2105_vm0, %v3949_v1 }
 0x2a7   :  { %1180 = vmatmul.bf16.gmra.mxu2 %v8567_v55  ;;  %v6548_v55 = vpop.f32.mrf.mxu1 }
 0x2a8   :  { %1269 = vmatmul.bf16.gmra.mxu3 %v8568_v58  ;;  %8572 = vst [vmem:[#allocation26_spill] sm:$0xff] %v6548_v55  ;;  %v3956_v58 = vld [vmem:[%s8298_s1 + $0x108] sm:$0xf] }
 0x2a9   :  { %v1141_v40 = vpop.f32.mrf.mxu2  ;;  %v3957_v52 = vor.u32 %v4110_v4, %v3956_v58  ;;  %v8574_v4 = vld [vmem:[#allocation39_spill] sm:$0xff] }
 0x2ab   :  { %v1230_v27 = vpop.f32.mrf.mxu3 }
 0x2ac   :  { %v1231_v32 = vadd.f32 %v1230_v27, %v1141_v40  ;;  %v8573_v27 = vld [vmem:[#allocation38_spill] sm:$0xff] }
 0x2b1   :  { %v1143_v5 = vpop.f32.mrf.mxu2 }
 0x2b3   :  { %v1232_v26 = vpop.f32.mrf.mxu3 }
 0x2b4   :  { %v1233_v1 = vadd.f32 %v1232_v26, %v1143_v5 }
 0x2b6   :  { %3993 = vmatmul.msk.bf16.gmra.mxu0 %vm2105_vm0, %v3953_v33  ;;  %4009 = vmatmul.msk.bf16.gmra.mxu1 %vm2105_vm0, %v3953_v33 }
 0x2b7   :  { %1185 = vmatmul.bf16.gmra.mxu2 %v8569_v44 }
 0x2b8   :  { %1274 = vmatmul.bf16.gmra.mxu3 %v8570_v20 }
 0x2b9   :  { %v1146_v45 = vpop.f32.mrf.mxu2 }
 0x2bb   :  { %v1235_v33 = vpop.f32.mrf.mxu3 }
 0x2bc   :  { %v1236_v56 = vadd.f32 %v1235_v33, %v1146_v45 }
 0x2c1   :  { %v1148_v20 = vpop.f32.mrf.mxu2 }
 0x2c3   :  { %v2163_v44 = vpop.f32.mrf.mxu0  ;;  %v2252_v40 = vpop.f32.mrf.mxu1 }
 0x2c4   :  { %v2332_v5 = vadd.f32 %v2163_v44, %v8573_v27  ;;  %v2333_v26 = vadd.f32 %v2252_v40, %v1226_v34  ;;  %v1237_v59 = vpop.f32.mrf.mxu3  ;;  %v3960_v34 = vld [vmem:[%s8298_s1 + $0x128] sm:$0xf]  ;;  %v8575_v40 = vld [vmem:[#allocation29_spill] sm:$0xff] }
 0x2c5   :  { %v6560_v6 = vadd.f32 %v1237_v59, %v1148_v20 }
 0x2c6   :  { %3994 = vmatmul.msk.bf16.gmra.mxu0 %vm2105_vm0, %v3957_v52  ;;  %4010 = vmatmul.msk.bf16.gmra.mxu1 %vm2105_vm0, %v3957_v52  ;;  %v4111_v52 = vld [vmem:[%s8298_s1 + $0x134] sm:$0xf0]  ;;  %v4018_v20 = vmul.f32 -1.442695, %v2332_v5 }
 0x2c7   :  { %1190 = vmatmul.bf16.gmra.mxu2 %v4864_v17  ;;  %v3961_v45 = vor.u32 %v4111_v52, %v3960_v34 }
 0x2c8   :  { %1279 = vmatmul.bf16.gmra.mxu3 %v4868_v19  ;;  %4393 = vpow2.f32 %v4018_v20 }
 0x2ca   :  { %v1151_v44 = vpop.f32.mrf.mxu2 }
 0x2cb   :  { %v2165_v0 = vpop.f32.mrf.mxu0  ;;  %v2254_v58 = vpop.f32.mrf.mxu1 }
 0x2cc   :  { %v2334_v49 = vadd.f32 %v2165_v0, %v8574_v4  ;;  %v2335_v39 = vadd.f32 %v2254_v58, %v1228_v57  ;;  %v1240_v17 = vpop.f32.mrf.mxu3  ;;  %v4019_v0 = vmul.f32 -1.442695, %v2333_v26  ;;  %v3964_v26 = vld [vmem:[%s8298_s1 + $0x148] sm:$0xf] }
 0x2cd   :  { %v6574_v4 = vadd.f32 %v1240_v17, %v1151_v44 }
 0x2ce   :  { %4395 = vpow2.f32 %v4019_v0  ;;  %v4394_v44 = vpop.eup %4393  ;;  %v4020_v17 = vmul.f32 -1.442695, %v2334_v49 }
 0x2d0   :  { %4397 = vpow2.f32 %v4020_v17 }
 0x2d2   :  { %v1153_v57 = vpop.f32.mrf.mxu2 }
 0x2d3   :  { %v2168_v59 = vpop.f32.mrf.mxu0  ;;  %v2257_v33 = vpop.f32.mrf.mxu1 }
 0x2d4   :  { %v2336_v19 = vadd.f32 %v2168_v59, %v8575_v40  ;;  %v2337_v27 = vadd.f32 %v2257_v33, %v1231_v32  ;;  %v1242_v58 = vpop.f32.mrf.mxu3  ;;  %v8576_v32 = vld [vmem:[#allocation30_spill] sm:$0xff]  ;;  %v4396_v40 = vpop.eup %4395 }
 0x2d5   :  { %v6576_v42 = vadd.f32 %v1242_v58, %v1153_v57  ;;  %v6586_v57 = vadd.f32 1.0, %v4394_v44  ;;  %v6591_v55 = vadd.f32 1.0, %v4396_v40 }
 0x2d6   :  { %3995 = vmatmul.msk.bf16.gmra.mxu0 %vm2105_vm0, %v3961_v45  ;;  %4011 = vmatmul.msk.bf16.gmra.mxu1 %vm2105_vm0, %v3961_v45  ;;  %v4023_v49 = vmul.f32 -1.442695, %v2337_v27  ;;  %v8578_v27 = vld [vmem:[#allocation44_spill] sm:$0xff] }
 0x2d7   :  { %1195 = vmatmul.bf16.gmra.mxu2 %v4900_v29  ;;  %v4112_v29 = vld [vmem:[%s8298_s1 + $0x154] sm:$0xf0]  ;;  %vm2465_vm6 = vweird.f32 %v6586_v57  ;;  %vm2480_vm7 = vweird.f32 %v6591_v55 }
 0x2d8   :  { %1284 = vmatmul.bf16.gmra.mxu3 %v4904_v31  ;;  %v4021_v31 = vmul.f32 -1.442695, %v2335_v39  ;;  %v3965_v20 = vor.u32 %v4112_v29, %v3964_v26 }
 0x2da   :  { %v1156_v45 = vpop.f32.mrf.mxu2  ;;  %4399 = vpow2.f32 %v4021_v31 }
 0x2db   :  { %v2170_v34 = vpop.f32.mrf.mxu0  ;;  %v2259_v52 = vpop.f32.mrf.mxu1  ;;  %4401 = vrcp.f32 %v6586_v57 }
 0x2dc   :  { %v2338_v5 = vadd.f32 %v2170_v34, %v8576_v32  ;;  %v2339_v59 = vadd.f32 %v2259_v52, %v1233_v1  ;;  %v1245_v33 = vpop.f32.mrf.mxu3  ;;  %v4022_v1 = vmul.f32 -1.442695, %v2336_v19  ;;  %v8577_v34 = vld [vmem:[#allocation43_spill] sm:$0xff]  ;;  %v4398_v19 = vpop.eup %4397 }
 0x2de   :  { %4403 = vpow2.f32 %v4022_v1  ;;  %v4024_v44 = vmul.f32 -1.442695, %v2338_v5  ;;  %v3968_v5 = vld [vmem:[%s8298_s1 + $0x168] sm:$0xf] }
 0x2df   :  { %4405 = vrcp.f32 %v6591_v55 }
 0x2e0   :  { %v4400_v29 = vpop.eup %4399  ;;  %4407 = vpow2.f32 %v4023_v49 }
 0x2e1   :  { %4409 = vpow2.f32 %v4024_v44 }
 0x2e2   :  { %v6596_v39 = vpop.f32.mrf.mxu2 }
 0x2e3   :  { %v2173_v0 = vpop.f32.mrf.mxu0  ;;  %v2262_v58 = vpop.f32.mrf.mxu1 }
 0x2e4   :  { %v2340_v52 = vadd.f32 %v2173_v0, %v8577_v34  ;;  %v6589_v32 = vadd.f32 %v2262_v58, %v1236_v56  ;;  %v6598_v26 = vpop.f32.mrf.mxu3  ;;  %v6602_v56 = vadd.f32 %v1245_v33, %v1156_v45  ;;  %v6611_v0 = vpop.eup %4401  ;;  %v6615_v33 = vadd.f32 1.0, %v4400_v29  ;;  %v4113_v58 = vld [vmem:[%s8298_s1 + $0x174] sm:$0xf0] }
 0x2e5   :  { %v4404_v45 = vpop.eup %4403  ;;  %v2461_v49 = vmul.f32 %v6611_v0, %v6586_v57  ;;  %v3969_v44 = vor.u32 %v4113_v58, %v3968_v5  ;;  %v8581_v5 = vld [vmem:[#allocation54_spill] sm:$0xff]  ;;  %vm2466_vm2 = vweird.f32 %v6611_v0 }
 0x2e6   :  { %3996 = vmatmul.msk.bf16.gmra.mxu0 %vm2105_vm0, %v3965_v20  ;;  %4012 = vmatmul.msk.bf16.gmra.mxu1 %vm2105_vm0, %v3965_v20  ;;  %vm6739_vm8 = vmor %vm2465_vm6, %vm2466_vm2  ;;  %vm2510_vm12 = vweird.f32 %v6615_v33 }
 0x2e7   :  { %1200 = vmatmul.bf16.gmra.mxu2 %v4984_v8  ;;  %v6613_v8 = vadd.f32 1.0, %v4398_v19  ;;  %v6628_v19 = vadd.f32 1.0, %v4404_v45  ;;  %v8579_v45 = vld [vmem:[#allocation49_spill] sm:$0xff]  ;;  %v2462_v12 = vsub.f32 1.0, %v2461_v49  ;;  %v6664_v49 = vadd.f32 %v6389_v46, %v6387_v28 }
 0x2e8   :  { %1289 = vmatmul.bf16.gmra.mxu3 %v4988_v10  ;;  %v6617_v10 = vpop.eup %4405  ;;  %v6643_v9 = vadd.f32 %v8580_v2, %v8579_v45  ;;  %v2471_v28 = vand.u32 2147483648, %v6586_v57  ;;  %v4027_v46 = vmul.f32 -1.442695, %v6589_v32  ;;  %v6691_v45 = vadd.f32 %v6462_v25, %v6460_v35  ;;  %v8587_v25 = vld [vmem:[#allocation48_spill] sm:$0xff] }
 0x2e9   :  { %v4408_v34 = vpop.eup %4407  ;;  %4411 = vrcp.f32 %v6613_v8  ;;  %v2476_v29 = vmul.f32 %v6617_v10, %v6591_v55  ;;  %v2484_v32 = vand.u32 2147483647, %v6591_v55  ;;  %vm2481_vm4 = vweird.f32 %v6617_v10 }
 0x2ea   :  { %4413 = vrcp.f32 %v6615_v33  ;;  %v6633_v18 = vadd.f32 1.0, %v4408_v34  ;;  %v4410_v14 = vpop.eup %4409  ;;  %v6652_v34 = vadd.f32 %v6111_v16, %v6094_v24  ;;  %v4026_v24 = vmul.f32 -1.442695, %v2340_v52  ;;  %v8584_v52 = vld [vmem:[#allocation19_spill] sm:$0xff]  ;;  %8586 = vst [vmem:[#allocation3_spill] sm:$0xff] %v6691_v45  ;;  %vm6750_vm9 = vmor %vm2480_vm7, %vm2481_vm4 }
 0x2eb   :  { %v2175_v17 = vpop.f32.mrf.mxu0  ;;  %v2264_v31 = vpop.f32.mrf.mxu1  ;;  %4415 = vrcp.f32 %v6628_v19  ;;  %vm6722_vm5 = vcmp.eq.f32.partialorder %v2484_v32, 8.507059e+37  ;;  %vm2495_vm10 = vweird.f32 %v6613_v8  ;;  %vm2525_vm2 = vweird.f32 %v6628_v19 }
 0x2ec   :  { %v6606_v40 = vadd.f32 %v2175_v17, %v8578_v27  ;;  %v6609_v20 = vadd.f32 %v2264_v31, %v6560_v6  ;;  %v1161_v6 = vpop.f32.mrf.mxu2  ;;  %v1250_v1 = vpop.f32.mrf.mxu3  ;;  %v4025_v17 = vmul.f32 -1.442695, %v2339_v59  ;;  %v8582_v59 = vld [vmem:[#allocation55_spill] sm:$0xff]  ;;  %vm2540_vm4 = vweird.f32 %v6633_v18 }
 0x2ed   :  { %v6648_v58 = vadd.f32 %v8582_v59, %v8581_v5 }
 0x2ee   :  { %4417 = vpow2.f32 %v4025_v17  ;;  %v2463_v17 = vmul.f32 %v6611_v0, %v2462_v12  ;;  %v4028_v35 = vmul.f32 -1.442695, %v6606_v40  ;;  %v4029_v11 = vmul.f32 -1.442695, %v6609_v20 }
 0x2ef   :  { %v6660_v2 = vpop.eup %4411  ;;  %4419 = vrcp.f32 %v6633_v18  ;;  %v2516_v20 = vand.u32 2147483648, %v6615_v33 }
 0x2f0   :  { %v6670_v16 = vpop.eup %4413  ;;  %4421 = vpow2.f32 %v4026_v24  ;;  %v2464_v24 = vadd.f32 %v6611_v0, %v2463_v17  ;;  %v2501_v17 = vand.u32 2147483648, %v6613_v8  ;;  %vm2496_vm11 = vweird.f32 %v6660_v2 }
 0x2f1   :  { %v2506_v12 = vmul.f32 %v6670_v16, %v6615_v33  ;;  %vm2511_vm14 = vweird.f32 %v6670_v16 }
 0x2f2   :  { %v6765_v22 = vor.u32 1.1754944e-38, %v2501_v17 }
 0x2f3   :  { %v2178_v31 = vpop.f32.mrf.mxu0  ;;  %v2267_v27 = vpop.f32.mrf.mxu1 }
 0x2f4   :  { %v6636_v30 = vadd.f32 %v2178_v31, %v5735_v61  ;;  %v6639_v47 = vadd.f32 %v2267_v27, %v6574_v4  ;;  %v6656_v61 = vadd.f32 %v6278_v15, %v6273_v37  ;;  %v2477_v4 = vsub.f32 1.0, %v2476_v29  ;;  %v1163_v15 = vpop.f32.mrf.mxu2  ;;  %v1252_v29 = vpop.f32.mrf.mxu3 }
 0x2f5   :  { %v6668_v31 = vadd.f32 %v6424_v36, %v6422_v41  ;;  %v6673_v37 = vadd.f32 1.0, %v4410_v14  ;;  %v2469_v27 = vand.u32 2147483647, %v6586_v57  ;;  %v6679_v41 = vadd.f32 %v1250_v1, %v1161_v6  ;;  %v6695_v6 = vpop.eup %4415 }
 0x2f6   :  { %3997 = vmatmul.msk.bf16.gmra.mxu0 %vm2105_vm0, %v3969_v44  ;;  %4013 = vmatmul.msk.bf16.gmra.mxu1 %vm2105_vm0, %v3969_v44  ;;  %v8583_v44 = vld [vmem:[#allocation17_spill] sm:$0xff]  ;;  %v6681_v36 = vadd.f32 %v1252_v29, %v1163_v15  ;;  %v6687_v14 = vadd.f32 %v6446_v63, %v6444_v60  ;;  %v2478_v5 = vmul.f32 %v6617_v10, %v2477_v4  ;;  %v2486_v63 = vand.u32 2147483648, %v6591_v55 }
 0x2f7   :  { %1205 = vmatmul.bf16.gmra.mxu2 %v8583_v44  ;;  %v2491_v1 = vmul.f32 %v6660_v2, %v6613_v8  ;;  %4423 = vrcp.f32 %v6673_v37  ;;  %vm6710_vm1 = vcmp.eq.f32.partialorder %v2469_v27, 8.507059e+37  ;;  %v4418_v44 = vpop.eup %4417  ;;  %v2521_v40 = vmul.f32 %v6695_v6, %v6628_v19 }
 0x2f8   :  { %1294 = vmatmul.bf16.gmra.mxu3 %v8584_v52  ;;  %8585 = vst [vmem:[#allocation27_spill] sm:$0xff] %v6687_v14  ;;  %4425 = vpow2.f32 %v4027_v46  ;;  %v2472_v52 = vor.u32 1.1754944e-38, %v2471_v28  ;;  %v6716_v50 = vpop.eup %4419  ;;  %v3972_v46 = vld [vmem:[%s8298_s1 + $0x188] sm:$0xf]  ;;  %v4114_v28 = vld [vmem:[%s8298_s1 + $0x194] sm:$0xf0]  ;;  %v2468_v55 = vsel %vm6739_vm8, %v6611_v0, %v2464_v24  ;;  %vm2526_vm3 = vweird.f32 %v6695_v6 }
 0x2f9   :  { %v2492_v27 = vsub.f32 1.0, %v2491_v1  ;;  %v6735_v32 = vadd.f32 1.0, %v4418_v44  ;;  %4427 = vpow2.f32 %v4028_v35  ;;  %v2487_v51 = vor.u32 1.1754944e-38, %v2486_v63  ;;  %v4422_v43 = vpop.eup %4421  ;;  %vm6862_vm7 = vmor %vm2525_vm2, %vm2526_vm3 }
 0x2fa   :  { %v2536_v57 = vmul.f32 %v6716_v50, %v6633_v18  ;;  %v2499_v35 = vand.u32 2147483647, %v6613_v8  ;;  %v2514_v44 = vand.u32 2147483647, %v6615_v33  ;;  %v2522_v63 = vsub.f32 1.0, %v2521_v40  ;;  %v8596_v40 = vld [vmem:[#allocation35_spill] sm:$0xff] }
 0x2fb   :  { %v2180_v59 = vpop.f32.mrf.mxu0  ;;  %v2269_v60 = vpop.f32.mrf.mxu1  ;;  %v3973_v45 = vor.u32 %v4114_v28, %v3972_v46  ;;  %v2493_v3 = vmul.f32 %v6660_v2, %v2492_v27  ;;  %4429 = vrcp.f32 %v6735_v32  ;;  %v6777_v27 = vadd.f32 1.0, %v4422_v43  ;;  %v8613_v33 = vld [vmem:[#allocation53_spill] sm:$0xff] }
 0x2fc   :  { %v6705_v4 = vadd.f32 %v2180_v59, %v8587_v25  ;;  %v6708_v15 = vadd.f32 %v2269_v60, %v6576_v42  ;;  %v2479_v59 = vadd.f32 %v6617_v10, %v2478_v5  ;;  %v2507_v5 = vsub.f32 1.0, %v2506_v12  ;;  %v1166_v60 = vpop.f32.mrf.mxu2  ;;  %v1255_v1 = vpop.f32.mrf.mxu3 }
 0x2fd   :  { %v6756_v54 = vpop.eup %4423  ;;  %v2537_v28 = vsub.f32 1.0, %v2536_v57  ;;  %v6781_v17 = vsel %vm6710_vm1, %v2472_v52, %v2468_v55  ;;  %4431 = vpow2.f32 %v4029_v11  ;;  %vm6793_vm13 = vcmp.eq.f32.partialorder %v2499_v35, 8.507059e+37  ;;  %vm6830_vm1 = vmor %vm2495_vm10, %vm2496_vm11 }
 0x2fe   :  { %v2483_v0 = vsel %vm6750_vm9, %v6617_v10, %v2479_v59  ;;  %v4426_v24 = vpop.eup %4425  ;;  %v2508_v59 = vmul.f32 %v6670_v16, %v2507_v5  ;;  %v2523_v43 = vmul.f32 %v6695_v6, %v2522_v63  ;;  %vm6799_vm15 = vcmp.eq.f32.partialorder %v2514_v44, 8.507059e+37 }
 0x2ff   :  { %v6785_v12 = vsel %vm6722_vm5, %v2487_v51, %v2483_v0  ;;  %v4428_v53 = vpop.eup %4427  ;;  %v2529_v29 = vand.u32 2147483647, %v6628_v19  ;;  %v4030_v11 = vmul.f32 -1.442695, %v6636_v30  ;;  %4433 = vrcp.f32 %v6777_v27  ;;  %vm6845_vm5 = vmor %vm2510_vm12, %vm2511_vm14 }
 0x300   :  { %v2509_v5 = vadd.f32 %v6670_v16, %v2508_v59  ;;  %v6810_v57 = vadd.f32 1.0, %v4428_v53  ;;  %v6812_v55 = vadd.f32 %v1255_v1, %v1166_v60  ;;  %v2544_v60 = vand.u32 2147483647, %v6633_v18 }
 0x301   :  { %v6817_v30 = vpop.eup %4429  ;;  %vm6849_vm6 = vcmp.eq.f32.partialorder %v2529_v29, 8.507059e+37  ;;  %vm2541_vm8 = vweird.f32 %v6716_v50  ;;  %vm2555_vm10 = vweird.f32 %v6673_v37  ;;  %vm2556_vm12 = vweird.f32 %v6756_v54 }
 0x302   :  { %v2566_v59 = vmul.f32 %v6817_v30, %v6735_v32  ;;  %vm6902_vm9 = vcmp.eq.f32.partialorder %v2544_v60, 8.507059e+37  ;;  %vm6915_vm11 = vmor %vm2540_vm4, %vm2541_vm8  ;;  %vm2570_vm14 = vweird.f32 %v6735_v32  ;;  %vm2571_vm3 = vweird.f32 %v6817_v30 }
 0x303   :  { %v2183_v25 = vpop.f32.mrf.mxu0  ;;  %v2272_v62 = vpop.f32.mrf.mxu1  ;;  %vm7015_vm2 = vmor %vm2570_vm14, %vm2571_vm3 }
 0x304   :  { %v6771_v46 = vadd.f32 %v2183_v25, %v8596_v40  ;;  %v6774_v10 = vadd.f32 %v2272_v62, %v6602_v56  ;;  %v2551_v25 = vmul.f32 %v6756_v54, %v6673_v37  ;;  %v6789_v40 = vadd.f32 1.0, %v4426_v24  ;;  %v1168_v52 = vpop.f32.mrf.mxu2  ;;  %v1257_v42 = vpop.f32.mrf.mxu3 }
 0x305   :  { %v2517_v56 = vor.u32 1.1754944e-38, %v2516_v20  ;;  %v6814_v35 = vadd.f32 %v1257_v42, %v1168_v52  ;;  %v4432_v1 = vpop.eup %4431  ;;  %v2546_v20 = vand.u32 2147483648, %v6633_v18  ;;  %v6879_v52 = vadd.f32 %v6598_v26, %v6596_v39 }
 0x306   :  { %3998 = vmatmul.msk.bf16.gmra.mxu0 %vm2105_vm0, %v3973_v45  ;;  %4014 = vmatmul.msk.bf16.gmra.mxu1 %vm2105_vm0, %v3973_v45  ;;  %v2494_v45 = vadd.f32 %v6660_v2, %v2493_v3  ;;  %v2552_v44 = vsub.f32 1.0, %v2551_v25  ;;  %4435 = vrcp.f32 %v6789_v40  ;;  %v2538_v3 = vmul.f32 %v6716_v50, %v2537_v28 }
 0x307   :  { %1210 = vmatmul.bf16.gmra.mxu2 %v8508_v38  ;;  %v2524_v38 = vadd.f32 %v6695_v6, %v2523_v43  ;;  %4437 = vpow2.f32 %v4030_v11  ;;  %v4031_v28 = vmul.f32 -1.442695, %v6639_v47  ;;  %v6873_v11 = vpop.eup %4433  ;;  %v3976_v47 = vld [vmem:[%s8298_s1 + $0x1a8] sm:$0xf] }
 0x308   :  { %1299 = vmatmul.bf16.gmra.mxu3 %v8510_v48  ;;  %v2531_v48 = vand.u32 2147483648, %v6628_v19  ;;  %v2498_v24 = vsel %vm6830_vm1, %v6660_v2, %v2494_v45  ;;  %4439 = vrcp.f32 %v6810_v57  ;;  %v2513_v2 = vsel %vm6845_vm5, %v6670_v16, %v2509_v5 }
 0x309   :  { %v2528_v25 = vsel %vm6862_vm7, %v6695_v6, %v2524_v38  ;;  %v2539_v43 = vadd.f32 %v6716_v50, %v2538_v3  ;;  %v2553_v29 = vmul.f32 %v6756_v54, %v2552_v44  ;;  %v6875_v16 = vadd.f32 1.0, %v4432_v1  ;;  %v4115_v6 = vld [vmem:[%s8298_s1 + $0x1b4] sm:$0xf0] }
 0x30a   :  { %v6890_v42 = vsel %vm6793_vm13, %v6765_v22, %v2498_v24  ;;  %v2532_v45 = vor.u32 1.1754944e-38, %v2531_v48  ;;  %v6900_v26 = vsel %vm6799_vm15, %v2517_v56, %v2513_v2  ;;  %v2547_v3 = vor.u32 1.1754944e-38, %v2546_v20  ;;  %vm6962_vm15 = vmor %vm2555_vm10, %vm2556_vm12 }
 0x30b   :  { %v6822_v63 = vpop.f32.mrf.mxu0  ;;  %v6824_v0 = vpop.f32.mrf.mxu1  ;;  %v2567_v22 = vsub.f32 1.0, %v2566_v59  ;;  %v2559_v56 = vand.u32 2147483647, %v6673_v37  ;;  %4441 = vpow2.f32 %v4031_v28  ;;  %v3977_v48 = vor.u32 %v4115_v6, %v3976_v47 }
 0x30c   :  { %v6892_v5 = vpop.eup %4435  ;;  %v6894_v44 = vpop.f32.mrf.mxu2  ;;  %v6909_v62 = vsel %vm6849_vm6, %v2532_v45, %v2528_v25  ;;  %v2543_v60 = vsel %vm6915_vm11, %v6716_v50, %v2539_v43  ;;  %v2554_v1 = vadd.f32 %v6756_v54, %v2553_v29  ;;  %v2581_v18 = vmul.f32 %v6873_v11, %v6777_v27 }
 0x30d   :  { %v6896_v39 = vpop.f32.mrf.mxu3  ;;  %v4438_v53 = vpop.eup %4437  ;;  %v2596_v8 = vmul.f32 %v6892_v5, %v6789_v40  ;;  %4443 = vrcp.f32 %v6875_v16  ;;  %v4034_v19 = vmul.f32 -1.442695, %v6771_v46  ;;  %v4032_v2 = vmul.f32 -1.442695, %v6705_v4 }
 0x30e   :  { %v6925_v24 = vpop.eup %4439  ;;  %v2561_v25 = vand.u32 2147483648, %v6673_v37  ;;  %v6941_v43 = vadd.f32 1.0, %v4438_v53  ;;  %vm6943_vm13 = vcmp.eq.f32.partialorder %v2559_v56, 8.507059e+37  ;;  %v2568_v46 = vmul.f32 %v6817_v30, %v2567_v22 }
 0x30f   :  { %v2611_v4 = vmul.f32 %v6925_v24, %v6810_v57  ;;  %v4033_v47 = vmul.f32 -1.442695, %v6708_v15  ;;  %v2576_v45 = vand.u32 2147483648, %v6735_v32  ;;  %v2582_v22 = vsub.f32 1.0, %v2581_v18 }
 0x310   :  { %v2597_v15 = vsub.f32 1.0, %v2596_v8  ;;  %4445 = vpow2.f32 %v4034_v19  ;;  %v2558_v51 = vsel %vm6962_vm15, %v6756_v54, %v2554_v1  ;;  %v2562_v37 = vor.u32 1.1754944e-38, %v2561_v25 }
 0x311   :  { %v4442_v38 = vpop.eup %4441  ;;  %4447 = vpow2.f32 %v4032_v2  ;;  %v6978_v18 = vadd.f32 %v6817_v30, %v2568_v46  ;;  %v2574_v54 = vand.u32 2147483647, %v6735_v32  ;;  %v2612_v1 = vsub.f32 1.0, %v2611_v4  ;;  %v3980_v32 = vld [vmem:[%s8298_s1 + $0x1c8] sm:$0xf] }
 0x312   :  { %4449 = vrcp.f32 %v6941_v43  ;;  %v6985_v8 = vor.u32 1.1754944e-38, %v2576_v45  ;;  %vm2585_vm1 = vweird.f32 %v6777_v27  ;;  %v6988_v19 = vadd.f32 1.0, %v4442_v38 }
 0x313   :  { %v2188_v20 = vpop.f32.mrf.mxu0  ;;  %v2277_v59 = vpop.f32.mrf.mxu1  ;;  %4451 = vpow2.f32 %v4033_v47  ;;  %v2598_v2 = vmul.f32 %v6892_v5, %v2597_v15  ;;  %v2589_v29 = vand.u32 2147483647, %v6777_v27  ;;  %v2351_v47 = vadd.f32 %v6824_v0, %v6879_v52 }
 0x314   :  { %v6935_v50 = vadd.f32 %v2188_v20, %v8613_v33  ;;  %v6938_v28 = vadd.f32 %v2277_v59, %v6679_v41  ;;  %v6956_v41 = vsel %vm6902_vm9, %v2547_v3, %v2543_v60  ;;  %v4035_v3 = vmul.f32 -1.442695, %v6774_v10  ;;  %v1173_v56 = vpop.f32.mrf.mxu2 }
 0x315   :  { %8616 = vst [vmem:[#allocation5_spill] sm:$0xff] %v6956_v41  ;;  %v1262_v53 = vpop.f32.mrf.mxu3  ;;  %v2350_v60 = vadd.f32 %v6822_v63, %v6643_v9  ;;  %v6983_v10 = vsel %vm6943_vm13, %v2562_v37, %v2558_v51  ;;  %v2583_v63 = vmul.f32 %v6873_v11, %v2582_v22  ;;  %v2591_v59 = vand.u32 2147483648, %v6777_v27 }
 0x316   :  { %3999 = vmatmul.msk.bf16.gmra.mxu0 %vm2105_vm0, %v3977_v48  ;;  %4015 = vmatmul.msk.bf16.gmra.mxu1 %vm2105_vm0, %v3977_v48  ;;  %v6972_v48 = vpop.eup %4443  ;;  %8619 = vst [vmem:[#allocation7_spill] sm:$0xff] %v6983_v10  ;;  %4453 = vpow2.f32 %v4035_v3  ;;  %v7007_v6 = vadd.f32 %v6896_v39, %v6894_v44  ;;  %v7009_v45 = vadd.f32 %v1262_v53, %v1173_v56  ;;  %vm2586_vm4 = vweird.f32 %v6873_v11  ;;  %v4116_v39 = vld [vmem:[%s8298_s1 + $0x1d4] sm:$0xf0] }
 0x317   :  { %v6997_v33 = vmul.f32 %v6972_v48, %v6875_v16  ;;  %v4446_v46 = vpop.eup %4445  ;;  %v4036_v4 = vmul.f32 -1.442695, %v2350_v60  ;;  %vm2600_vm5 = vweird.f32 %v6789_v40  ;;  %v2613_v52 = vmul.f32 %v6925_v24, %v2612_v1  ;;  %vm7064_vm11 = vmor %vm2585_vm1, %vm2586_vm4 }
 0x318   :  { %v4448_v22 = vpop.eup %4447  ;;  %4455 = vrcp.f32 %v6988_v19  ;;  %v2584_v15 = vadd.f32 %v6873_v11, %v2583_v63  ;;  %v2592_v51 = vor.u32 1.1754944e-38, %v2591_v59  ;;  %v2599_v38 = vadd.f32 %v6892_v5, %v2598_v2 }
 0x319   :  { %v7026_v44 = vpop.eup %4449  ;;  %v7037_v56 = vadd.f32 1.0, %v4446_v46  ;;  %vm7039_vm6 = vcmp.eq.f32.partialorder %v2574_v54, 8.507059e+37  ;;  %vm7043_vm7 = vcmp.eq.f32.partialorder %v2589_v29, 8.507059e+37  ;;  %vm2601_vm8 = vweird.f32 %v6892_v5 }
 0x31a   :  { %v4452_v3 = vpop.eup %4451  ;;  %v2604_v60 = vand.u32 2147483647, %v6789_v40  ;;  %v2606_v1 = vand.u32 2147483648, %v6789_v40  ;;  %4457 = vpow2.f32 %v4036_v4  ;;  %v4037_v63 = vmul.f32 -1.442695, %v2351_v47  ;;  %vm7082_vm12 = vmor %vm2600_vm5, %vm2601_vm8 }
 0x31b   :  { %v6990_v20 = vpop.f32.mrf.mxu0  ;;  %v2279_v9 = vpop.f32.mrf.mxu1  ;;  %vm2615_vm9 = vweird.f32 %v6810_v57  ;;  %v7052_v59 = vadd.f32 1.0, %v4448_v22  ;;  %v3981_v2 = vor.u32 %v4116_v39, %v3980_v32  ;;  %v2614_v0 = vadd.f32 %v6925_v24, %v2613_v52  ;;  %v8630_v39 = vld [vmem:[#allocation57_spill] sm:$0xff] }
 0x31c   :  { %v7000_v25 = vadd.f32 %v2279_v9, %v6681_v36  ;;  %v2627_v9 = vsub.f32 1.0, %v6997_v33  ;;  %v4454_v54 = vpop.eup %4453  ;;  %v1176_v29 = vpop.f32.mrf.mxu2  ;;  %vm2616_vm10 = vweird.f32 %v6925_v24  ;;  %v2641_v14 = vmul.f32 %v7026_v44, %v6941_v43 }
 0x31d   :  { %8626 = vst [vmem:[#allocation9_spill] sm:$0xff] %v7052_v59  ;;  %v1265_v46 = vpop.f32.mrf.mxu3  ;;  %v7058_v10 = vadd.f32 1.0, %v4452_v3  ;;  %v2619_v22 = vand.u32 2147483647, %v6810_v57  ;;  %v2621_v52 = vand.u32 2147483648, %v6810_v57  ;;  %4459 = vrcp.f32 %v7037_v56  ;;  %vm7102_vm14 = vmor %vm2615_vm9, %vm2616_vm10 }
 0x31e   :  { %v4038_v32 = vmul.f32 -1.442695, %v6935_v50  ;;  %v7086_v41 = vpop.eup %4455  ;;  %4461 = vpow2.f32 %v4037_v63  ;;  %v2588_v50 = vsel %vm7064_vm11, %v6873_v11, %v2584_v15  ;;  %vm7094_vm13 = vcmp.eq.f32.partialorder %v2604_v60, 8.507059e+37 }
 0x31f   :  { %8627 = vst [vmem:[#allocation38_spill] sm:$0xff] %v7058_v10  ;;  %4463 = vrcp.f32 %v7052_v59  ;;  %v7107_v63 = vadd.f32 1.0, %v4454_v54  ;;  %v2618_v11 = vsel %vm7102_vm14, %v6925_v24, %v2614_v0  ;;  %v2607_v57 = vor.u32 1.1754944e-38, %v2606_v1 }
 0x320   :  { %v4458_v15 = vpop.eup %4457  ;;  %4465 = vrcp.f32 %v7058_v10  ;;  %vm2620_vm15 = vcmp.eq.f32.partialorder %v2619_v22, 8.507059e+37  ;;  %v2642_v60 = vsub.f32 1.0, %v2641_v14  ;;  %v7118_v54 = vmul.f32 %v7086_v41, %v6988_v19 }
 0x321   :  { %4467 = vpow2.f32 %v4038_v32  ;;  %v8637_v24 = vsel %vm7015_vm2, %v6817_v30, %v6978_v18  ;;  %v7134_v14 = vsel %vm7043_vm7, %v2592_v51, %v2588_v50  ;;  %v7145_v30 = vadd.f32 1.0, %v4458_v15 }
 0x322   :  { %v7130_v0 = vsel %vm7039_vm6, %v6985_v8, %v8637_v24  ;;  %4469 = vrcp.f32 %v7107_v63  ;;  %vm2631_vm3 = vweird.f32 %v6972_v48  ;;  %vm2630_vm1 = vweird.f32 %v6875_v16 }
 0x323   :  { %v2193_v33 = vpop.f32.mrf.mxu0  ;;  %v2282_v4 = vpop.f32.mrf.mxu1  ;;  %v2634_v53 = vand.u32 2147483647, %v6875_v16  ;;  %v2636_v37 = vand.u32 2147483648, %v6875_v16  ;;  %vm7174_vm2 = vmor %vm2630_vm1, %vm2631_vm3  ;;  %vm2645_vm4 = vweird.f32 %v6941_v43  ;;  %4471 = vrcp.f32 %v7145_v30 }
 0x324   :  { %v7073_v3 = vadd.f32 %v2193_v33, %v8630_v39  ;;  %v7076_v13 = vadd.f32 %v2282_v4, %v6812_v55  ;;  %v2603_v55 = vsel %vm7082_vm12, %v6892_v5, %v2599_v38  ;;  %v2628_v5 = vmul.f32 %v6972_v48, %v2627_v9  ;;  %v1178_v32 = vpop.f32.mrf.mxu2 }
 0x325   :  { %v2622_v38 = vor.u32 1.1754944e-38, %v2621_v52  ;;  %v7138_v1 = vsel %vm7094_vm13, %v2607_v57, %v2603_v55  ;;  %v1267_v39 = vpop.f32.mrf.mxu3  ;;  %v7168_v55 = vadd.f32 %v1265_v46, %v1176_v29  ;;  %vm2646_vm5 = vweird.f32 %v7026_v44 }
 0x326   :  { %4000 = vmatmul.msk.bf16.gmra.mxu0 %vm2105_vm0, %v3981_v2  ;;  %4016 = vmatmul.msk.bf16.gmra.mxu1 %vm2105_vm0, %v3981_v2  ;;  %v2354_v2 = vadd.f32 %v6990_v20, %v6648_v58  ;;  %v7142_v58 = vpop.eup %4459  ;;  %v7148_v18 = vadd.f32 %v6972_v48, %v2628_v5  ;;  %v4039_v20 = vmul.f32 -1.442695, %v6938_v28  ;;  %v2643_v28 = vmul.f32 %v7026_v44, %v2642_v60  ;;  %v4117_v5 = vld [vmem:[%s8298_s1 + $0x1f4] sm:$0xf0]  ;;  %vm7241_vm8 = vmor %vm2645_vm4, %vm2646_vm5 }
 0x327   :  { %v7140_v9 = vsel %vm2620_vm15, %v2622_v38, %v2618_v11  ;;  %v4462_v8 = vpop.eup %4461  ;;  %v2765_v50 = vmul.f32 %v7142_v58, %v7037_v56  ;;  %v7170_v16 = vadd.f32 %v1267_v39, %v1178_v32  ;;  %v3984_v11 = vld [vmem:[%s8298_s1 + $0x1e8] sm:$0xf]  ;;  %vm7197_vm6 = vcmp.eq.f32.partialorder %v2634_v53, 8.507059e+37 }
 0x328   :  { %v7157_v4 = vpop.eup %4463  ;;  %v4040_v22 = vmul.f32 -1.442695, %v2354_v2  ;;  %v7180_v40 = vadd.f32 1.0, %v4462_v8  ;;  %v2633_v29 = vsel %vm7174_vm2, %v6972_v48, %v7148_v18  ;;  %4473 = vpow2.f32 %v4039_v20 }
 0x329   :  { %8638 = vst [vmem:[#allocation39_spill] sm:$0xff] %v7157_v4  ;;  %v7164_v27 = vpop.eup %4465  ;;  %v7189_v46 = vmul.f32 %v7157_v4, %v7052_v59  ;;  %v2637_v48 = vor.u32 1.1754944e-38, %v2636_v37  ;;  %v2775_v38 = vand.u32 2147483648, %v7037_v56  ;;  %v4041_v60 = vmul.f32 -1.442695, %v7000_v25 }
 0x32a   :  { %8639 = vst [vmem:[#allocation29_spill] sm:$0xff] %v7164_v27  ;;  %4475 = vpow2.f32 %v4040_v22  ;;  %v2644_v2 = vadd.f32 %v7026_v44, %v2643_v28  ;;  %v7208_v24 = vmul.f32 %v7164_v27, %v7058_v10  ;;  %v2766_v18 = vsub.f32 1.0, %v2765_v50 }
 0x32b   :  { %v7152_v36 = vpop.f32.mrf.mxu0  ;;  %v2284_v51 = vpop.f32.mrf.mxu1  ;;  %8642 = vst [vmem:[#allocation30_spill] sm:$0xff] %v7189_v46  ;;  %v2790_v8 = vand.u32 2147483648, %v7107_v63  ;;  %4477 = vrcp.f32 %v7180_v40  ;;  %v2649_v53 = vand.u32 2147483647, %v6941_v43  ;;  %v2651_v37 = vand.u32 2147483648, %v6941_v43 }
 0x32c   :  { %v7161_v52 = vadd.f32 %v2284_v51, %v6814_v35  ;;  %v4468_v35 = vpop.eup %4467  ;;  %8645 = vst [vmem:[#allocation43_spill] sm:$0xff] %v7208_v24  ;;  %v3985_v51 = vor.u32 %v4117_v5, %v3984_v11  ;;  %vm2769_vm7 = vweird.f32 %v7037_v56  ;;  %v4042_v32 = vmul.f32 -1.442695, %v7073_v3 }
 0x32d   :  { %v7201_v57 = vpop.eup %4469  ;;  %v7211_v20 = vadd.f32 1.0, %v4468_v35  ;;  %v2773_v50 = vand.u32 2147483647, %v7037_v56  ;;  %v7224_v35 = vor.u32 1.1754944e-38, %v2775_v38  ;;  %4479 = vpow2.f32 %v4041_v60 }
 0x32e   :  { %v2780_v22 = vmul.f32 %v7201_v57, %v7107_v63  ;;  %v7222_v33 = vpop.eup %4471  ;;  %v2767_v3 = vmul.f32 %v7142_v58, %v2766_v18  ;;  %v7234_v10 = vor.u32 1.1754944e-38, %v2790_v8  ;;  %v2788_v60 = vand.u32 2147483647, %v7107_v63 }
 0x32f   :  { %v4474_v25 = vpop.eup %4473  ;;  %4481 = vrcp.f32 %v7211_v20  ;;  %v7251_v18 = vsel %vm7197_vm6, %v2637_v48, %v2633_v29  ;;  %v2648_v43 = vsel %vm7241_vm8, %v7026_v44, %v2644_v2  ;;  %vm7260_vm9 = vcmp.eq.f32.partialorder %v2773_v50, 8.507059e+37  ;;  %v1181_v48 = vpop.f32.mrf.mxu2 }
 0x330   :  { %8648 = vst [vmem:[#allocation44_spill] sm:$0xff] %v7251_v18  ;;  %v2781_v8 = vsub.f32 1.0, %v2780_v22  ;;  %4483 = vpow2.f32 %v4042_v32  ;;  %v2820_v29 = vand.u32 2147483648, %v7180_v40  ;;  %v7267_v15 = vadd.f32 1.0, %v4474_v25  ;;  %v1270_v44 = vpop.f32.mrf.mxu3 }
 0x331   :  { %v2652_v2 = vor.u32 1.1754944e-38, %v2651_v37  ;;  %vm2770_vm10 = vweird.f32 %v7142_v58  ;;  %vm2784_vm11 = vweird.f32 %v7107_v63  ;;  %vm2785_vm12 = vweird.f32 %v7201_v57 }
 0x332   :  { %vm7294_vm13 = vmor %vm2769_vm7, %vm2770_vm10  ;;  %4485 = vrcp.f32 %v7267_v15  ;;  %vm2799_vm14 = vweird.f32 %v7145_v30  ;;  %vm7312_vm15 = vcmp.eq.f32.partialorder %v2788_v60, 8.507059e+37  ;;  %vm2800_vm3 = vweird.f32 %v7222_v33 }
 0x333   :  { %v2198_v39 = vpop.f32.mrf.mxu0  ;;  %v2287_v28 = vpop.f32.mrf.mxu1  ;;  %vm7343_vm2 = vmor %vm2784_vm11, %vm2785_vm12  ;;  %vm2814_vm5 = vweird.f32 %v7180_v40  ;;  %vm2829_vm8 = vweird.f32 %v7211_v20  ;;  %vm2844_vm11 = vweird.f32 %v7267_v15 }
 0x334   :  { %v7227_v11 = vadd.f32 %v2198_v39, %v6227_v21  ;;  %v7230_v5 = vadd.f32 %v2287_v28, %v7007_v6  ;;  %v4476_v21 = vpop.eup %4475  ;;  %v2805_v6 = vand.u32 2147483648, %v7145_v30  ;;  %v2795_v39 = vmul.f32 %v7222_v33, %v7145_v30  ;;  %vm7379_vm6 = vmor %vm2799_vm14, %vm2800_vm3 }
 0x335   :  { %v2358_v28 = vadd.f32 %v7152_v36, %v6652_v34  ;;  %v7264_v47 = vpop.eup %4477  ;;  %v7271_v22 = vadd.f32 1.0, %v4476_v21  ;;  %v2768_v34 = vadd.f32 %v7142_v58, %v2767_v3  ;;  %v8651_v36 = vsub.f32 1.0, %v7118_v54 }
 0x336   :  { %4001 = vmatmul.msk.bf16.gmra.mxu0 %vm2105_vm0, %v3985_v51  ;;  %4017 = vmatmul.msk.bf16.gmra.mxu1 %vm2105_vm0, %v3985_v51  ;;  %vm2650_vm0 = vcmp.eq.f32.partialorder %v2649_v53, 8.507059e+37  ;;  %v4480_v50 = vpop.eup %4479  ;;  %v7278_v25 = vor.u32 1.1754944e-38, %v2805_v6  ;;  %v4043_v53 = vmul.f32 -1.442695, %v7076_v13  ;;  %v2782_v21 = vmul.f32 %v7201_v57, %v2781_v8 }
 0x337   :  { %v2658_v32 = vmul.f32 %v7086_v41, %v8651_v36  ;;  %v7281_v37 = vsel %vm2650_vm0, %v2652_v2, %v2648_v43  ;;  %v7283_v38 = vpop.eup %4481  ;;  %v2796_v59 = vsub.f32 1.0, %v2795_v39  ;;  %v2810_v3 = vmul.f32 %v7264_v47, %v7180_v40 }
 0x338   :  { %8652 = vst [vmem:[#allocation49_spill] sm:$0xff] %v7281_v37  ;;  %v4044_v54 = vmul.f32 -1.442695, %v2358_v28  ;;  %v7298_v6 = vor.u32 1.1754944e-38, %v2820_v29  ;;  %v2803_v8 = vand.u32 2147483647, %v7145_v30  ;;  %v4484_v39 = vpop.eup %4483  ;;  %4487 = vrcp.f32 %v7271_v22 }
 0x339   :  { %v7307_v28 = vadd.f32 1.0, %v4480_v50  ;;  %v2772_v56 = vsel %vm7294_vm13, %v7142_v58, %v2768_v34  ;;  %v7316_v2 = vadd.f32 %v1270_v44, %v1181_v48  ;;  %v2850_v37 = vand.u32 2147483648, %v7267_v15 }
 0x33a   :  { %4489 = vpow2.f32 %v4043_v53  ;;  %v2797_v50 = vmul.f32 %v7222_v33, %v2796_v59  ;;  %v2811_v24 = vsub.f32 1.0, %v2810_v3  ;;  %v2783_v58 = vadd.f32 %v7201_v57, %v2782_v21  ;;  %v7337_v53 = vpop.eup %4485 }
 0x33b   :  { %v7288_v27 = vpop.f32.mrf.mxu0  ;;  %v2289_v36 = vpop.f32.mrf.mxu1  ;;  %4491 = vpow2.f32 %v4044_v54  ;;  %v7324_v60 = vadd.f32 1.0, %v4484_v39  ;;  %v2777_v48 = vsel %vm7260_vm9, %v7224_v35, %v2772_v56  ;;  %v2818_v44 = vand.u32 2147483647, %v7180_v40  ;;  %v8662_v56 = vld [vmem:[#allocation36_spill] sm:$0xff] }
 0x33c   :  { %v7302_v43 = vadd.f32 %v2289_v36, %v7009_v45  ;;  %v2825_v45 = vmul.f32 %v7283_v38, %v7211_v20  ;;  %v2835_v36 = vand.u32 2147483648, %v7211_v20  ;;  %v7331_v34 = vadd.f32 %v7086_v41, %v2658_v32  ;;  %v1272_v54 = vpop.f32.mrf.mxu3 }
 0x33d   :  { %vm2815_vm1 = vweird.f32 %v7264_v47  ;;  %4493 = vrcp.f32 %v7307_v28  ;;  %v4045_v59 = vmul.f32 -1.442695, %v7161_v52  ;;  %v7349_v21 = vor.u32 1.1754944e-38, %v2850_v37  ;;  %v1183_v52 = vpop.f32.mrf.mxu2 }
 0x33e   :  { %8657 = vst [vmem:[#allocation50_spill] sm:$0xff] %v7331_v34  ;;  %v2826_v51 = vsub.f32 1.0, %v2825_v45  ;;  %v7347_v32 = vor.u32 1.1754944e-38, %v2835_v36  ;;  %vm7351_vm4 = vcmp.eq.f32.partialorder %v2803_v8, 8.507059e+37  ;;  %v7355_v13 = vpop.eup %4487  ;;  %v2812_v39 = vmul.f32 %v7264_v47, %v2811_v24  ;;  %vm7433_vm0 = vmor %vm2814_vm5, %vm2815_vm1 }
 0x33f   :  { %v7360_v34 = vmul.f32 %v2777_v48, %v8662_v56  ;;  %v2787_v37 = vsel %vm7343_vm2, %v7201_v57, %v2783_v58  ;;  %v2798_v8 = vadd.f32 %v7222_v33, %v2797_v50  ;;  %4495 = vrcp.f32 %v7324_v60 }
 0x340   :  { %v4490_v36 = vpop.eup %4489  ;;  %v4046_v4 = vmul.f32 -1.442695, %v7227_v11  ;;  %v2840_v48 = vmul.f32 %v7337_v53, %v7267_v15  ;;  %v2865_v56 = vand.u32 2147483648, %v7271_v22  ;;  %4497 = vpow2.f32 %v4045_v59 }
 0x341   :  { %v4492_v18 = vpop.eup %4491  ;;  %v7373_v35 = vadd.f32 %v1272_v54, %v1183_v52  ;;  %v2792_v11 = vsel %vm7312_vm15, %v7234_v10, %v2787_v37  ;;  %v7392_v58 = vmul.f32 %v7355_v13, %v7271_v22  ;;  %v7394_v30 = vadd.f32 1.0, %v4490_v36 }
 0x342   :  { %v2802_v59 = vsel %vm7379_vm6, %v7222_v33, %v2798_v8  ;;  %vm7399_vm7 = vcmp.eq.f32.partialorder %v2818_v44, 8.507059e+37  ;;  %vm2830_vm9 = vweird.f32 %v7283_v38  ;;  %v7405_v10 = vadd.f32 1.0, %v4492_v18  ;;  %v8667_v18 = vld [vmem:[#allocation37_spill] sm:$0xff] }
 0x343   :  { %v2203_v63 = vpop.f32.mrf.mxu0  ;;  %v2292_v45 = vpop.f32.mrf.mxu1  ;;  %v2362_v29 = vadd.f32 %v7288_v27, %v6656_v61  ;;  %v2841_v52 = vsub.f32 1.0, %v2840_v48  ;;  %v4047_v54 = vmul.f32 -1.442695, %v7230_v5  ;;  %v2813_v33 = vadd.f32 %v7264_v47, %v2812_v39  ;;  %vm7468_vm12 = vmor %vm2829_vm8, %vm2830_vm9 }
 0x344   :  { %v2364_v24 = vadd.f32 %v2203_v63, %v6342_v7  ;;  %v2365_v46 = vadd.f32 %v2292_v45, %v7168_v55  ;;  %v2827_v7 = vmul.f32 %v7283_v38, %v2826_v51  ;;  %v2880_v55 = vand.u32 2147483648, %v7307_v28  ;;  %v7388_v50 = vpop.eup %4493  ;;  %v1275_v27 = vpop.f32.mrf.mxu3 }
 0x345   :  { %v7413_v44 = vpop.eup %4495  ;;  %v2870_v63 = vmul.f32 %v7388_v50, %v7307_v28  ;;  %v3325_v37 = vmul.f32 %v2792_v11, %v8667_v18  ;;  %v2807_v61 = vsel %vm7351_vm4, %v7278_v25, %v2802_v59  ;;  %v2856_v5 = vsub.f32 1.0, %v7392_v58 }
 0x346   :  { %4499 = vtanh.f32 %v2364_v24  ;;  %v7417_v45 = vor.u32 1.1754944e-38, %v2880_v55  ;;  %v4498_v8 = vpop.eup %4497  ;;  %v2895_v39 = vand.u32 2147483648, %v7324_v60  ;;  %v7427_v48 = vadd.f32 %v7283_v38, %v2827_v7 }
 0x347   :  { %4501 = vtanh.f32 %v2365_v46  ;;  %v7409_v46 = vor.u32 1.1754944e-38, %v2865_v56  ;;  %vm2845_vm10 = vweird.f32 %v7337_v53  ;;  %v4048_v3 = vmul.f32 -1.442695, %v2362_v29 }
 0x348   :  { %4503 = vpow2.f32 %v4046_v4  ;;  %v1186_v4 = vpop.f32.mrf.mxu2  ;;  %v2817_v40 = vsel %vm7433_vm0, %v7264_v47, %v2813_v33  ;;  %v2871_v18 = vsub.f32 1.0, %v2870_v63  ;;  %v2910_v29 = vand.u32 2147483648, %v7394_v30  ;;  %vm7518_vm2 = vmor %vm2844_vm11, %vm2845_vm10 }
 0x349   :  { %4505 = vrcp.f32 %v7394_v30  ;;  %v7445_v58 = vadd.f32 %v1275_v27, %v1186_v4  ;;  %v7455_v47 = vadd.f32 1.0, %v4498_v8  ;;  %v2822_v63 = vsel %vm7399_vm7, %v7298_v6, %v2817_v40  ;;  %v8672_v6 = vld [vmem:[#allocation51_spill] sm:$0xff] }
 0x34a   :  { %4507 = vrcp.f32 %v7405_v10  ;;  %vm2860_vm13 = vweird.f32 %v7355_v13  ;;  %v3326_v51 = vmul.f32 %v2807_v61, %v8672_v6  ;;  %v2857_v8 = vmul.f32 %v7355_v13, %v2856_v5  ;;  %v8673_v61 = vld [vmem:[#allocation52_spill] sm:$0xff] }
 0x34b   :  { %v2205_v36 = vpop.f32.mrf.mxu0  ;;  %v2294_v24 = vpop.f32.mrf.mxu1  ;;  %4509 = vpow2.f32 %v4047_v54  ;;  %vm2859_vm14 = vweird.f32 %v7271_v22  ;;  %vm2875_vm3 = vweird.f32 %v7388_v50  ;;  %vm2874_vm1 = vweird.f32 %v7307_v28 }
 0x34c   :  { %v4500_v56 = vpop.eup %4499  ;;  %v2366_v57 = vadd.f32 %v2205_v36, %v6664_v49  ;;  %v2367_v55 = vadd.f32 %v2294_v24, %v7170_v16  ;;  %v2842_v16 = vmul.f32 %v7337_v53, %v2841_v52  ;;  %v7475_v52 = vor.u32 1.1754944e-38, %v2895_v39  ;;  %vm7558_vm6 = vmor %vm2859_vm14, %vm2860_vm13 }
 0x34d   :  { %v4502_v7 = vpop.eup %4501  ;;  %v3340_v11 = vmul.f32 %v4500_v56, %v6781_v17  ;;  %v2833_v17 = vand.u32 2147483647, %v7211_v20  ;;  %v7484_v20 = vmul.f32 %v7388_v50, %v2871_v18  ;;  %v7486_v36 = vor.u32 1.1754944e-38, %v2910_v29  ;;  %v1277_v56 = vpop.f32.mrf.mxu3  ;;  %vm7583_vm0 = vmor %vm2874_vm1, %vm2875_vm3 }
 0x34e   :  { %v4504_v59 = vpop.eup %4503  ;;  %v3341_v49 = vmul.f32 %v4502_v7, %v6785_v12  ;;  %4511 = vtanh.f32 %v2366_v57  ;;  %v2832_v24 = vsel %vm7468_vm12, %v7283_v38, %v7427_v48  ;;  %v2843_v7 = vadd.f32 %v7337_v53, %v2842_v16 }
 0x34f   :  { %v7452_v54 = vadd.f32 %v3340_v11, %v7360_v34  ;;  %4513 = vtanh.f32 %v2367_v55  ;;  %v7462_v4 = vpop.eup %4505  ;;  %v2885_v34 = vmul.f32 %v7413_v44, %v7324_v60  ;;  %vm7494_vm15 = vcmp.eq.f32.partialorder %v2833_v17, 8.507059e+37 }
 0x350   :  { %4515 = vpow2.f32 %v4048_v3  ;;  %v7457_v33 = vadd.f32 %v3341_v49, %v3325_v37  ;;  %v7477_v37 = vadd.f32 1.0, %v4504_v59  ;;  %v7480_v27 = vpop.eup %4507  ;;  %v1188_v39 = vpop.f32.mrf.mxu2  ;;  %v3327_v3 = vmul.f32 %v2822_v63, %v8673_v61 }
 0x351   :  { %v4510_v25 = vpop.eup %4509  ;;  %v7499_v11 = vadd.f32 %v1277_v56, %v1188_v39  ;;  %4517 = vrcp.f32 %v7455_v47  ;;  %v4049_v38 = vmul.f32 -1.442695, %v7302_v43  ;;  %v2886_v29 = vsub.f32 1.0, %v2885_v34 }
 0x352   :  { %v2925_v49 = vand.u32 2147483648, %v7405_v10  ;;  %4519 = vrcp.f32 %v7477_v37  ;;  %v2900_v63 = vmul.f32 %v7462_v4, %v7394_v30  ;;  %v2837_v34 = vsel %vm7494_vm15, %v7347_v32, %v2832_v24 }
 0x353   :  { %v2208_v57 = vpop.f32.mrf.mxu0  ;;  %v2297_v55 = vpop.f32.mrf.mxu1  ;;  %v2887_v24 = vmul.f32 %v7413_v44, %v2886_v29  ;;  %vm2890_vm5 = vweird.f32 %v7413_v44  ;;  %vm2905_vm7 = vweird.f32 %v7462_v4  ;;  %vm2889_vm8 = vweird.f32 %v7324_v60 }
 0x354   :  { %v4512_v40 = vpop.eup %4511  ;;  %v2368_v48 = vadd.f32 %v2208_v57, %v6414_v23  ;;  %v2369_v59 = vadd.f32 %v2297_v55, %v7316_v2  ;;  %v2848_v23 = vand.u32 2147483647, %v7267_v15  ;;  %v2847_v15 = vsel %vm7518_vm2, %v7337_v53, %v2843_v7  ;;  %v8678_v57 = vld [vmem:[#allocation31_spill] sm:$0xff]  ;;  %vm7630_vm3 = vmor %vm2889_vm8, %vm2890_vm5 }
 0x355   :  { %v4514_v18 = vpop.eup %4513  ;;  %v3342_v16 = vmul.f32 %v4512_v40, %v6890_v42  ;;  %v7522_v42 = vadd.f32 1.0, %v4510_v25  ;;  %v7536_v39 = vor.u32 1.1754944e-38, %v2925_v49  ;;  %v2858_v25 = vadd.f32 %v7355_v13, %v2857_v8  ;;  %v1280_v55 = vpop.f32.mrf.mxu3 }
 0x356   :  { %v4516_v17 = vpop.eup %4515  ;;  %v3343_v43 = vmul.f32 %v4514_v18, %v6900_v26  ;;  %4521 = vtanh.f32 %v2368_v48  ;;  %v2915_v26 = vmul.f32 %v7480_v27, %v7405_v10  ;;  %v2901_v61 = vsub.f32 1.0, %v2900_v63 }
 0x357   :  { %v7524_v12 = vadd.f32 %v3342_v16, %v3326_v51  ;;  %4523 = vtanh.f32 %v2369_v59  ;;  %v2940_v51 = vand.u32 2147483648, %v7455_v47  ;;  %v7539_v56 = vadd.f32 1.0, %v4516_v17  ;;  %v7542_v32 = vpop.eup %4517 }
 0x358   :  { %4525 = vpow2.f32 %v4049_v38  ;;  %v7531_v6 = vadd.f32 %v3343_v43, %v3327_v3  ;;  %v3328_v3 = vmul.f32 %v2837_v34, %v8678_v57  ;;  %vm2849_vm4 = vcmp.eq.f32.partialorder %v2848_v23, 8.507059e+37  ;;  %v1191_v5 = vpop.f32.mrf.mxu2  ;;  %v7546_v40 = vpop.eup %4519 }
 0x359   :  { %4527 = vrcp.f32 %v7522_v42  ;;  %v2852_v53 = vsel %vm2849_vm4, %v7349_v21, %v2847_v15  ;;  %v2863_v8 = vand.u32 2147483647, %v7271_v22  ;;  %v7552_v48 = vadd.f32 %v1280_v55, %v1191_v5 }
 0x35a   :  { %v2916_v29 = vsub.f32 1.0, %v2915_v26  ;;  %v2873_v16 = vadd.f32 %v7388_v50, %v7484_v20  ;;  %v2930_v22 = vmul.f32 %v7542_v32, %v7455_v47  ;;  %4529 = vrcp.f32 %v7539_v56  ;;  %v8682_v20 = vld [vmem:[#allocation5_spill] sm:$0xff] }
 0x35b   :  { %v2210_v7 = vpop.f32.mrf.mxu0  ;;  %v2299_v38 = vpop.f32.mrf.mxu1  ;;  %v2862_v43 = vsel %vm7558_vm6, %v7355_v13, %v2858_v25  ;;  %vm2904_vm9 = vweird.f32 %v7394_v30  ;;  %v2878_v34 = vand.u32 2147483647, %v7307_v28  ;;  %v7587_v26 = vor.u32 1.1754944e-38, %v2940_v51 }
 0x35c   :  { %v4522_v59 = vpop.eup %4521  ;;  %v2370_v21 = vadd.f32 %v2210_v7, %v6668_v31  ;;  %v2371_v49 = vadd.f32 %v2299_v38, %v7373_v35  ;;  %v8681_v35 = vld [vmem:[#allocation28_spill] sm:$0xff]  ;;  %vm2864_vm10 = vcmp.eq.f32.partialorder %v2863_v8, 8.507059e+37  ;;  %v2902_v15 = vmul.f32 %v7462_v4, %v2901_v61  ;;  %vm7641_vm1 = vmor %vm2904_vm9, %vm2905_vm7 }
 0x35d   :  { %v4524_v17 = vpop.eup %4523  ;;  %v3344_v63 = vmul.f32 %v4522_v59, %v6909_v62  ;;  %v3329_v23 = vmul.f32 %v2852_v53, %v8681_v35  ;;  %v2867_v57 = vsel %vm2864_vm10, %v7409_v46, %v2862_v43  ;;  %v2877_v28 = vsel %vm7583_vm0, %v7388_v50, %v2873_v16  ;;  %v1282_v8 = vpop.f32.mrf.mxu3  ;;  %v8685_v38 = vld [vmem:[#allocation40_spill] sm:$0xff] }
 0x35e   :  { %v4526_v31 = vpop.eup %4525  ;;  %v3345_v2 = vmul.f32 %v4524_v17, %v8682_v20  ;;  %4531 = vtanh.f32 %v2370_v21  ;;  %vm2920_vm11 = vweird.f32 %v7480_v27  ;;  %v2945_v51 = vmul.f32 %v7546_v40, %v7477_v37 }
 0x35f   :  { %v7589_v13 = vadd.f32 %v3344_v63, %v3328_v3  ;;  %4533 = vtanh.f32 %v2371_v49  ;;  %v7598_v5 = vpop.eup %4527  ;;  %v2955_v3 = vand.u32 2147483648, %v7477_v37  ;;  %v7604_v55 = vadd.f32 1.0, %v4526_v31  ;;  %v8686_v63 = vld [vmem:[#allocation8_spill] sm:$0xff] }
 0x360   :  { %v7592_v25 = vadd.f32 %v3345_v2, %v3329_v23  ;;  %v2917_v61 = vmul.f32 %v7480_v27, %v2916_v29  ;;  %v2931_v53 = vsub.f32 1.0, %v2930_v22  ;;  %v2970_v46 = vand.u32 2147483648, %v7522_v42  ;;  %v1193_v7 = vpop.f32.mrf.mxu2  ;;  %v7608_v50 = vpop.eup %4529 }
 0x361   :  { %vm2879_vm12 = vcmp.eq.f32.partialorder %v2878_v34, 8.507059e+37  ;;  %vm2919_vm13 = vweird.f32 %v7405_v10  ;;  %vm2935_vm14 = vweird.f32 %v7542_v32  ;;  %v3330_v59 = vmul.f32 %v2867_v57, %v8685_v38 }
 0x362   :  { %v2882_v18 = vsel %vm2879_vm12, %v7417_v45, %v2877_v28  ;;  %v2888_v49 = vadd.f32 %v7413_v44, %v2887_v24  ;;  %v7615_v16 = vadd.f32 %v1282_v8, %v1193_v7  ;;  %v2960_v22 = vmul.f32 %v7598_v5, %v7522_v42  ;;  %v8687_v24 = vld [vmem:[#allocation7_spill] sm:$0xff]  ;;  %vm7678_vm6 = vmor %vm2919_vm13, %vm2920_vm11 }
 0x363   :  { %v2213_v21 = vpop.f32.mrf.mxu0  ;;  %v2302_v29 = vpop.f32.mrf.mxu1  ;;  %v2903_v35 = vadd.f32 %v7462_v4, %v2902_v15  ;;  %vm2934_vm15 = vweird.f32 %v7455_v47  ;;  %v2946_v45 = vsub.f32 1.0, %v2945_v51  ;;  %4535 = vrcp.f32 %v7604_v55 }
 0x364   :  { %v4532_v17 = vpop.eup %4531  ;;  %v2372_v43 = vadd.f32 %v2213_v21, %v8686_v63  ;;  %v2373_v31 = vadd.f32 %v2302_v29, %v7445_v58  ;;  %v2893_v2 = vand.u32 2147483647, %v7324_v60  ;;  %v8690_v58 = vld [vmem:[#allocation56_spill] sm:$0xff]  ;;  %v2908_v57 = vand.u32 2147483647, %v7394_v30  ;;  %vm7696_vm8 = vmor %vm2934_vm15, %vm2935_vm14 }
 0x365   :  { %v4534_v23 = vpop.eup %4533  ;;  %v3346_v20 = vmul.f32 %v4532_v17, %v8687_v24  ;;  %v3331_v62 = vmul.f32 %v2882_v18, %v8690_v58  ;;  %v2932_v60 = vmul.f32 %v7542_v32, %v2931_v53  ;;  %v2892_v7 = vsel %vm7630_vm3, %v7413_v44, %v2888_v49  ;;  %v1285_v17 = vpop.f32.mrf.mxu3 }
 0x366   :  { %v3347_v15 = vmul.f32 %v4534_v23, %v7130_v0  ;;  %4537 = vtanh.f32 %v2372_v43  ;;  %v2961_v0 = vsub.f32 1.0, %v2960_v22  ;;  %v2975_v8 = vmul.f32 %v7608_v50, %v7539_v56  ;;  %v8695_v23 = vld [vmem:[#allocation27_spill] sm:$0xff] }
 0x367   :  { %v7646_v51 = vadd.f32 %v3346_v20, %v3330_v59  ;;  %4539 = vtanh.f32 %v2373_v31  ;;  %v2907_v30 = vsel %vm7641_vm1, %v7462_v4, %v2903_v35  ;;  %v7658_v18 = vor.u32 1.1754944e-38, %v2955_v3 }
 0x368   :  { %v7653_v38 = vadd.f32 %v3347_v15, %v3331_v62  ;;  %v7660_v53 = vor.u32 1.1754944e-38, %v2970_v46  ;;  %vm2894_vm2 = vcmp.eq.f32.partialorder %v2893_v2, 8.507059e+37  ;;  %v2918_v59 = vadd.f32 %v7480_v27, %v2917_v61  ;;  %v1196_v29 = vpop.f32.mrf.mxu2  ;;  %v8696_v2 = vld [vmem:[#allocation32_spill] sm:$0xff] }
 0x369   :  { %v2947_v44 = vmul.f32 %v7546_v40, %v2946_v45  ;;  %vm2949_vm4 = vweird.f32 %v7477_v37  ;;  %v2985_v21 = vand.u32 2147483648, %v7539_v56  ;;  %v2897_v49 = vsel %vm2894_vm2, %v7475_v52, %v2892_v7  ;;  %v7667_v22 = vpop.eup %4535 }
 0x36a   :  { %vm2909_vm5 = vcmp.eq.f32.partialorder %v2908_v57, 8.507059e+37  ;;  %v2923_v46 = vand.u32 2147483647, %v7405_v10  ;;  %v2933_v61 = vadd.f32 %v7542_v32, %v2932_v60  ;;  %v7672_v43 = vadd.f32 %v1285_v17, %v1196_v29  ;;  %v8699_v57 = vld [vmem:[#allocation41_spill] sm:$0xff] }
 0x36b   :  { %v2912_v4 = vsel %vm2909_vm5, %v7486_v36, %v2907_v30  ;;  %v2215_v3 = vpop.f32.mrf.mxu0  ;;  %v2304_v63 = vpop.f32.mrf.mxu1  ;;  %v2962_v35 = vmul.f32 %v7598_v5, %v2961_v0  ;;  %vm2964_vm7 = vweird.f32 %v7522_v42  ;;  %v2976_v36 = vsub.f32 1.0, %v2975_v8 }
 0x36c   :  { %v4538_v31 = vpop.eup %4537  ;;  %v2374_v45 = vadd.f32 %v2215_v3, %v8695_v23  ;;  %v2375_v24 = vadd.f32 %v2304_v63, %v7499_v11  ;;  %v3332_v34 = vmul.f32 %v2897_v49, %v8696_v2  ;;  %v2922_v10 = vsel %vm7678_vm6, %v7480_v27, %v2918_v59  ;;  %v8702_v49 = vld [vmem:[#allocation42_spill] sm:$0xff]  ;;  %v8742_v2 = vld [vmem:[#allocation16_spill] sm:$0xff] }
 0x36d   :  { %v4540_v20 = vpop.eup %4539  ;;  %v3348_v58 = vmul.f32 %v4538_v31, %v7134_v14  ;;  %v2938_v62 = vand.u32 2147483647, %v7455_v47  ;;  %v2990_v11 = vmul.f32 %v7667_v22, %v7604_v55  ;;  %v3333_v28 = vmul.f32 %v2912_v4, %v8699_v57  ;;  %v8703_v3 = vld [vmem:[#allocation10_spill] sm:$0xff] }
 0x36e   :  { %v3349_v14 = vmul.f32 %v4540_v20, %v7138_v1  ;;  %4541 = vtanh.f32 %v2374_v45  ;;  %vm2660_vm9 = vweird.f32 %v6988_v19  ;;  %vm2924_vm0 = vcmp.eq.f32.partialorder %v2923_v46, 8.507059e+37 }
 0x36f   :  { %v7705_v27 = vadd.f32 %v3348_v58, %v3332_v34  ;;  %v2937_v47 = vsel %vm7696_vm8, %v7542_v32, %v2933_v61  ;;  %4543 = vtanh.f32 %v2375_v24  ;;  %vm2950_vm10 = vweird.f32 %v7546_v40  ;;  %v8710_v34 = vld [vmem:[#allocation30_spill] sm:$0xff] }
 0x370   :  { %v7711_v60 = vadd.f32 %v3349_v14, %v3333_v28  ;;  %v2927_v7 = vsel %vm2924_vm0, %v7536_v39, %v2922_v10  ;;  %v2948_v0 = vadd.f32 %v7546_v40, %v2947_v44  ;;  %vm2965_vm11 = vweird.f32 %v7598_v5  ;;  %vm7725_vm14 = vmor %vm2949_vm4, %vm2950_vm10  ;;  %v8712_v10 = vld [vmem:[#allocation39_spill] sm:$0xff] }
 0x371   :  { %v7716_v1 = vor.u32 1.1754944e-38, %v2985_v21  ;;  %vm2939_vm12 = vcmp.eq.f32.partialorder %v2938_v62, 8.507059e+37  ;;  %v2953_v8 = vand.u32 2147483647, %v7477_v37  ;;  %vm2980_vm13 = vweird.f32 %v7608_v50  ;;  %vm7744_vm2 = vmor %vm2964_vm7, %vm2965_vm11  ;;  %v8714_v14 = vld [vmem:[#allocation43_spill] sm:$0xff] }
 0x372   :  { %v3000_v32 = vand.u32 2147483648, %v7604_v55  ;;  %v2942_v30 = vsel %vm2939_vm12, %v7587_v26, %v2937_v47  ;;  %v2963_v59 = vadd.f32 %v7598_v5, %v2962_v35  ;;  %v2977_v44 = vmul.f32 %v7608_v50, %v2976_v36  ;;  %v8706_v36 = vld [vmem:[#allocation21_spill] sm:$0xff] }
 0x373   :  { %vm2979_vm15 = vweird.f32 %v7539_v56  ;;  %v2991_v21 = vsub.f32 1.0, %v2990_v11  ;;  %v3334_v29 = vmul.f32 %v2927_v7, %v8702_v49  ;;  %v2218_v17 = vpop.f32.mrf.mxu0  ;;  %v2307_v4 = vpop.f32.mrf.mxu1  ;;  %vm2661_vm3 = vweird.f32 %v7086_v41  ;;  %v8713_v11 = vld [vmem:[#allocation50_spill] sm:$0xff]  ;;  %v8716_v7 = vld [vmem:[#allocation29_spill] sm:$0xff] }
 0x374   :  { %v4542_v26 = vpop.eup %4541  ;;  %vm2995_vm1 = vweird.f32 %v7667_v22  ;;  %v2376_v37 = vadd.f32 %v2218_v17, %v8703_v3  ;;  %v2952_v46 = vsel %vm7725_vm14, %v7546_v40, %v2948_v0  ;;  %v2377_v63 = vadd.f32 %v2307_v4, %v7552_v48  ;;  %v8707_v48 = vld [vmem:[#allocation44_spill] sm:$0xff]  ;;  %vm7764_vm6 = vmor %vm2660_vm9, %vm2661_vm3  ;;  %v8721_v4 = vld [vmem:[#allocation34_spill] sm:$0xff] }
 0x375   :  { %v2968_v61 = vand.u32 2147483647, %v7522_v42  ;;  %v4544_v31 = vpop.eup %4543  ;;  %v3350_v35 = vmul.f32 %v4542_v26, %v7140_v9  ;;  %v3335_v23 = vmul.f32 %v2942_v30, %v8706_v36  ;;  %vm2954_vm4 = vcmp.eq.f32.partialorder %v2953_v8, 8.507059e+37  ;;  %v8717_v8 = vld [vmem:[#allocation33_spill] sm:$0xff]  ;;  %vm7793_vm10 = vmor %vm2979_vm15, %vm2980_vm13  ;;  %v8722_v3 = vld [vmem:[#allocation3_spill] sm:$0xff] }
 0x376   :  { %v2666_v40 = vand.u32 2147483648, %v6988_v19  ;;  %vm2994_vm5 = vweird.f32 %v7604_v55  ;;  %v3351_v45 = vmul.f32 %v4544_v31, %v8707_v48  ;;  %4545 = vtanh.f32 %v2376_v37  ;;  %v8723_v31 = vld [vmem:[#allocation49_spill] sm:$0xff] }
 0x377   :  { %v2664_v24 = vand.u32 2147483647, %v6988_v19  ;;  %v2967_v42 = vsel %vm7744_vm2, %v7598_v5, %v2963_v59  ;;  %v7757_v20 = vadd.f32 %v3350_v35, %v3334_v29  ;;  %v2957_v9 = vsel %vm2954_vm4, %v7658_v18, %v2952_v46  ;;  %v8718_v59 = vld [vmem:[#allocation9_spill] sm:$0xff]  ;;  %vm7813_vm12 = vmor %vm2994_vm5, %vm2995_vm1 }
 0x378   :  { %4547 = vtanh.f32 %v2377_v63  ;;  %v8711_v58 = vsub.f32 1.0, %v8710_v34  ;;  %v2992_v15 = vmul.f32 %v7667_v22, %v2991_v21  ;;  %v7772_v5 = vadd.f32 %v3351_v45, %v3335_v23 }
 0x379   :  { %v2663_v18 = vsel %vm7764_vm6, %v7086_v41, %v8713_v11  ;;  %vm2969_vm7 = vcmp.eq.f32.partialorder %v2968_v61, 8.507059e+37  ;;  %v2667_v19 = vor.u32 1.1754944e-38, %v2666_v40  ;;  %v2978_v28 = vadd.f32 %v7608_v50, %v2977_v44 }
 0x37a   :  { %v2673_v62 = vmul.f32 %v8712_v10, %v8711_v58  ;;  %v2972_v57 = vsel %vm2969_vm7, %v7660_v53, %v2967_v42  ;;  %v8715_v47 = vsub.f32 1.0, %v8714_v14  ;;  %v3336_v30 = vmul.f32 %v2957_v9, %v8717_v8  ;;  %v1287_v42 = vpop.f32.mrf.mxu3 }
 0x37b   :  { %vm2665_vm8 = vcmp.eq.f32.partialorder %v2664_v24, 8.507059e+37  ;;  %vm2675_vm9 = vweird.f32 %v8718_v59  ;;  %vm2676_vm0 = vweird.f32 %v8712_v10  ;;  %v2220_v21 = vpop.f32.mrf.mxu0  ;;  %v2679_v49 = vand.u32 2147483647, %v8718_v59  ;;  %v2309_v44 = vpop.f32.mrf.mxu1 }
 0x37c   :  { %v2688_v0 = vmul.f32 %v8716_v7, %v8715_v47  ;;  %v2668_v39 = vsel %vm2665_vm8, %v2667_v19, %v2663_v18  ;;  %v2674_v41 = vadd.f32 %v8712_v10, %v2673_v62  ;;  %v2681_v53 = vand.u32 2147483648, %v8718_v59  ;;  %v4546_v29 = vpop.eup %4545  ;;  %v1198_v24 = vpop.f32.mrf.mxu2  ;;  %vm7827_vm14 = vmor %vm2675_vm9, %vm2676_vm0 }
 0x37d   :  { %v3337_v26 = vmul.f32 %v2972_v57, %v8721_v4  ;;  %v2378_v37 = vadd.f32 %v2220_v21, %v8722_v3  ;;  %v2379_v46 = vadd.f32 %v2309_v44, %v7615_v16  ;;  %v2993_v63 = vadd.f32 %v7667_v22, %v2992_v15 }
 0x37e   :  { %v4548_v61 = vpop.eup %4547  ;;  %v3352_v52 = vmul.f32 %v4546_v29, %v8723_v31  ;;  %v2982_v35 = vsel %vm7793_vm10, %v7608_v50, %v2978_v28  ;;  %v2983_v36 = vand.u32 2147483647, %v7539_v56  ;;  %v2689_v23 = vadd.f32 %v8716_v7, %v2688_v0  ;;  %v8726_v50 = vld [vmem:[#allocation38_spill] sm:$0xff]  ;;  %v8731_v0 = vld [vmem:[#allocation11_spill] sm:$0xff] }
 0x37f   :  { %v3353_v40 = vmul.f32 %v4548_v61, %v2668_v39  ;;  %4549 = vtanh.f32 %v2378_v37  ;;  %vm2691_vm11 = vweird.f32 %v8716_v7  ;;  %v2998_v48 = vand.u32 2147483647, %v7604_v55  ;;  %v8732_v39 = vld [vmem:[#allocation47_spill] sm:$0xff]  ;;  %v8735_v61 = vld [vmem:[#allocation13_spill] sm:$0xff] }
 0x380   :  { %v7817_v45 = vadd.f32 %v3352_v52, %v3336_v30  ;;  %vm2690_vm13 = vweird.f32 %v8726_v50  ;;  %v2696_v56 = vand.u32 2147483648, %v8726_v50  ;;  %4551 = vtanh.f32 %v2379_v46 }
 0x381   :  { %v7821_v9 = vadd.f32 %v3353_v40, %v3337_v26  ;;  %v2694_v34 = vand.u32 2147483647, %v8726_v50  ;;  %v2997_v58 = vsel %vm7813_vm12, %v7667_v22, %v2993_v63  ;;  %v1288_v62 = vadd.f32 %v1287_v42, %v1198_v24  ;;  %vm7842_vm3 = vmor %vm2690_vm13, %vm2691_vm11  ;;  %v8734_v63 = vld [vmem:[#allocation12_spill] sm:$0xff] }
 0x382   :  { %v3001_v15 = vor.u32 1.1754944e-38, %v3000_v32  ;;  %v2678_v11 = vsel %vm7827_vm14, %v8712_v10, %v2674_v41  ;;  %vm2984_vm15 = vcmp.eq.f32.partialorder %v2983_v36, 8.507059e+37  ;;  %v2682_v19 = vor.u32 1.1754944e-38, %v2681_v53  ;;  %v8733_v53 = vld [vmem:[#allocation45_spill] sm:$0xff]  ;;  %v1290_v17 = vpop.f32.mrf.mxu3 }
 0x383   :  { %v2987_v57 = vsel %vm2984_vm15, %v7716_v1, %v2982_v35  ;;  %v2693_v22 = vsel %vm7842_vm3, %v8716_v7, %v2689_v23  ;;  %vm2999_vm1 = vcmp.eq.f32.partialorder %v2998_v48, 8.507059e+37  ;;  %vm2680_vm2 = vcmp.eq.f32.partialorder %v2679_v49, 8.507059e+37  ;;  %v2223_v28 = vpop.f32.mrf.mxu0  ;;  %v2312_v10 = vpop.f32.mrf.mxu1 }
 0x384   :  { %v2697_v55 = vor.u32 1.1754944e-38, %v2696_v56  ;;  %v3002_v32 = vsel %vm2999_vm1, %v3001_v15, %v2997_v58  ;;  %v2683_v47 = vsel %vm2680_vm2, %v2682_v19, %v2678_v11  ;;  %vm2695_vm4 = vcmp.eq.f32.partialorder %v2694_v34, 8.507059e+37  ;;  %v1201_v29 = vpop.f32.mrf.mxu2 }
 0x385   :  { %v4550_v14 = vpop.eup %4549  ;;  %v2380_v8 = vadd.f32 %v2223_v28, %v8731_v0  ;;  %v2381_v30 = vadd.f32 %v2312_v10, %v7672_v43  ;;  %v3338_v1 = vmul.f32 %v2987_v57, %v8732_v39  ;;  %v3339_v7 = vmul.f32 %v3002_v32, %v8733_v53 }
 0x386   :  { %v4552_v59 = vpop.eup %4551  ;;  %v3354_v21 = vmul.f32 %v4550_v14, %v2683_v47  ;;  %v2698_v41 = vsel %vm2695_vm4, %v2697_v55, %v2693_v22  ;;  %4553 = vtanh.f32 %v7452_v54  ;;  %v1110_v31 = vadd.f32 %v8735_v61, %v8734_v63 }
 0x387   :  { %v3355_v44 = vmul.f32 %v4552_v59, %v2698_v41  ;;  %4555 = vtanh.f32 %v7457_v33  ;;  %v1291_v23 = vadd.f32 %v1290_v17, %v1201_v29  ;;  %v4050_v33 = vmul.f32 -1.442695, %v2380_v8 }
 0x388   :  { %v7854_v49 = vadd.f32 %v3354_v21, %v3338_v1  ;;  %4557 = vtanh.f32 %v7524_v12  ;;  %v4051_v12 = vmul.f32 -1.442695, %v2381_v30 }
 0x389   :  { %v7856_v4 = vadd.f32 %v3355_v44, %v3339_v7  ;;  %4559 = vtanh.f32 %v7531_v6  ;;  %v8739_v6 = vld [vmem:[#allocation14_spill] sm:$0xff] }
 0x38a   :  { %v1292_v46 = vpop.f32.mrf.mxu3  ;;  %4561 = vtanh.f32 %v7589_v13  ;;  %v8744_v7 = vld [vmem:[#allocation18_spill] sm:$0xff] }
 0x38b   :  { %v2225_v26 = vpop.f32.mrf.mxu0  ;;  %v2314_v3 = vpop.f32.mrf.mxu1  ;;  %4563 = vtanh.f32 %v7592_v25 }
 0x38c   :  { %v2383_v37 = vadd.f32 %v2314_v3, %v1288_v62  ;;  %v1203_v43 = vpop.f32.mrf.mxu2  ;;  %v2382_v36 = vadd.f32 %v2225_v26, %v1110_v31  ;;  %v7866_v54 = vpop.eup %4553  ;;  %4565 = vtanh.f32 %v7646_v51 }
 0x38d   :  { %8736 = vst [vmem:[#allocation54_spill] sm:$0xff] %v7866_v54  ;;  %v7869_v40 = vpop.eup %4555  ;;  %4567 = vtanh.f32 %v7653_v38  ;;  %v8741_v38 = vld [vmem:[#allocation15_spill] sm:$0xff]  ;;  %v1293_v58 = vadd.f32 %v1292_v46, %v1203_v43 }
 0x38e   :  { %8737 = vst [vmem:[#allocation55_spill] sm:$0xff] %v7869_v40  ;;  %v7872_v48 = vpop.eup %4557  ;;  %4569 = vtanh.f32 %v7705_v27  ;;  %v4052_v25 = vmul.f32 -1.442695, %v2382_v36  ;;  %v1115_v34 = vadd.f32 %v8742_v2, %v8741_v38  ;;  %v4053_v27 = vmul.f32 -1.442695, %v2383_v37 }
 0x38f   :  { %8738 = vst [vmem:[#allocation17_spill] sm:$0xff] %v7872_v48  ;;  %v7876_v16 = vpop.eup %4559  ;;  %4571 = vtanh.f32 %v7711_v60 }
 0x390   :  { %8740 = vst [vmem:[#allocation19_spill] sm:$0xff] %v7876_v16  ;;  %v7879_v24 = vpop.eup %4561  ;;  %4573 = vpow2.f32 %v4050_v33 }
 0x391   :  { %v7881_v42 = vpop.eup %4563  ;;  %4575 = vpow2.f32 %v4051_v12 }
 0x392   :  { %v1295_v51 = vpop.f32.mrf.mxu3  ;;  %v7885_v62 = vpop.eup %4565  ;;  %4577 = vtanh.f32 %v7757_v20 }
 0x393   :  { %v2228_v52 = vpop.f32.mrf.mxu0  ;;  %v2317_v35 = vpop.f32.mrf.mxu1  ;;  %4579 = vpow2.f32 %v4052_v25 }
 0x394   :  { %v2384_v13 = vadd.f32 %v2228_v52, %v8739_v6  ;;  %v2385_v50 = vadd.f32 %v2317_v35, %v1291_v23  ;;  %v1206_v56 = vpop.f32.mrf.mxu2  ;;  %v7888_v18 = vpop.eup %4567  ;;  %4581 = vtanh.f32 %v7772_v5  ;;  %v8745_v52 = vld [vmem:[#allocation20_spill] sm:$0xff]  ;;  %v8746_v35 = vld [vmem:[#allocation22_spill] sm:$0xff] }
 0x395   :  { %8743 = vst [vmem:[#allocation48_spill] sm:$0xff] %v7888_v18  ;;  %v7890_v55 = vpop.eup %4569  ;;  %4583 = vpow2.f32 %v4053_v27  ;;  %v1296_v47 = vadd.f32 %v1295_v51, %v1206_v56  ;;  %v1120_v36 = vadd.f32 %v8746_v35, %v8745_v52 }
 0x396   :  { %v4054_v60 = vmul.f32 -1.442695, %v2384_v13  ;;  %v4055_v19 = vmul.f32 -1.442695, %v2385_v50  ;;  %v7893_v32 = vpop.eup %4571 }
 0x397   :  { %v4574_v14 = vpop.eup %4573 }
 0x398   :  { %4585 = vpow2.f32 %v4054_v60  ;;  %v4576_v20 = vpop.eup %4575  ;;  %v7897_v30 = vadd.f32 1.0, %v4574_v14 }
 0x399   :  { %4587 = vpow2.f32 %v4055_v19  ;;  %v7895_v0 = vpop.eup %4577  ;;  %v7902_v1 = vadd.f32 1.0, %v4576_v20 }
 0x39a   :  { %v4580_v8 = vpop.eup %4579  ;;  %v1297_v39 = vpop.f32.mrf.mxu3 }
 0x39b   :  { %v2230_v15 = vpop.f32.mrf.mxu0  ;;  %v2319_v11 = vpop.f32.mrf.mxu1  ;;  %v7907_v26 = vadd.f32 1.0, %v4580_v8 }
 0x39c   :  { %v2386_v57 = vadd.f32 %v2230_v15, %v1115_v34  ;;  %v2387_v22 = vadd.f32 %v2319_v11, %v1293_v58  ;;  %v1208_v59 = vpop.f32.mrf.mxu2  ;;  %v7899_v5 = vpop.eup %4581 }
 0x39d   :  { %v4584_v53 = vpop.eup %4583  ;;  %v1298_v33 = vadd.f32 %v1297_v39, %v1208_v59 }
 0x39e   :  { %v4056_v28 = vmul.f32 -1.442695, %v2386_v57  ;;  %v4057_v10 = vmul.f32 -1.442695, %v2387_v22  ;;  %v4586_v17 = vpop.eup %4585  ;;  %v7911_v46 = vadd.f32 1.0, %v4584_v53  ;;  %v8750_v53 = vld [vmem:[#allocation24_spill] sm:$0xff] }
 0x39f   :  { %v4588_v3 = vpop.eup %4587 }
 0x3a0   :  { %4589 = vpow2.f32 %v4056_v28 }
 0x3a1   :  { %4591 = vpow2.f32 %v4057_v10 }
 0x3a2   :  { %4593 = vtanh.f32 %v7817_v45  ;;  %v1300_v34 = vpop.f32.mrf.mxu3 }
 0x3a3   :  { %v2233_v21 = vpop.f32.mrf.mxu0  ;;  %v2322_v41 = vpop.f32.mrf.mxu1  ;;  %4595 = vtanh.f32 %v7821_v9  ;;  %v7913_v9 = vadd.f32 1.0, %v4586_v17  ;;  %v8751_v17 = vld [vmem:[#allocation25_spill] sm:$0xff] }
 0x3a4   :  { %v2388_v44 = vadd.f32 %v2233_v21, %v8744_v7  ;;  %v2389_v29 = vadd.f32 %v2322_v41, %v1296_v47  ;;  %4597 = vtanh.f32 %v7854_v49  ;;  %v7918_v49 = vadd.f32 1.0, %v4588_v3  ;;  %v1211_v2 = vpop.f32.mrf.mxu2  ;;  %v8752_v3 = vld [vmem:[#allocation26_spill] sm:$0xff] }
 0x3a5   :  { %4599 = vrcp.f32 %v7897_v30  ;;  %v1301_v22 = vadd.f32 %v1300_v34, %v1211_v2 }
 0x3a6   :  { %v4058_v37 = vmul.f32 -1.442695, %v2388_v44  ;;  %v4059_v45 = vmul.f32 -1.442695, %v2389_v29  ;;  %v4590_v43 = vpop.eup %4589  ;;  %4601 = vrcp.f32 %v7902_v1 }
 0x3a7   :  { %v4592_v63 = vpop.eup %4591  ;;  %v7924_v23 = vadd.f32 1.0, %v4590_v43 }
 0x3a8   :  { %4603 = vpow2.f32 %v4058_v37  ;;  %v7915_v61 = vpop.eup %4593  ;;  %v7929_v6 = vadd.f32 1.0, %v4592_v63  ;;  %v1125_v37 = vadd.f32 %v8752_v3, %v8751_v17 }
 0x3a9   :  { %4605 = vrcp.f32 %v7907_v26  ;;  %v7920_v31 = vpop.eup %4595 }
 0x3aa   :  { %4607 = vpow2.f32 %v4059_v45  ;;  %v7926_v12 = vpop.eup %4597  ;;  %v1302_v34 = vpop.f32.mrf.mxu3 }
 0x3ab   :  { %4609 = vrcp.f32 %v7911_v46  ;;  %v2235_v13 = vpop.f32.mrf.mxu0  ;;  %v2324_v25 = vpop.f32.mrf.mxu1 }
 0x3ac   :  { %v7931_v50 = vpop.eup %4599  ;;  %4611 = vrcp.f32 %v7913_v9  ;;  %v2390_v56 = vadd.f32 %v2235_v13, %v1120_v36  ;;  %v2391_v51 = vadd.f32 %v2324_v25, %v1298_v33  ;;  %v1213_v2 = vpop.f32.mrf.mxu2 }
 0x3ad   :  { %v7934_v38 = vpop.eup %4601  ;;  %4613 = vrcp.f32 %v7918_v49  ;;  %v3085_v57 = vmul.f32 %v7931_v50, %v7897_v30 }
 0x3ae   :  { %8747 = vst [vmem:[#allocation35_spill] sm:$0xff] %v7934_v38  ;;  %v4604_v27 = vpop.eup %4603  ;;  %4615 = vrcp.f32 %v7924_v23  ;;  %v4060_v58 = vmul.f32 -1.442695, %v2390_v56  ;;  %v4061_v60 = vmul.f32 -1.442695, %v2391_v51  ;;  %v3100_v20 = vmul.f32 %v7934_v38, %v7902_v1 }
 0x3af   :  { %v7938_v15 = vpop.eup %4605  ;;  %4617 = vrcp.f32 %v7929_v6  ;;  %v7941_v11 = vadd.f32 1.0, %v4604_v27  ;;  %v3086_v21 = vsub.f32 1.0, %v3085_v57 }
 0x3b0   :  { %8748 = vst [vmem:[#allocation53_spill] sm:$0xff] %v7938_v15  ;;  %v4608_v19 = vpop.eup %4607  ;;  %4619 = vpow2.f32 %v4060_v58  ;;  %v3115_v41 = vmul.f32 %v7938_v15, %v7907_v26  ;;  %v3101_v52 = vsub.f32 1.0, %v3100_v20 }
 0x3b1   :  { %v7945_v28 = vpop.eup %4609  ;;  %4621 = vrcp.f32 %v7941_v11  ;;  %v7948_v10 = vadd.f32 1.0, %v4608_v19  ;;  %v7980_v58 = vmul.f32 %v7931_v50, %v3086_v21  ;;  %vm3209_vm5 = vweird.f32 %v7941_v11 }
 0x3b2   :  { %8749 = vst [vmem:[#allocation57_spill] sm:$0xff] %v7945_v28  ;;  %v7950_v14 = vpop.eup %4611  ;;  %4623 = vpow2.f32 %v4061_v60  ;;  %v3130_v43 = vmul.f32 %v7945_v28, %v7911_v46  ;;  %v3116_v60 = vsub.f32 1.0, %v3115_v41  ;;  %v1303_v41 = vadd.f32 %v1302_v34, %v1213_v2 }
 0x3b3   :  { %v7954_v47 = vpop.eup %4613  ;;  %4625 = vrcp.f32 %v7948_v10  ;;  %v2238_v8 = vpop.f32.mrf.mxu0  ;;  %vm3224_vm6 = vweird.f32 %v7948_v10  ;;  %v3228_v48 = vand.u32 2147483647, %v7948_v10 }
 0x3b4   :  { %v2327_v59 = vpop.f32.mrf.mxu1  ;;  %v7957_v39 = vpop.eup %4615  ;;  %v2392_v7 = vadd.f32 %v2238_v8, %v8750_v53  ;;  %4627 = vtanh.f32 %v7856_v4  ;;  %v3145_v4 = vmul.f32 %v7950_v14, %v7913_v9  ;;  %v3160_v19 = vmul.f32 %v7954_v47, %v7918_v49 }
 0x3b5   :  { %v2393_v44 = vadd.f32 %v2327_v59, %v1301_v22  ;;  %v7962_v29 = vpop.eup %4617  ;;  %v3131_v22 = vsub.f32 1.0, %v3130_v43  ;;  %v7992_v59 = vmul.f32 %v7934_v38, %v3101_v52  ;;  %v8005_v2 = vmul.f32 %v7938_v15, %v3116_v60 }
 0x3b6   :  { %v4620_v63 = vpop.eup %4619  ;;  %v4062_v36 = vmul.f32 -1.442695, %v2392_v7  ;;  %v3146_v7 = vsub.f32 1.0, %v3145_v4  ;;  %v3190_v17 = vmul.f32 %v7962_v29, %v7929_v6 }
 0x3b7   :  { %v4063_v33 = vmul.f32 -1.442695, %v2393_v44  ;;  %v7971_v13 = vpop.eup %4621  ;;  %v7977_v51 = vadd.f32 1.0, %v4620_v63  ;;  %8753 = vst [vmem:[#allocation36_spill] sm:$0xff] %v7992_v59  ;;  %v3175_v44 = vmul.f32 %v7957_v39, %v7924_v23  ;;  %v3161_v63 = vsub.f32 1.0, %v3160_v19 }
 0x3b8   :  { %v4624_v27 = vpop.eup %4623  ;;  %4629 = vpow2.f32 %v4062_v36  ;;  %v3205_v20 = vmul.f32 %v7971_v13, %v7941_v11  ;;  %8754 = vst [vmem:[#allocation37_spill] sm:$0xff] %v8005_v2  ;;  %v8008_v4 = vmul.f32 %v7945_v28, %v3131_v22  ;;  %vm3210_vm7 = vweird.f32 %v7971_v13 }
 0x3b9   :  { %v7984_v57 = vpop.eup %4625  ;;  %4631 = vrcp.f32 %v7977_v51  ;;  %v7989_v8 = vadd.f32 1.0, %v4624_v27  ;;  %v3176_v60 = vsub.f32 1.0, %v3175_v44  ;;  %vm3239_vm9 = vweird.f32 %v7977_v51  ;;  %vm8062_vm0 = vmor %vm3209_vm5, %vm3210_vm7 }
 0x3ba   :  { %4633 = vpow2.f32 %v4063_v33  ;;  %v7995_v53 = vpop.eup %4627  ;;  %v3220_v52 = vmul.f32 %v7984_v57, %v7948_v10  ;;  %8755 = vst [vmem:[#allocation51_spill] sm:$0xff] %v8008_v4  ;;  %v3206_v27 = vsub.f32 1.0, %v3205_v20  ;;  %vm3225_vm12 = vweird.f32 %v7984_v57 }
 0x3bb   :  { %4635 = vrcp.f32 %v7989_v8  ;;  %v2240_v3 = vpop.f32.mrf.mxu0  ;;  %vm3254_vm3 = vweird.f32 %v7989_v8  ;;  %vm8096_vm2 = vmor %vm3224_vm6, %vm3225_vm12  ;;  %vm3229_vm5 = vcmp.eq.f32.partialorder %v3228_v48, 8.507059e+37 }
 0x3bc   :  { %v2329_v43 = vpop.f32.mrf.mxu1  ;;  %v2394_v36 = vadd.f32 %v2240_v3, %v1125_v37  ;;  %v8016_v37 = vmul.f32 %v7950_v14, %v3146_v7  ;;  %v3221_v20 = vsub.f32 1.0, %v3220_v52  ;;  %v3215_v7 = vand.u32 2147483648, %v7941_v11 }
 0x3bd   :  { %v2395_v33 = vadd.f32 %v2329_v43, %v1303_v41  ;;  %v3191_v41 = vsub.f32 1.0, %v3190_v17  ;;  %v8021_v43 = vmul.f32 %v7954_v47, %v3161_v63  ;;  %v8037_v63 = vmul.f32 %v7957_v39, %v3176_v60 }
 0x3be   :  { %v4630_v56 = vpop.eup %4629  ;;  %v4064_v19 = vmul.f32 -1.442695, %v2394_v36  ;;  %v3222_v35 = vmul.f32 %v7984_v57, %v3221_v20  ;;  %v3213_v20 = vand.u32 2147483647, %v7941_v11 }
 0x3bf   :  { %v4065_v45 = vmul.f32 -1.442695, %v2395_v33  ;;  %v8013_v21 = vpop.eup %4631  ;;  %v8018_v3 = vadd.f32 1.0, %v4630_v56  ;;  %v3207_v33 = vmul.f32 %v7971_v13, %v3206_v27  ;;  %v8040_v52 = vmul.f32 %v7962_v29, %v3191_v41 }
 0x3c0   :  { %v4634_v22 = vpop.eup %4633  ;;  %v3235_v25 = vmul.f32 %v8013_v21, %v7977_v51  ;;  %4637 = vpow2.f32 %v4064_v19  ;;  %v3230_v27 = vand.u32 2147483648, %v7948_v10  ;;  %vm3214_vm13 = vcmp.eq.f32.partialorder %v3213_v20, 8.507059e+37 }
 0x3c1   :  { %v8025_v36 = vpop.eup %4635  ;;  %4639 = vrcp.f32 %v8018_v3  ;;  %v3275_v44 = vand.u32 2147483648, %v8018_v3  ;;  %v8034_v17 = vadd.f32 1.0, %v4634_v22  ;;  %v3273_v16 = vand.u32 2147483647, %v8018_v3 }
 0x3c2   :  { %v3250_v56 = vmul.f32 %v8025_v36, %v7989_v8  ;;  %4641 = vpow2.f32 %v4065_v45  ;;  %v3236_v19 = vsub.f32 1.0, %v3235_v25  ;;  %v3208_v22 = vadd.f32 %v7971_v13, %v3207_v33 }
 0x3c3   :  { %4643 = vrcp.f32 %v8034_v17  ;;  %v3290_v60 = vand.u32 2147483648, %v8034_v17  ;;  %vm3269_vm8 = vweird.f32 %v8018_v3  ;;  %v3276_v25 = vor.u32 1.1754944e-38, %v3275_v44 }
 0x3c4   :  { %v3251_v34 = vsub.f32 1.0, %v3250_v56  ;;  %v3237_v40 = vmul.f32 %v8013_v21, %v3236_v19  ;;  %v3288_v54 = vand.u32 2147483647, %v8034_v17  ;;  %vm8067_vm10 = vcmp.eq.f32.partialorder %v3273_v16, 8.507059e+37 }
 0x3c5   :  { %v3216_v19 = vor.u32 1.1754944e-38, %v3215_v7  ;;  %vm3284_vm11 = vweird.f32 %v8034_v17  ;;  %v3291_v11 = vor.u32 1.1754944e-38, %v3290_v60  ;;  %vm3240_vm7 = vweird.f32 %v8013_v21 }
 0x3c6   :  { %v4638_v41 = vpop.eup %4637  ;;  %v3252_v45 = vmul.f32 %v8025_v36, %v3251_v34  ;;  %v3212_v34 = vsel %vm8062_vm0, %v7971_v13, %v3208_v22  ;;  %vm8083_vm15 = vcmp.eq.f32.partialorder %v3288_v54, 8.507059e+37  ;;  %v3238_v10 = vadd.f32 %v8013_v21, %v3237_v40 }
 0x3c7   :  { %v4640_v56 = vpop.eup %4639  ;;  %v8058_v33 = vadd.f32 1.0, %v4638_v41  ;;  %v3223_v41 = vadd.f32 %v7984_v57, %v3222_v35  ;;  %v3217_v60 = vsel %vm3214_vm13, %v3216_v19, %v3212_v34  ;;  %v3231_v19 = vor.u32 1.1754944e-38, %v3230_v27  ;;  %vm8121_vm13 = vmor %vm3239_vm9, %vm3240_vm7 }
 0x3c8   :  { %v4642_v44 = vpop.eup %4641  ;;  %v3265_v28 = vmul.f32 %v4640_v56, %v8018_v3  ;;  %vm3270_vm14 = vweird.f32 %v4640_v56  ;;  %v3243_v54 = vand.u32 2147483647, %v7977_v51  ;;  %vm3149_vm9 = vweird.f32 %v7913_v9 }
 0x3c9   :  { %4645 = vrcp.f32 %v8058_v33  ;;  %v3305_v15 = vand.u32 2147483648, %v8058_v33  ;;  %v4644_v16 = vpop.eup %4643  ;;  %v8079_v38 = vadd.f32 1.0, %v4642_v44  ;;  %v3303_v7 = vand.u32 2147483647, %v8058_v33  ;;  %vm3271_vm6 = vmor %vm3269_vm8, %vm3270_vm14 }
 0x3ca   :  { %v3266_v2 = vsub.f32 1.0, %v3265_v28  ;;  %v3280_v13 = vmul.f32 %v4644_v16, %v8034_v17  ;;  %vm3285_vm1 = vweird.f32 %v4644_v16  ;;  %vm3299_vm4 = vweird.f32 %v8058_v33 }
 0x3cb   :  { %v8089_v28 = vor.u32 1.1754944e-38, %v3305_v15  ;;  %4647 = vrcp.f32 %v8079_v38  ;;  %v3318_v44 = vand.u32 2147483647, %v8079_v38  ;;  %v3320_v34 = vand.u32 2147483648, %v8079_v38 }
 0x3cc   :  { %v3267_v22 = vmul.f32 %v4640_v56, %v3266_v2  ;;  %v3281_v20 = vsub.f32 1.0, %v3280_v13  ;;  %v3227_v15 = vsel %vm8096_vm2, %v7984_v57, %v3223_v41  ;;  %vm8115_vm12 = vcmp.eq.f32.partialorder %v3303_v7, 8.507059e+37  ;;  %vm3286_vm2 = vmor %vm3284_vm11, %vm3285_vm1 }
 0x3cd   :  { %v8110_v18 = vor.u32 1.1754944e-38, %v3320_v34  ;;  %v3232_v27 = vsel %vm3229_vm5, %v3231_v19, %v3227_v15  ;;  %vm3314_vm8 = vweird.f32 %v8079_v38  ;;  %v3242_v7 = vsel %vm8121_vm13, %v8013_v21, %v3238_v10 }
 0x3ce   :  { %v3268_v2 = vadd.f32 %v4640_v56, %v3267_v22  ;;  %v3282_v13 = vmul.f32 %v4644_v16, %v3281_v20  ;;  %vm3244_vm14 = vcmp.eq.f32.partialorder %v3243_v54, 8.507059e+37  ;;  %v8768_v15 = vand.u32 2147483648, %v7977_v51 }
 0x3cf   :  { %v4646_v59 = vpop.eup %4645  ;;  %v3253_v19 = vadd.f32 %v8025_v36, %v3252_v45  ;;  %vm8140_vm5 = vcmp.eq.f32.partialorder %v3318_v44, 8.507059e+37  ;;  %vm3255_vm11 = vweird.f32 %v8025_v36  ;;  %v3258_v10 = vand.u32 2147483647, %v7989_v8 }
 0x3d0   :  { %v3295_v57 = vmul.f32 %v4646_v59, %v8058_v33  ;;  %vm3300_vm0 = vweird.f32 %v4646_v59  ;;  %v3272_v40 = vsel %vm3271_vm6, %v4640_v56, %v3268_v2  ;;  %v3283_v48 = vadd.f32 %v4644_v16, %v3282_v13  ;;  %vm3256_vm6 = vmor %vm3254_vm3, %vm3255_vm11 }
 0x3d1   :  { %v3277_v22 = vsel %vm8067_vm10, %v3276_v25, %v3272_v40  ;;  %v4648_v20 = vpop.eup %4647  ;;  %v3246_v2 = vor.u32 1.1754944e-38, %v8768_v15  ;;  %vm3164_vm1 = vweird.f32 %v7918_v49  ;;  %v8771_v44 = vand.u32 2147483648, %v7989_v8  ;;  %vm3301_vm7 = vmor %vm3299_vm4, %vm3300_vm0 }
 0x3d2   :  { %v3296_v56 = vsub.f32 1.0, %v3295_v57  ;;  %v3400_v34 = vmul.f32 %v7915_v61, %v3277_v22  ;;  %v3310_v4 = vmul.f32 %v4648_v20, %v8079_v38  ;;  %vm3315_vm10 = vweird.f32 %v4648_v20 }
 0x3d3   :  { %v3287_v25 = vsel %vm3286_vm2, %v4644_v16, %v3283_v48  ;;  %v3247_v51 = vsel %vm3244_vm14, %v3246_v2, %v3242_v7  ;;  %v3261_v16 = vor.u32 1.1754944e-38, %v8771_v44  ;;  %v3396_v54 = vmul.f32 %v7890_v55, %v3217_v60  ;;  %vm3316_vm0 = vmor %vm3314_vm8, %vm3315_vm10 }
 0x3d4   :  { %v3297_v17 = vmul.f32 %v4646_v59, %v3296_v56  ;;  %v3292_v61 = vsel %vm8083_vm15, %v3291_v11, %v3287_v25  ;;  %v3311_v45 = vsub.f32 1.0, %v3310_v4  ;;  %v3257_v35 = vsel %vm3256_vm6, %v8025_v36, %v3253_v19 }
 0x3d5   :  { %v3401_v13 = vmul.f32 %v7920_v31, %v3292_v61  ;;  %vm3259_vm15 = vcmp.eq.f32.partialorder %v3258_v10, 8.507059e+37  ;;  %v3397_v11 = vmul.f32 %v7893_v32, %v3232_v27  ;;  %v3398_v48 = vmul.f32 %v7895_v0, %v3247_v51 }
 0x3d6   :  { %v3298_v57 = vadd.f32 %v4646_v59, %v3297_v17  ;;  %v3312_v40 = vmul.f32 %v4648_v20, %v3311_v45  ;;  %v3262_v3 = vsel %vm3259_vm15, %v3261_v16, %v3257_v35  ;;  %vm3179_vm3 = vweird.f32 %v7924_v23 }
 0x3d7   :  { %v3410_v31 = vpack.c.bf16 %v3401_v13, %v3400_v34  ;;  %v3399_v55 = vmul.f32 %v7899_v5, %v3262_v3  ;;  %v3408_v60 = vpack.c.bf16 %v3397_v11, %v3396_v54  ;;  %v3148_v36 = vadd.f32 %v7950_v14, %v8016_v37 }
 0x3d8   :  { %v3302_v8 = vsel %vm3301_vm7, %v4646_v59, %v3298_v57  ;;  %v3313_v22 = vadd.f32 %v4648_v20, %v3312_v40  ;;  %vm3194_vm4 = vweird.f32 %v7929_v6  ;;  %vm3150_vm13 = vweird.f32 %v7950_v14 }
 0x3d9   :  { %v3307_v32 = vsel %vm8115_vm12, %v8089_v28, %v3302_v8  ;;  %v3432_v33 = vunpack.c.l.b16 %v3410_v31  ;;  %v3433_v27 = vunpack.c.h.b16 %v3410_v31  ;;  %v3409_v5 = vpack.c.bf16 %v3399_v55, %v3398_v48  ;;  %vm3151_vm12 = vmor %vm3149_vm9, %vm3150_vm13  ;;  %v8778_v55 = vld [vmem:[#allocation36_spill] sm:$0xff] }
 0x3da   :  { %v3402_v0 = vmul.f32 %v7926_v12, %v3307_v32  ;;  %v3428_v59 = vunpack.c.l.b16 %v3408_v60  ;;  %v3429_v7 = vunpack.c.h.b16 %v3408_v60  ;;  %v3317_v56 = vsel %vm3316_vm0, %v4648_v20, %v3313_v22 }
 0x3db   :  { %v3153_v37 = vand.u32 2147483647, %v7913_v9  ;;  %v8772_v28 = vand.u32 2147483648, %v7913_v9  ;;  %v3322_v34 = vsel %vm8140_vm5, %v8110_v18, %v3317_v56  ;;  %v3430_v15 = vunpack.c.l.b16 %v3409_v5 }
 0x3dc   :  { %v3431_v38 = vunpack.c.h.b16 %v3409_v5  ;;  %v3163_v12 = vadd.f32 %v7954_v47, %v8021_v43  ;;  %vm3089_vm8 = vweird.f32 %v7897_v30  ;;  %v3403_v20 = vmul.f32 %v7995_v53, %v3322_v34 }
 0x3dd   :  { %v3156_v41 = vor.u32 1.1754944e-38, %v8772_v28  ;;  %v3152_v2 = vsel %vm3151_vm12, %v7950_v14, %v3148_v36  ;;  %vm3154_vm14 = vcmp.eq.f32.partialorder %v3153_v37, 8.507059e+37  ;;  %vm3165_vm2 = vweird.f32 %v7954_v47 }
 0x3de   :  { %v3440_v19 = vpack.c.b16 %v3430_v15, %v3428_v59  ;;  %v3441_v4 = vpack.c.b16 %v3431_v38, %v3429_v7  ;;  %vm3166_vm10 = vmor %vm3164_vm1, %vm3165_vm2  ;;  %v3168_v9 = vand.u32 2147483647, %v7918_v49  ;;  %vm3104_vm9 = vweird.f32 %v7902_v1  ;;  %v8781_v59 = vld [vmem:[#allocation37_spill] sm:$0xff]  ;;  %v8786_v15 = vld [vmem:[#allocation51_spill] sm:$0xff] }
 0x3df   :  { %v3157_v18 = vsel %vm3154_vm14, %v3156_v41, %v3152_v2  ;;  %v3411_v43 = vpack.c.bf16 %v3403_v20, %v3402_v0  ;;  %v3167_v21 = vsel %vm3166_vm10, %v7954_v47, %v3163_v12  ;;  %v8773_v53 = vand.u32 2147483648, %v7918_v49  ;;  %v8782_v7 = vld [vmem:[#allocation53_spill] sm:$0xff] }
 0x3e0   :  { %v3178_v14 = vadd.f32 %v7957_v39, %v8037_v63  ;;  %vm3169_vm5 = vcmp.eq.f32.partialorder %v3168_v9, 8.507059e+37  ;;  %vm3180_vm11 = vweird.f32 %v7957_v39  ;;  %v3183_v17 = vand.u32 2147483647, %v7924_v23  ;;  %v8787_v38 = vld [vmem:[#allocation57_spill] sm:$0xff]  ;;  %v8789_v9 = vld [vmem:[#allocation54_spill] sm:$0xff] }
 0x3e1   :  { %v3171_v25 = vor.u32 1.1754944e-38, %v8773_v53  ;;  %v8774_v61 = vand.u32 2147483648, %v7924_v23  ;;  %v3434_v10 = vunpack.c.l.b16 %v3411_v43  ;;  %v3435_v45 = vunpack.c.h.b16 %v3411_v43  ;;  %vm3181_vm1 = vmor %vm3179_vm3, %vm3180_vm11 }
 0x3e2   :  { %v3193_v49 = vadd.f32 %v7962_v29, %v8040_v52  ;;  %vm3119_vm6 = vweird.f32 %v7907_v26  ;;  %v3182_v47 = vsel %vm3181_vm1, %v7957_v39, %v3178_v14  ;;  %vm3184_vm15 = vcmp.eq.f32.partialorder %v3183_v17, 8.507059e+37  ;;  %v8790_v14 = vld [vmem:[#allocation55_spill] sm:$0xff] }
 0x3e3   :  { %v3186_v51 = vor.u32 1.1754944e-38, %v8774_v61  ;;  %v3172_v13 = vsel %vm3169_vm5, %v3171_v25, %v3167_v21  ;;  %vm3195_vm7 = vweird.f32 %v7962_v29  ;;  %v3198_v63 = vand.u32 2147483647, %v7929_v6  ;;  %v3452_v21 = vld [vmem:[%s8299_s2] sm:$0xff]  ;;  %v8791_v61 = vld [vmem:[#allocation17_spill] sm:$0xff] }
 0x3e4   :  { %v3442_v44 = vpack.c.b16 %v3434_v10, %v3432_v33  ;;  %v3443_v16 = vpack.c.b16 %v3435_v45, %v3433_v27  ;;  %vm3196_vm0 = vmor %vm3194_vm4, %vm3195_vm7  ;;  %v8775_v23 = vand.u32 2147483648, %v7929_v6  ;;  %vm3134_vm3 = vweird.f32 %v7911_v46  ;;  %v8776_v6 = vld [vmem:[#allocation48_spill] sm:$0xff] }
 0x3e5   :  { %v3187_v54 = vsel %vm3184_vm15, %v3186_v51, %v3182_v47  ;;  %v3197_v52 = vsel %vm3196_vm0, %v7962_v29, %v3193_v49  ;;  %vm3199_vm13 = vcmp.eq.f32.partialorder %v3198_v63, 8.507059e+37  ;;  %v3392_v39 = vmul.f32 %v7879_v24, %v3157_v18 }
 0x3e6   :  { %v3201_v57 = vor.u32 1.1754944e-38, %v8775_v23  ;;  %v3393_v35 = vmul.f32 %v7881_v42, %v3172_v13  ;;  %3470 = vmatpush.bf16.msrb.mxu2 %v3442_v44  ;;  %3484 = vmatpush.bf16.msrb.mxu3 %v3443_v16  ;;  %v3394_v40 = vmul.f32 %v7885_v62, %v3187_v54  ;;  %v3088_v31 = vadd.f32 %v7931_v50, %v7980_v58  ;;  %v8779_v62 = vld [vmem:[#allocation35_spill] sm:$0xff] }
 0x3e7   :  { %vm3090_vm4 = vweird.f32 %v7931_v50  ;;  %v3093_v24 = vand.u32 2147483647, %v7897_v30  ;;  %v8777_v42 = vand.u32 2147483648, %v7897_v30  ;;  %v3103_v60 = vadd.f32 %v8779_v62, %v8778_v55  ;;  %v8792_v13 = vld [vmem:[#allocation19_spill] sm:$0xff] }
 0x3e8   :  { %v3202_v11 = vsel %vm3199_vm13, %v3201_v57, %v3197_v52  ;;  %v3406_v48 = vpack.c.bf16 %v3393_v35, %v3392_v39  ;;  %vm3091_vm12 = vmor %vm3089_vm8, %vm3090_vm4  ;;  %vm3105_vm14 = vweird.f32 %v8779_v62  ;;  %v3108_v58 = vand.u32 2147483647, %v7902_v1  ;;  %v3453_v23 = vld [vmem:[%s8299_s2 + $0x8] sm:$0xff]  ;;  %v8793_v39 = vld [vmem:[#allocation46_spill] sm:$0xff] }
 0x3e9   :  { %v3395_v3 = vmul.f32 %v8776_v6, %v3202_v11  ;;  %v3096_v29 = vor.u32 1.1754944e-38, %v8777_v42  ;;  %v3092_v8 = vsel %vm3091_vm12, %v7931_v50, %v3088_v31  ;;  %vm3094_vm2 = vcmp.eq.f32.partialorder %v3093_v24, 8.507059e+37  ;;  %vm3106_vm8 = vmor %vm3104_vm9, %vm3105_vm14  ;;  %v8794_v35 = vld [vmem:[#allocation6_spill] sm:$0xff]  ;;  %v8797_v31 = vld [vmem:[#allocation23_spill] sm:$0xff] }
 0x3ea   :  { %v3424_v22 = vunpack.c.l.b16 %v3406_v48  ;;  %v3425_v32 = vunpack.c.h.b16 %v3406_v48  ;;  %3471 = vmatpush.bf16.msrb.mxu2 %v3440_v19  ;;  %3485 = vmatpush.bf16.msrb.mxu3 %v3441_v4  ;;  %v3107_v33 = vsel %vm3106_vm8, %v8779_v62, %v3103_v60  ;;  %vm3109_vm10 = vcmp.eq.f32.partialorder %v3108_v58, 8.507059e+37  ;;  %v8795_v11 = vld [vmem:[#allocation2_spill] sm:$0xff]  ;;  %v8798_v6 = vld [vmem:[#allocation60_spill] sm:$0xff]  ;;  %v4118_v48 = vld [vmem:[%s8298_s1 + $0x18] sm:$0xf0] }
 0x3eb   :  { %v3407_v36 = vpack.c.bf16 %v3395_v3, %v3394_v40  ;;  %v3097_v30 = vsel %vm3094_vm2, %v3096_v29, %v3092_v8  ;;  %v8780_v50 = vand.u32 2147483648, %v7902_v1  ;;  %v3118_v56 = vadd.f32 %v8782_v7, %v8781_v59  ;;  %v8796_v40 = vld [vmem:[#allocation4_spill] sm:$0xff]  ;;  %v4068_v3 = vld [vmem:[%s8298_s1 + $0xc] sm:$0xf]  ;;  %v8799_v42 = vld [vmem:[#allocation58_spill] sm:$0xff] }
 0x3ec   :  { %vm3120_vm5 = vweird.f32 %v8782_v7  ;;  %v3123_v41 = vand.u32 2147483647, %v7907_v26  ;;  %v8785_v34 = vand.u32 2147483648, %v7907_v26  ;;  %v3133_v12 = vadd.f32 %v8787_v38, %v8786_v15  ;;  %v8800_v29 = vld [vmem:[#allocation59_spill] sm:$0xff] }
 0x3ed   :  { %v3111_v27 = vor.u32 1.1754944e-38, %v8780_v50  ;;  %v3426_v0 = vunpack.c.l.b16 %v3407_v36  ;;  %v3427_v5 = vunpack.c.h.b16 %v3407_v36  ;;  %vm8242_vm9 = vmor %vm3119_vm6, %vm3120_vm5  ;;  %vm3135_vm11 = vweird.f32 %v8787_v38 }
 0x3ee   :  { %v3126_v1 = vor.u32 1.1754944e-38, %v8785_v34  ;;  %v3122_v19 = vsel %vm8242_vm9, %v8782_v7, %v3118_v56  ;;  %vm3124_vm1 = vcmp.eq.f32.partialorder %v3123_v41, 8.507059e+37  ;;  %vm3136_vm6 = vmor %vm3134_vm3, %vm3135_vm11  ;;  %v3138_v4 = vand.u32 2147483647, %v7911_v46 }
 0x3ef   :  { %v3112_v37 = vsel %vm3109_vm10, %v3111_v27, %v3107_v33  ;;  %v3438_v20 = vpack.c.b16 %v3426_v0, %v3424_v22  ;;  %v3439_v2 = vpack.c.b16 %v3427_v5, %v3425_v32  ;;  %v8788_v26 = vand.u32 2147483648, %v7911_v46 }
 0x3f0   :  { %v3388_v43 = vmul.f32 %v8789_v9, %v3097_v30  ;;  %v3127_v53 = vsel %vm3124_vm1, %v3126_v1, %v3122_v19  ;;  %v3137_v25 = vsel %vm3136_vm6, %v8787_v38, %v3133_v12  ;;  %v3389_v17 = vmul.f32 %v8790_v14, %v3112_v37 }
 0x3f1   :  { %v3141_v18 = vor.u32 1.1754944e-38, %v8788_v26  ;;  %3472 = vmatpush.bf16.msrb.mxu2 %v3438_v20  ;;  %3486 = vmatpush.bf16.msrb.mxu3 %v3439_v2  ;;  %vm3139_vm15 = vcmp.eq.f32.partialorder %v3138_v4, 8.507059e+37  ;;  %v3390_v51 = vmul.f32 %v8791_v61, %v3127_v53  ;;  %v4649_v10 = vmov 0  }
 0x3f2   :  { %4200 = vset.pattern.permute.xlu0 %v4649_v10  ;;  %v3404_v45 = vpack.c.bf16 %v3389_v17, %v3388_v43  ;;  %v4069_v24 = vor.u32 %v4118_v48, %v4068_v3 }
 0x3f3   :  { %v3142_v46 = vsel %vm3139_vm15, %v3141_v18, %v3137_v25  ;;  %3456 = vperm.xlu0 %4200, %v3452_v21  }
 0x3f4   :  { %v3391_v49 = vmul.f32 %v8792_v13, %v3142_v46  ;;  %v3420_v63 = vunpack.c.l.b16 %v3404_v45  ;;  %v3421_v16 = vunpack.c.h.b16 %v3404_v45 }
 0x3f6   :  { %v3405_v47 = vpack.c.bf16 %v3391_v49, %v3390_v51 }
 0x3f8   :  { %v3422_v44 = vunpack.c.l.b16 %v3405_v47  ;;  %v3423_v54 = vunpack.c.h.b16 %v3405_v47 }
 0x3fa   :  { %v3436_v57 = vpack.c.b16 %v3422_v44, %v3420_v63  ;;  %v3437_v52 = vpack.c.b16 %v3423_v54, %v3421_v16 }
 0x3fb   :  { %3461 = vperm.xlu0 %4200, %v3453_v23  }
 0x3fc   :  { %3473 = vmatpush.bf16.msrb.mxu2 %v3436_v57  ;;  %3487 = vmatpush.bf16.msrb.mxu3 %v3437_v52 }
 0x400   :  { %3474 = vmatpush.bf16.msrb.mxu2 %v8793_v39  ;;  %3488 = vmatpush.bf16.msrb.mxu3 %v8794_v35 }
 0x404   :  { %3475 = vmatpush.bf16.msrb.mxu2 %v8795_v11  ;;  %3489 = vmatpush.bf16.msrb.mxu3 %v8796_v40 }
 0x408   :  { %3476 = vmatpush.bf16.msrb.mxu2 %v8797_v31  ;;  %3490 = vmatpush.bf16.msrb.mxu3 %v8798_v6 }
 0x40c   :  { %3477 = vmatpush.bf16.msrb.mxu2 %v8799_v42  ;;  %3491 = vmatpush.bf16.msrb.mxu3 %v8800_v29 }
 0x40f   :  { %3478 = vmatmul.bf16.vlgmr.msrb.gmra.mxu2 %v4069_v24  ;;  %3492 = vmatmul.bf16.vlgmr.msrb.gmra.mxu3 %v4069_v24 }
 0x465   :  { %v3457_v8 = vpop.permute.xlu0 %3456 }
 0x46d   :  { %v3462_v36 = vpop.permute.xlu0 %3461 }
 0x492   :  { %v3479_v55 = vpop.f32.mrf.mxu2  ;;  %v3493_v62 = vpop.f32.mrf.mxu3 }
 0x493   :  { %v3480_v60 = vadd.f32 %v3479_v55, %v3457_v8  ;;  %v3494_v58 = vadd.f32 %v3493_v62, %v3457_v8 }
 0x495   :  { %3498 = vst [vmem:[%s8300_s3] sm:$0xff] %v3480_v60 }
 0x496   :  { %3499 = vst [vmem:[%s8300_s3 + $0x8] sm:$0xff] %v3494_v58 }
 0x49a   :  { %v3481_v22 = vpop.f32.mrf.mxu2  ;;  %v3495_v32 = vpop.f32.mrf.mxu3 }
 0x49b   :  { %v3482_v30 = vadd.f32 %v3481_v22, %v3462_v36  ;;  %v3496_v33 = vadd.f32 %v3495_v32, %v3462_v36 }
 0x49d   :  { %3500 = vst [vmem:[%s8300_s3 + $0x10] sm:$0xff] %v3482_v30 }
 0x49e   :  { %3501 = vst [vmem:[%s8300_s3 + $0x18] sm:$0xff] %v3496_v33 }

</bundles_post_ra>
